<compile_context>
chip_gen: v5e
topology: v5e:2x2
jax: 0.10.0
libtpu: 0.0.40
codegen_flags: <defaults>
</compile_context>

<pallas_src>
import jax
import jax.numpy as jnp
from jax.experimental import pallas as pl
from jax.experimental.pallas import tpu as pltpu


def _round_up(x, m):
    return (x + m - 1) // m * m


_COL_CHUNK = 256  # column chunk of the 128->1024 layer


# ---------------------------------------------------------------------------
# Fused kernel: point-MLPs (both branches) + running max-pool + FC heads.
# grid = (B, n_tiles), dimension_semantics = ("parallel", "arbitrary").
# ---------------------------------------------------------------------------
def _fused_pointnet_kernel(net_ref,
                           wc1, bc1,          # packed first layer: K -> 64|64  == (K, 128)
                           wd2, bd2,          # block-diag second layer: [64->128 | 64->256] == (128, 384)
                           w3, b3,            # T-Net conv3: 128 -> 1024
                           wf1, bf1, wf2, bf2, wf3, bf3,   # T-Net FC head (identity folded in bf3)
                           wfc, bfc,          # final nn.Linear(256, 1)
                           t_ref, name_ref,
                           pooled_t, pooled_r):
    n = pl.program_id(1)
    n_last = pl.num_programs(1) - 1

    @pl.when(n == 0)
    def _():
        pooled_t[...] = jnp.full(pooled_t.shape, -jnp.inf, dtype=pooled_t.dtype)
        pooled_r[...] = jnp.full(pooled_r.shape, -jnp.inf, dtype=pooled_r.dtype)

    x = net_ref[0]                                       # (tn, K) bf16

    # Layer 1 (shared input): one (tn,20)x(20,128) matmul covers both branches.
    y1 = jnp.maximum(
        jnp.dot(x, wc1[...], preferred_element_type=jnp.float32) + bc1[...], 0.0)

    # Layer 2, block-diagonal packed: contraction 128, output 384 = [128 T-Net | 256 res].
    y2 = jnp.maximum(
        jnp.dot(y1.astype(jnp.bfloat16), wd2[...],
                preferred_element_type=jnp.float32) + bd2[...], 0.0)
    h2 = y2[:, :128].astype(jnp.bfloat16)                # T-Net branch (tn, 128)
    pooled_r[...] = jnp.maximum(pooled_r[...],
                                jnp.max(y2[:, 128:], axis=0, keepdims=True))

    # Layer 3 (128 -> 1024), column-chunked so ReLU + row-max consume each chunk
    # while it is still live (no (tn,1024) f32 spill through VMEM).
    for c in range(0, 1024, _COL_CHUNK):
        hc = jnp.dot(h2, w3[:, c:c + _COL_CHUNK],
                     preferred_element_type=jnp.float32) + b3[:, c:c + _COL_CHUNK]
        hc = jnp.maximum(hc, 0.0)
        pooled_t[:, c:c + _COL_CHUNK] = jnp.maximum(
            pooled_t[:, c:c + _COL_CHUNK], jnp.max(hc, axis=0, keepdims=True))

    # FC heads, fused: once per batch element after the last N tile.
    @pl.when(n == n_last)
    def _():
        pt = pooled_t[...].astype(jnp.bfloat16)          # (1, 1024)
        g = jnp.maximum(
            jnp.dot(pt, wf1[...], preferred_element_type=jnp.float32) + bf1[...], 0.0)
        g = jnp.maximum(
            jnp.dot(g.astype(jnp.bfloat16), wf2[...],
                    preferred_element_type=jnp.float32) + bf2[...], 0.0)
        # fc3 bias already contains the flattened identity matrix.
        t_ref[0] = jnp.dot(g.astype(jnp.bfloat16), wf3[...],
                           preferred_element_type=jnp.float32) + bf3[...]
        pr = pooled_r[...].astype(jnp.bfloat16)          # (1, 256)
        name_ref[0] = jnp.dot(pr, wfc[...],
                              preferred_element_type=jnp.float32) + bfc[...]


# ---------------------------------------------------------------------------
# Parameter folding / wrapper (plain JAX glue)
# ---------------------------------------------------------------------------
def _fold_bn(w_io, bias, bn, eps=1e-5):
    """Fold eval-mode BatchNorm into an (in, out) weight and a (1, out) bias."""
    gamma, beta, mean, var = bn
    scale = gamma / jnp.sqrt(var + eps)
    return w_io * scale[None, :], ((bias - mean) * scale + beta)[None, :]


def pointnet_pretraining_name_forward(point_cloud_dict, params, tn=256,
                                      return_tnet=False):
    # point_cloud_dict['site_coord'] is present but unused by the torch forward.
    net = point_cloud_dict["site_name"]                  # (B, N, K), K = 20
    B, N, K = net.shape
    kk = K * K
    ftn, res = params["ftn"], params["res"]

    # ---- fold eval-mode BN into preceding layers; fold identity into fc3 bias ----
    w1, b1 = _fold_bn(ftn["conv1_w"][:, :, 0].T, ftn["conv1_b"], ftn["bn1"])
    w2, b2 = _fold_bn(ftn["conv2_w"][:, :, 0].T, ftn["conv2_b"], ftn["bn2"])
    w3, b3 = _fold_bn(ftn["conv3_w"][:, :, 0].T, ftn["conv3_b"], ftn["bn3"])
    wf1, bf1 = _fold_bn(ftn["fc1_w"].T, ftn["fc1_b"], ftn["bn4"])
    wf2, bf2 = _fold_bn(ftn["fc2_w"].T, ftn["fc2_b"], ftn["bn5"])
    wf3 = ftn["fc3_w"].T
    bf3 = (ftn["fc3_b"] + jnp.eye(K, dtype=jnp.float32).reshape(-1))[None, :]
    rw1, rb1 = _fold_bn(res["conv1_w"][:, :, 0].T, res["conv1_b"], res["bn1"])
    rw2, rb2 = _fold_bn(res["conv2_w"][:, :, 0].T, res["conv2_b"], res["bn2"])
    wfc = params["fc_w"].T                               # (256, 1)
    bfc = params["fc_b"][None, :]                        # (1, 1)

    # ---- pack the shared-input first layers and the second layers ----
    wc1 = jnp.concatenate([w1, rw1], axis=1)             # (K, 128)
    bc1 = jnp.concatenate([b1, rb1], axis=1)             # (1, 128)
    wd2 = jnp.zeros((128, 128 + 256), jnp.float32)       # block-diag [w2 | rw2]
    wd2 = wd2.at[:64, :128].set(w2).at[64:, 128:].set(rw2)
    bd2 = jnp.concatenate([b2, rb2], axis=1)             # (1, 384)

    # ---- N tiling: multiple of 16 (bf16 sublane packing); edge-replicated pad
    #      rows are max-pool invariant ----
    tn = max(16, min(tn, _round_up(N, 16)))
    n_pad = _round_up(N, tn)
    net_p = net if n_pad == N else jnp.pad(net, ((0, 0), (0, n_pad - N), (0, 0)),
                                           mode="edge")
    net_bf = net_p.astype(jnp.bfloat16)
    n_tiles = n_pad // tn

    def bf(a):
        return a.astype(jnp.bfloat16)

    consts = [bf(wc1), bc1, bf(wd2), bd2, bf(w3), b3,
              bf(wf1), bf1, bf(wf2), bf2, bf(wf3), bf3, bf(wfc), bfc]

    in_specs = [pl.BlockSpec((1, tn, K), lambda b, n: (b, n, 0))]
    in_specs += [pl.BlockSpec(m.shape, lambda b, n: (0, 0)) for m in consts]

    t_flat, name_out = pl.pallas_call(
        _fused_pointnet_kernel,
        out_shape=(jax.ShapeDtypeStruct((B, 1, kk), jnp.float32),
                   jax.ShapeDtypeStruct((B, 1, 1), jnp.float32)),
        grid=(B, n_tiles),
        in_specs=in_specs,
        out_specs=(pl.BlockSpec((1, 1, kk), lambda b, n: (b, 0, 0)),
                   pl.BlockSpec((1, 1, 1), lambda b, n: (b, 0, 0))),
        scratch_shapes=[pltpu.VMEM((1, 1024), jnp.float32),
                        pltpu.VMEM((1, 256), jnp.float32)],
        compiler_params=pltpu.CompilerParams(
            dimension_semantics=("parallel", "arbitrary")),
    )(net_bf, *consts)

    name_out = name_out.reshape(B, 1)
    if return_tnet:
        # T already contains the +I term; exposed only for verification / debugging.
        return name_out, t_flat.reshape(B, K, K)
    return name_out


# ---------------------------------------------------------------------------
# Deterministic synthetic parameters (PyTorch-shaped)
# ---------------------------------------------------------------------------
def init_params(key, k=20):
    keys = iter(jax.random.split(key, 64))

    def layer(cout, cin, conv=False):
        scale = 1.0 / jnp.sqrt(jnp.float32(cin))
        w = scale * jax.random.normal(next(keys), (cout, cin), dtype=jnp.float32)
        b = scale * jax.random.normal(next(keys), (cout,), dtype=jnp.float32)
        if conv:
            w = w[:, :, None]                            # Conv1d weight (out, in, 1)
        return w, b

    def bn(c):
        gamma = 1.0 + 0.1 * jax.random.normal(next(keys), (c,), dtype=jnp.float32)
        beta = 0.05 * jax.random.normal(next(keys), (c,), dtype=jnp.float32)
        mean = 0.05 * jax.random.normal(next(keys), (c,), dtype=jnp.float32)
        var = 0.9 + 0.2 * jax.random.uniform(next(keys), (c,), dtype=jnp.float32)
        return (gamma, beta, mean, var)

    ftn = {}
    for name, (cout, cin) in {"conv1": (64, k), "conv2": (128, 64), "conv3": (1024, 128)}.items():
        ftn[name + "_w"], ftn[name + "_b"] = layer(cout, cin, conv=True)
    for name, (cout, cin) in {"fc1": (512, 1024), "fc2": (256, 512), "fc3": (k * k, 256)}.items():
        ftn[name + "_w"], ftn[name + "_b"] = layer(cout, cin)
    for name, c in {"bn1": 64, "bn2": 128, "bn3": 1024, "bn4": 512, "bn5": 256}.items():
        ftn[name] = bn(c)

    res = {}
    for name, (cout, cin) in {"conv1": (64, k), "conv2": (256, 64)}.items():
        res[name + "_w"], res[name + "_b"] = layer(cout, cin, conv=True)
    res["bn1"] = bn(64)
    res["bn2"] = bn(256)

    fc_w, fc_b = layer(1, 256)
    return {"ftn": ftn, "res": res, "fc_w": fc_w, "fc_b": fc_b}


# ---------------------------------------------------------------------------
# Pure-JAX reference mirroring the PyTorch forward (eval-mode BN)
# ---------------------------------------------------------------------------
def reference_forward(point_cloud_dict, params, eps=1e-5):
    net = point_cloud_dict["site_name"]
    ftn, res = params["ftn"], params["res"]

    def bn(x, p):
        gamma, beta, mean, var = p
        return (x - mean) * gamma / jnp.sqrt(var + eps) + beta

    # inner feature_transform_net(20) (its net@T output is discarded by the module)
    x = jnp.einsum("bnc,oc->bno", net, ftn["conv1_w"][:, :, 0]) + ftn["conv1_b"]
    x = jax.nn.relu(bn(x, ftn["bn1"]))
    x = jnp.einsum("bnc,oc->bno", x, ftn["conv2_w"][:, :, 0]) + ftn["conv2_b"]
    x = jax.nn.relu(bn(x, ftn["bn2"]))
    x = jnp.einsum("bnc,oc->bno", x, ftn["conv3_w"][:, :, 0]) + ftn["conv3_b"]
    x = jax.nn.relu(bn(x, ftn["bn3"]))
    x = jnp.max(x, axis=1)                               # (B, 1024)
    x = jax.nn.relu(bn(x @ ftn["fc1_w"].T + ftn["fc1_b"], ftn["bn4"]))
    x = jax.nn.relu(bn(x @ ftn["fc2_w"].T + ftn["fc2_b"], ftn["bn5"]))
    x = x @ ftn["fc3_w"].T + ftn["fc3_b"]                # (B, K*K)
    K = net.shape[-1]
    T = (x + jnp.eye(K, dtype=jnp.float32).reshape(1, K * K)).reshape(-1, K, K)

    # res branch on the ORIGINAL net (torch overwrites x with net.permute)
    y = jnp.einsum("bnc,oc->bno", net, res["conv1_w"][:, :, 0]) + res["conv1_b"]
    y = jax.nn.relu(bn(y, res["bn1"]))
    y = jnp.einsum("bnc,oc->bno", y, res["conv2_w"][:, :, 0]) + res["conv2_b"]
    y = jax.nn.relu(bn(y, res["bn2"]))
    y = jnp.max(y, axis=1)                               # (B, 256)
    name = y @ params["fc_w"].T + params["fc_b"]         # (B, 1)
    return name, T


if __name__ == "__main__":
    K = 20              # res_name_feature_transform_net(20)
    B, N = 2, 72        # small batch / points (N not a tile multiple -> exercises padding)

    key = jax.random.PRNGKey(0)
    pkey, nkey, ckey = jax.random.split(key, 3)
    params = init_params(pkey, k=K)
    site_name = jax.random.normal(nkey, (B, N, K), dtype=jnp.float32)
    site_coord = jax.random.normal(ckey, (B, N, 3), dtype=jnp.float32)   # unused by forward
    point_cloud_dict = {"site_coord": site_coord, "site_name": site_name}

    # Default (perf-oriented) tile: one tile per batch element at this small N.
    name_out, t_mat = pointnet_pretraining_name_forward(point_cloud_dict, params,
                                                        return_tnet=True)
    name_out = jax.block_until_ready(name_out)
    t_mat = jax.block_until_ready(t_mat)

    # Small tile to exercise the multi-tile running-max + finalize-on-last path.
    name_small, t_small = pointnet_pretraining_name_forward(point_cloud_dict, params,
                                                            tn=32, return_tnet=True)
    name_small = jax.block_until_ready(name_small)
    t_small = jax.block_until_ready(t_small)

    ref_name, ref_T = reference_forward(point_cloud_dict, params)
    assert name_out.shape == (B, 1), name_out.shape
    assert t_mat.shape == (B, K, K), t_mat.shape

    def check(a, b, atol, rtol, msg):
        err = jnp.max(jnp.abs(a - b))
        if not jnp.allclose(a, b, atol=atol, rtol=rtol):
            raise AssertionError(f"Pallas output mismatch vs reference ({msg}): max abs err={err}")

    check(name_out, ref_name, 7e-2, 7e-2, "name, default tn")
    check(name_small, ref_name, 7e-2, 7e-2, "name, tn=32")
    check(t_mat, ref_T, 2.5e-1, 1e-1, "T-Net matrix, default tn")
    check(t_small, ref_T, 2.5e-1, 1e-1, "T-Net matrix, tn=32")

    print("KERNEL_OK")
</pallas_src>

<mosaic_0001>
module attributes {stable_mosaic.version = 11 : i64} {
  func.func @_fused_pointnet_kernel(%arg0: i32, %arg1: i32, %arg2: memref<1x80x20xbf16, #tpu.memory_space<vmem>>, %arg3: memref<20x128xbf16, #tpu.memory_space<vmem>>, %arg4: memref<1x128xf32, #tpu.memory_space<vmem>>, %arg5: memref<128x384xbf16, #tpu.memory_space<vmem>>, %arg6: memref<1x384xf32, #tpu.memory_space<vmem>>, %arg7: memref<128x1024xbf16, #tpu.memory_space<vmem>>, %arg8: memref<1x1024xf32, #tpu.memory_space<vmem>>, %arg9: memref<1024x512xbf16, #tpu.memory_space<vmem>>, %arg10: memref<1x512xf32, #tpu.memory_space<vmem>>, %arg11: memref<512x256xbf16, #tpu.memory_space<vmem>>, %arg12: memref<1x256xf32, #tpu.memory_space<vmem>>, %arg13: memref<256x400xbf16, #tpu.memory_space<vmem>>, %arg14: memref<1x400xf32, #tpu.memory_space<vmem>>, %arg15: memref<256x1xbf16, #tpu.memory_space<vmem>>, %arg16: memref<1x1xf32, #tpu.memory_space<vmem>>, %arg17: memref<1x1x400xf32, #tpu.memory_space<vmem>>, %arg18: memref<1x1x1xf32, #tpu.memory_space<vmem>>, %arg19: memref<1x1024xf32, #tpu.memory_space<vmem>>, %arg20: memref<1x256xf32, #tpu.memory_space<vmem>>) attributes {dimension_semantics = [#tpu.dimension_semantics<parallel>, #tpu.dimension_semantics<arbitrary>], iteration_bounds = array<i64: 2, 1>, scalar_prefetch = 0 : i64, scratch_operands = 2 : i64, tpu.core_type = #tpu.core_type<tc>, window_params = [{transform_indices = @transform_0, window_bounds = array<i64: 1, 80, 20>}, {pipeline_mode = #tpu.pipeline_mode<synchronous>, transform_indices = @transform_1, window_bounds = array<i64: 20, 128>}, {pipeline_mode = #tpu.pipeline_mode<synchronous>, transform_indices = @transform_2, window_bounds = array<i64: 1, 128>}, {pipeline_mode = #tpu.pipeline_mode<synchronous>, transform_indices = @transform_3, window_bounds = array<i64: 128, 384>}, {pipeline_mode = #tpu.pipeline_mode<synchronous>, transform_indices = @transform_4, window_bounds = array<i64: 1, 384>}, {pipeline_mode = #tpu.pipeline_mode<synchronous>, transform_indices = @transform_5, window_bounds = array<i64: 128, 1024>}, {pipeline_mode = #tpu.pipeline_mode<synchronous>, transform_indices = @transform_6, window_bounds = array<i64: 1, 1024>}, {pipeline_mode = #tpu.pipeline_mode<synchronous>, transform_indices = @transform_7, window_bounds = array<i64: 1024, 512>}, {pipeline_mode = #tpu.pipeline_mode<synchronous>, transform_indices = @transform_8, window_bounds = array<i64: 1, 512>}, {pipeline_mode = #tpu.pipeline_mode<synchronous>, transform_indices = @transform_9, window_bounds = array<i64: 512, 256>}, {pipeline_mode = #tpu.pipeline_mode<synchronous>, transform_indices = @transform_10, window_bounds = array<i64: 1, 256>}, {pipeline_mode = #tpu.pipeline_mode<synchronous>, transform_indices = @transform_11, window_bounds = array<i64: 256, 400>}, {pipeline_mode = #tpu.pipeline_mode<synchronous>, transform_indices = @transform_12, window_bounds = array<i64: 1, 400>}, {pipeline_mode = #tpu.pipeline_mode<synchronous>, transform_indices = @transform_13, window_bounds = array<i64: 256, 1>}, {pipeline_mode = #tpu.pipeline_mode<synchronous>, transform_indices = @transform_14, window_bounds = array<i64: 1, 1>}, {transform_indices = @transform_15, window_bounds = array<i64: 1, 1, 400>}, {transform_indices = @transform_16, window_bounds = array<i64: 1, 1, 1>}]} {
    %c0_i32 = arith.constant 0 : i32
    %0 = arith.cmpi eq, %arg1, %c0_i32 : i32
    %1 = arith.extui %0 : i1 to i32
    %c0_i32_0 = arith.constant 0 : i32
    %2 = arith.cmpi ne, %1, %c0_i32_0 : i32
    scf.if %2 {
      %cst_62 = arith.constant 0xFF800000 : f32
      %79 = vector.broadcast %cst_62 : f32 to vector<1x1024xf32>
      %c0_63 = arith.constant 0 : index
      %c0_64 = arith.constant 0 : index
      %80 = vector.load %arg19[%c0_63, %c0_64] : memref<1x1024xf32, #tpu.memory_space<vmem>>, vector<1x1024xf32>
      tpu.vector_store %arg19[%c0_63, %c0_64], %79 {strides = array<i32>} : memref<1x1024xf32, #tpu.memory_space<vmem>>, vector<1x1024xf32>,
      %cst_65 = arith.constant 0xFF800000 : f32
      %81 = vector.broadcast %cst_65 : f32 to vector<1x256xf32>
      %c0_66 = arith.constant 0 : index
      %c0_67 = arith.constant 0 : index
      %82 = vector.load %arg20[%c0_66, %c0_67] : memref<1x256xf32, #tpu.memory_space<vmem>>, vector<1x256xf32>
      tpu.vector_store %arg20[%c0_66, %c0_67], %81 {strides = array<i32>} : memref<1x256xf32, #tpu.memory_space<vmem>>, vector<1x256xf32>,
    } else {
    }
    %c0 = arith.constant 0 : index
    %c0_1 = arith.constant 0 : index
    %c0_2 = arith.constant 0 : index
    %3 = vector.load %arg2[%c0, %c0_1, %c0_2] : memref<1x80x20xbf16, #tpu.memory_space<vmem>>, vector<1x80x20xbf16>
    %4 = vector.shape_cast %3 : vector<1x80x20xbf16> to vector<80x20xbf16>
    %c0_3 = arith.constant 0 : index
    %c0_4 = arith.constant 0 : index
    %5 = vector.load %arg3[%c0_3, %c0_4] : memref<20x128xbf16, #tpu.memory_space<vmem>>, vector<20x128xbf16>
    %cst = arith.constant dense<0.000000e+00> : vector<80x128xf32>
    %6 = tpu.matmul %4, %5, %cst {dimension_numbers = #tpu.dot_dimension_numbers<[1], [0], [0], [1], [0, 0, 1, 1], [], []>} : vector<80x20xbf16>, vector<20x128xbf16>, vector<80x128xf32> -> vector<80x128xf32>
    %c0_5 = arith.constant 0 : index
    %c0_6 = arith.constant 0 : index
    %7 = vector.load %arg4[%c0_5, %c0_6] : memref<1x128xf32, #tpu.memory_space<vmem>>, vector<1x128xf32>
    %8 = vector.broadcast %7 : vector<1x128xf32> to vector<80x128xf32>
    %9 = arith.addf %6, %8 : vector<80x128xf32>
    %cst_7 = arith.constant 0.000000e+00 : f32
    %10 = vector.broadcast %cst_7 : f32 to vector<80x128xf32>
    %11 = arith.maximumf %9, %10 : vector<80x128xf32>
    %12 = arith.truncf %11 : vector<80x128xf32> to vector<80x128xbf16>
    %c0_8 = arith.constant 0 : index
    %c0_9 = arith.constant 0 : index
    %13 = vector.load %arg5[%c0_8, %c0_9] : memref<128x384xbf16, #tpu.memory_space<vmem>>, vector<128x384xbf16>
    %cst_10 = arith.constant dense<0.000000e+00> : vector<80x384xf32>
    %14 = tpu.matmul %12, %13, %cst_10 {dimension_numbers = #tpu.dot_dimension_numbers<[1], [0], [0], [1], [0, 0, 1, 1], [], []>} : vector<80x128xbf16>, vector<128x384xbf16>, vector<80x384xf32> -> vector<80x384xf32>
    %c0_11 = arith.constant 0 : index
    %c0_12 = arith.constant 0 : index
    %15 = vector.load %arg6[%c0_11, %c0_12] : memref<1x384xf32, #tpu.memory_space<vmem>>, vector<1x384xf32>
    %16 = vector.broadcast %15 : vector<1x384xf32> to vector<80x384xf32>
    %17 = arith.addf %14, %16 : vector<80x384xf32>
    %cst_13 = arith.constant 0.000000e+00 : f32
    %18 = vector.broadcast %cst_13 : f32 to vector<80x384xf32>
    %19 = arith.maximumf %17, %18 : vector<80x384xf32>
    %20 = vector.extract_strided_slice %19 {offsets = [0, 0], sizes = [80, 128], strides = [1, 1]} : vector<80x384xf32> to vector<80x128xf32>
    %21 = arith.truncf %20 : vector<80x128xf32> to vector<80x128xbf16>
    %c0_14 = arith.constant 0 : index
    %c0_15 = arith.constant 0 : index
    %22 = vector.load %arg20[%c0_14, %c0_15] : memref<1x256xf32, #tpu.memory_space<vmem>>, vector<1x256xf32>
    %23 = vector.extract_strided_slice %19 {offsets = [0, 128], sizes = [80, 256], strides = [1, 1]} : vector<80x384xf32> to vector<80x256xf32>
    %cst_16 = arith.constant dense<0xFF800000> : vector<256xf32>
    %24 = vector.multi_reduction <maximumf>, %23, %cst_16 [0] : vector<80x256xf32> to vector<256xf32>
    %25 = vector.shape_cast %24 : vector<256xf32> to vector<1x256xf32>
    %26 = arith.maximumf %22, %25 : vector<1x256xf32>
    %c0_17 = arith.constant 0 : index
    %c0_18 = arith.constant 0 : index
    %27 = vector.load %arg20[%c0_17, %c0_18] : memref<1x256xf32, #tpu.memory_space<vmem>>, vector<1x256xf32>
    tpu.vector_store %arg20[%c0_17, %c0_18], %26 {strides = array<i32>} : memref<1x256xf32, #tpu.memory_space<vmem>>, vector<1x256xf32>,
    %c0_19 = arith.constant 0 : index
    %c0_20 = arith.constant 0 : index
    %28 = vector.load %arg7[%c0_19, %c0_20] : memref<128x1024xbf16, #tpu.memory_space<vmem>>, vector<128x256xbf16>
    %cst_21 = arith.constant dense<0.000000e+00> : vector<80x256xf32>
    %29 = tpu.matmul %21, %28, %cst_21 {dimension_numbers = #tpu.dot_dimension_numbers<[1], [0], [0], [1], [0, 0, 1, 1], [], []>} : vector<80x128xbf16>, vector<128x256xbf16>, vector<80x256xf32> -> vector<80x256xf32>
    %c0_22 = arith.constant 0 : index
    %c0_23 = arith.constant 0 : index
    %30 = vector.load %arg8[%c0_22, %c0_23] : memref<1x1024xf32, #tpu.memory_space<vmem>>, vector<1x256xf32>
    %31 = vector.broadcast %30 : vector<1x256xf32> to vector<80x256xf32>
    %32 = arith.addf %29, %31 : vector<80x256xf32>
    %cst_24 = arith.constant 0.000000e+00 : f32
    %33 = vector.broadcast %cst_24 : f32 to vector<80x256xf32>
    %34 = arith.maximumf %32, %33 : vector<80x256xf32>
    %c0_25 = arith.constant 0 : index
    %c0_26 = arith.constant 0 : index
    %35 = vector.load %arg19[%c0_25, %c0_26] : memref<1x1024xf32, #tpu.memory_space<vmem>>, vector<1x256xf32>
    %cst_27 = arith.constant dense<0xFF800000> : vector<256xf32>
    %36 = vector.multi_reduction <maximumf>, %34, %cst_27 [0] : vector<80x256xf32> to vector<256xf32>
    %37 = vector.shape_cast %36 : vector<256xf32> to vector<1x256xf32>
    %38 = arith.maximumf %35, %37 : vector<1x256xf32>
    %c0_28 = arith.constant 0 : index
    %c0_29 = arith.constant 0 : index
    %39 = vector.load %arg19[%c0_28, %c0_29] : memref<1x1024xf32, #tpu.memory_space<vmem>>, vector<1x256xf32>
    tpu.vector_store %arg19[%c0_28, %c0_29], %38 {strides = array<i32>} : memref<1x1024xf32, #tpu.memory_space<vmem>>, vector<1x256xf32>,
    %c0_30 = arith.constant 0 : index
    %c256 = arith.constant 256 : index
    %40 = vector.load %arg7[%c0_30, %c256] : memref<128x1024xbf16, #tpu.memory_space<vmem>>, vector<128x256xbf16>
    %cst_31 = arith.constant dense<0.000000e+00> : vector<80x256xf32>
    %41 = tpu.matmul %21, %40, %cst_31 {dimension_numbers = #tpu.dot_dimension_numbers<[1], [0], [0], [1], [0, 0, 1, 1], [], []>} : vector<80x128xbf16>, vector<128x256xbf16>, vector<80x256xf32> -> vector<80x256xf32>
    %c0_32 = arith.constant 0 : index
    %c256_33 = arith.constant 256 : index
    %42 = vector.load %arg8[%c0_32, %c256_33] : memref<1x1024xf32, #tpu.memory_space<vmem>>, vector<1x256xf32>
    %43 = vector.broadcast %42 : vector<1x256xf32> to vector<80x256xf32>
    %44 = arith.addf %41, %43 : vector<80x256xf32>
    %cst_34 = arith.constant 0.000000e+00 : f32
    %45 = vector.broadcast %cst_34 : f32 to vector<80x256xf32>
    %46 = arith.maximumf %44, %45 : vector<80x256xf32>
    %c0_35 = arith.constant 0 : index
    %c256_36 = arith.constant 256 : index
    %47 = vector.load %arg19[%c0_35, %c256_36] : memref<1x1024xf32, #tpu.memory_space<vmem>>, vector<1x256xf32>
    %cst_37 = arith.constant dense<0xFF800000> : vector<256xf32>
    %48 = vector.multi_reduction <maximumf>, %46, %cst_37 [0] : vector<80x256xf32> to vector<256xf32>
    %49 = vector.shape_cast %48 : vector<256xf32> to vector<1x256xf32>
    %50 = arith.maximumf %47, %49 : vector<1x256xf32>
    %c0_38 = arith.constant 0 : index
    %c256_39 = arith.constant 256 : index
    %51 = vector.load %arg19[%c0_38, %c256_39] : memref<1x1024xf32, #tpu.memory_space<vmem>>, vector<1x256xf32>
    tpu.vector_store %arg19[%c0_38, %c256_39], %50 {strides = array<i32>} : memref<1x1024xf32, #tpu.memory_space<vmem>>, vector<1x256xf32>,
    %c0_40 = arith.constant 0 : index
    %c512 = arith.constant 512 : index
    %52 = vector.load %arg7[%c0_40, %c512] : memref<128x1024xbf16, #tpu.memory_space<vmem>>, vector<128x256xbf16>
    %cst_41 = arith.constant dense<0.000000e+00> : vector<80x256xf32>
    %53 = tpu.matmul %21, %52, %cst_41 {dimension_numbers = #tpu.dot_dimension_numbers<[1], [0], [0], [1], [0, 0, 1, 1], [], []>} : vector<80x128xbf16>, vector<128x256xbf16>, vector<80x256xf32> -> vector<80x256xf32>
    %c0_42 = arith.constant 0 : index
    %c512_43 = arith.constant 512 : index
    %54 = vector.load %arg8[%c0_42, %c512_43] : memref<1x1024xf32, #tpu.memory_space<vmem>>, vector<1x256xf32>
    %55 = vector.broadcast %54 : vector<1x256xf32> to vector<80x256xf32>
    %56 = arith.addf %53, %55 : vector<80x256xf32>
    %cst_44 = arith.constant 0.000000e+00 : f32
    %57 = vector.broadcast %cst_44 : f32 to vector<80x256xf32>
    %58 = arith.maximumf %56, %57 : vector<80x256xf32>
    %c0_45 = arith.constant 0 : index
    %c512_46 = arith.constant 512 : index
    %59 = vector.load %arg19[%c0_45, %c512_46] : memref<1x1024xf32, #tpu.memory_space<vmem>>, vector<1x256xf32>
    %cst_47 = arith.constant dense<0xFF800000> : vector<256xf32>
    %60 = vector.multi_reduction <maximumf>, %58, %cst_47 [0] : vector<80x256xf32> to vector<256xf32>
    %61 = vector.shape_cast %60 : vector<256xf32> to vector<1x256xf32>
    %62 = arith.maximumf %59, %61 : vector<1x256xf32>
    %c0_48 = arith.constant 0 : index
    %c512_49 = arith.constant 512 : index
    %63 = vector.load %arg19[%c0_48, %c512_49] : memref<1x1024xf32, #tpu.memory_space<vmem>>, vector<1x256xf32>
    tpu.vector_store %arg19[%c0_48, %c512_49], %62 {strides = array<i32>} : memref<1x1024xf32, #tpu.memory_space<vmem>>, vector<1x256xf32>,
    %c0_50 = arith.constant 0 : index
    %c768 = arith.constant 768 : index
    %64 = vector.load %arg7[%c0_50, %c768] : memref<128x1024xbf16, #tpu.memory_space<vmem>>, vector<128x256xbf16>
    %cst_51 = arith.constant dense<0.000000e+00> : vector<80x256xf32>
    %65 = tpu.matmul %21, %64, %cst_51 {dimension_numbers = #tpu.dot_dimension_numbers<[1], [0], [0], [1], [0, 0, 1, 1], [], []>} : vector<80x128xbf16>, vector<128x256xbf16>, vector<80x256xf32> -> vector<80x256xf32>
    %c0_52 = arith.constant 0 : index
    %c768_53 = arith.constant 768 : index
    %66 = vector.load %arg8[%c0_52, %c768_53] : memref<1x1024xf32, #tpu.memory_space<vmem>>, vector<1x256xf32>
    %67 = vector.broadcast %66 : vector<1x256xf32> to vector<80x256xf32>
    %68 = arith.addf %65, %67 : vector<80x256xf32>
    %cst_54 = arith.constant 0.000000e+00 : f32
    %69 = vector.broadcast %cst_54 : f32 to vector<80x256xf32>
    %70 = arith.maximumf %68, %69 : vector<80x256xf32>
    %c0_55 = arith.constant 0 : index
    %c768_56 = arith.constant 768 : index
    %71 = vector.load %arg19[%c0_55, %c768_56] : memref<1x1024xf32, #tpu.memory_space<vmem>>, vector<1x256xf32>
    %cst_57 = arith.constant dense<0xFF800000> : vector<256xf32>
    %72 = vector.multi_reduction <maximumf>, %70, %cst_57 [0] : vector<80x256xf32> to vector<256xf32>
    %73 = vector.shape_cast %72 : vector<256xf32> to vector<1x256xf32>
    %74 = arith.maximumf %71, %73 : vector<1x256xf32>
    %c0_58 = arith.constant 0 : index
    %c768_59 = arith.constant 768 : index
    %75 = vector.load %arg19[%c0_58, %c768_59] : memref<1x1024xf32, #tpu.memory_space<vmem>>, vector<1x256xf32>
    tpu.vector_store %arg19[%c0_58, %c768_59], %74 {strides = array<i32>} : memref<1x1024xf32, #tpu.memory_space<vmem>>, vector<1x256xf32>,
    %c0_i32_60 = arith.constant 0 : i32
    %76 = arith.cmpi eq, %arg1, %c0_i32_60 : i32
    %77 = arith.extui %76 : i1 to i32
    %c0_i32_61 = arith.constant 0 : i32
    %78 = arith.cmpi ne, %77, %c0_i32_61 : i32
    scf.if %78 {
      %c0_62 = arith.constant 0 : index
      %c0_63 = arith.constant 0 : index
      %79 = vector.load %arg19[%c0_62, %c0_63] : memref<1x1024xf32, #tpu.memory_space<vmem>>, vector<1x1024xf32>
      %80 = arith.truncf %79 : vector<1x1024xf32> to vector<1x1024xbf16>
      %c0_64 = arith.constant 0 : index
      %c0_65 = arith.constant 0 : index
      %81 = vector.load %arg9[%c0_64, %c0_65] : memref<1024x512xbf16, #tpu.memory_space<vmem>>, vector<1024x512xbf16>
      %cst_66 = arith.constant dense<0.000000e+00> : vector<1x512xf32>
      %82 = tpu.matmul %80, %81, %cst_66 {dimension_numbers = #tpu.dot_dimension_numbers<[1], [0], [0], [1], [0, 0, 1, 1], [], []>} : vector<1x1024xbf16>, vector<1024x512xbf16>, vector<1x512xf32> -> vector<1x512xf32>
      %c0_67 = arith.constant 0 : index
      %c0_68 = arith.constant 0 : index
      %83 = vector.load %arg10[%c0_67, %c0_68] : memref<1x512xf32, #tpu.memory_space<vmem>>, vector<1x512xf32>
      %84 = arith.addf %82, %83 : vector<1x512xf32>
      %cst_69 = arith.constant 0.000000e+00 : f32
      %85 = vector.broadcast %cst_69 : f32 to vector<1x512xf32>
      %86 = arith.maximumf %84, %85 : vector<1x512xf32>
      %87 = arith.truncf %86 : vector<1x512xf32> to vector<1x512xbf16>
      %c0_70 = arith.constant 0 : index
      %c0_71 = arith.constant 0 : index
      %88 = vector.load %arg11[%c0_70, %c0_71] : memref<512x256xbf16, #tpu.memory_space<vmem>>, vector<512x256xbf16>
      %cst_72 = arith.constant dense<0.000000e+00> : vector<1x256xf32>
      %89 = tpu.matmul %87, %88, %cst_72 {dimension_numbers = #tpu.dot_dimension_numbers<[1], [0], [0], [1], [0, 0, 1, 1], [], []>} : vector<1x512xbf16>, vector<512x256xbf16>, vector<1x256xf32> -> vector<1x256xf32>
      %c0_73 = arith.constant 0 : index
      %c0_74 = arith.constant 0 : index
      %90 = vector.load %arg12[%c0_73, %c0_74] : memref<1x256xf32, #tpu.memory_space<vmem>>, vector<1x256xf32>
      %91 = arith.addf %89, %90 : vector<1x256xf32>
      %cst_75 = arith.constant 0.000000e+00 : f32
      %92 = vector.broadcast %cst_75 : f32 to vector<1x256xf32>
      %93 = arith.maximumf %91, %92 : vector<1x256xf32>
      %94 = arith.truncf %93 : vector<1x256xf32> to vector<1x256xbf16>
      %c0_76 = arith.constant 0 : index
      %c0_77 = arith.constant 0 : index
      %95 = vector.load %arg13[%c0_76, %c0_77] : memref<256x400xbf16, #tpu.memory_space<vmem>>, vector<256x400xbf16>
      %cst_78 = arith.constant dense<0.000000e+00> : vector<1x400xf32>
      %96 = tpu.matmul %94, %95, %cst_78 {dimension_numbers = #tpu.dot_dimension_numbers<[1], [0], [0], [1], [0, 0, 1, 1], [], []>} : vector<1x256xbf16>, vector<256x400xbf16>, vector<1x400xf32> -> vector<1x400xf32>
      %c0_79 = arith.constant 0 : index
      %c0_80 = arith.constant 0 : index
      %97 = vector.load %arg14[%c0_79, %c0_80] : memref<1x400xf32, #tpu.memory_space<vmem>>, vector<1x400xf32>
      %98 = arith.addf %96, %97 : vector<1x400xf32>
      %c0_81 = arith.constant 0 : index
      %c0_82 = arith.constant 0 : index
      %c0_83 = arith.constant 0 : index
      %99 = vector.load %arg17[%c0_81, %c0_82, %c0_83] : memref<1x1x400xf32, #tpu.memory_space<vmem>>, vector<1x1x400xf32>
      %100 = vector.shape_cast %99 : vector<1x1x400xf32> to vector<1x400xf32>
      %101 = vector.shape_cast %98 : vector<1x400xf32> to vector<1x1x400xf32>
      tpu.vector_store %arg17[%c0_81, %c0_82, %c0_83], %101 {strides = array<i32>} : memref<1x1x400xf32, #tpu.memory_space<vmem>>, vector<1x1x400xf32>,
      %c0_84 = arith.constant 0 : index
      %c0_85 = arith.constant 0 : index
      %102 = vector.load %arg20[%c0_84, %c0_85] : memref<1x256xf32, #tpu.memory_space<vmem>>, vector<1x256xf32>
      %103 = arith.truncf %102 : vector<1x256xf32> to vector<1x256xbf16>
      %c0_86 = arith.constant 0 : index
      %c0_87 = arith.constant 0 : index
      %104 = vector.load %arg15[%c0_86, %c0_87] : memref<256x1xbf16, #tpu.memory_space<vmem>>, vector<256x1xbf16>
      %cst_88 = arith.constant dense<0.000000e+00> : vector<1x1xf32>
      %105 = tpu.matmul %103, %104, %cst_88 {dimension_numbers = #tpu.dot_dimension_numbers<[1], [0], [0], [1], [0, 0, 1, 1], [], []>} : vector<1x256xbf16>, vector<256x1xbf16>, vector<1x1xf32> -> vector<1x1xf32>
      %c0_89 = arith.constant 0 : index
      %c0_90 = arith.constant 0 : index
      %106 = vector.load %arg16[%c0_89, %c0_90] : memref<1x1xf32, #tpu.memory_space<vmem>>, vector<1x1xf32>
      %107 = arith.addf %105, %106 : vector<1x1xf32>
      %c0_91 = arith.constant 0 : index
      %c0_92 = arith.constant 0 : index
      %c0_93 = arith.constant 0 : index
      %108 = vector.load %arg18[%c0_91, %c0_92, %c0_93] : memref<1x1x1xf32, #tpu.memory_space<vmem>>, vector<1x1x1xf32>
      %109 = vector.shape_cast %108 : vector<1x1x1xf32> to vector<1x1xf32>
      %110 = vector.shape_cast %107 : vector<1x1xf32> to vector<1x1x1xf32>
      tpu.vector_store %arg18[%c0_91, %c0_92, %c0_93], %110 {strides = array<i32>} : memref<1x1x1xf32, #tpu.memory_space<vmem>>, vector<1x1x1xf32>,
    } else {
    }
    return
  }
  func.func @transform_0(%arg0: i32, %arg1: i32) -> (i32, i32, i32) {
    %c0_i32 = arith.constant 0 : i32
    %c0_i32_0 = arith.constant 0 : i32
    return %arg0, %arg1, %c0_i32 : i32, i32, i32
  }
  func.func @transform_1(%arg0: i32, %arg1: i32) -> (i32, i32) {
    %c0_i32 = arith.constant 0 : i32
    %c0_i32_0 = arith.constant 0 : i32
    %c0_i32_1 = arith.constant 0 : i32
    return %c0_i32, %c0_i32_0 : i32, i32
  }
  func.func @transform_2(%arg0: i32, %arg1: i32) -> (i32, i32) {
    %c0_i32 = arith.constant 0 : i32
    %c0_i32_0 = arith.constant 0 : i32
    %c0_i32_1 = arith.constant 0 : i32
    return %c0_i32, %c0_i32_0 : i32, i32
  }
  func.func @transform_3(%arg0: i32, %arg1: i32) -> (i32, i32) {
    %c0_i32 = arith.constant 0 : i32
    %c0_i32_0 = arith.constant 0 : i32
    %c0_i32_1 = arith.constant 0 : i32
    return %c0_i32, %c0_i32_0 : i32, i32
  }
  func.func @transform_4(%arg0: i32, %arg1: i32) -> (i32, i32) {
    %c0_i32 = arith.constant 0 : i32
    %c0_i32_0 = arith.constant 0 : i32
    %c0_i32_1 = arith.constant 0 : i32
    return %c0_i32, %c0_i32_0 : i32, i32
  }
  func.func @transform_5(%arg0: i32, %arg1: i32) -> (i32, i32) {
    %c0_i32 = arith.constant 0 : i32
    %c0_i32_0 = arith.constant 0 : i32
    %c0_i32_1 = arith.constant 0 : i32
    return %c0_i32, %c0_i32_0 : i32, i32
  }
  func.func @transform_6(%arg0: i32, %arg1: i32) -> (i32, i32) {
    %c0_i32 = arith.constant 0 : i32
    %c0_i32_0 = arith.constant 0 : i32
    %c0_i32_1 = arith.constant 0 : i32
    return %c0_i32, %c0_i32_0 : i32, i32
  }
  func.func @transform_7(%arg0: i32, %arg1: i32) -> (i32, i32) {
    %c0_i32 = arith.constant 0 : i32
    %c0_i32_0 = arith.constant 0 : i32
    %c0_i32_1 = arith.constant 0 : i32
    return %c0_i32, %c0_i32_0 : i32, i32
  }
  func.func @transform_8(%arg0: i32, %arg1: i32) -> (i32, i32) {
    %c0_i32 = arith.constant 0 : i32
    %c0_i32_0 = arith.constant 0 : i32
    %c0_i32_1 = arith.constant 0 : i32
    return %c0_i32, %c0_i32_0 : i32, i32
  }
  func.func @transform_9(%arg0: i32, %arg1: i32) -> (i32, i32) {
    %c0_i32 = arith.constant 0 : i32
    %c0_i32_0 = arith.constant 0 : i32
    %c0_i32_1 = arith.constant 0 : i32
    return %c0_i32, %c0_i32_0 : i32, i32
  }
  func.func @transform_10(%arg0: i32, %arg1: i32) -> (i32, i32) {
    %c0_i32 = arith.constant 0 : i32
    %c0_i32_0 = arith.constant 0 : i32
    %c0_i32_1 = arith.constant 0 : i32
    return %c0_i32, %c0_i32_0 : i32, i32
  }
  func.func @transform_11(%arg0: i32, %arg1: i32) -> (i32, i32) {
    %c0_i32 = arith.constant 0 : i32
    %c0_i32_0 = arith.constant 0 : i32
    %c0_i32_1 = arith.constant 0 : i32
    return %c0_i32, %c0_i32_0 : i32, i32
  }
  func.func @transform_12(%arg0: i32, %arg1: i32) -> (i32, i32) {
    %c0_i32 = arith.constant 0 : i32
    %c0_i32_0 = arith.constant 0 : i32
    %c0_i32_1 = arith.constant 0 : i32
    return %c0_i32, %c0_i32_0 : i32, i32
  }
  func.func @transform_13(%arg0: i32, %arg1: i32) -> (i32, i32) {
    %c0_i32 = arith.constant 0 : i32
    %c0_i32_0 = arith.constant 0 : i32
    %c0_i32_1 = arith.constant 0 : i32
    return %c0_i32, %c0_i32_0 : i32, i32
  }
  func.func @transform_14(%arg0: i32, %arg1: i32) -> (i32, i32) {
    %c0_i32 = arith.constant 0 : i32
    %c0_i32_0 = arith.constant 0 : i32
    %c0_i32_1 = arith.constant 0 : i32
    return %c0_i32, %c0_i32_0 : i32, i32
  }
  func.func @transform_15(%arg0: i32, %arg1: i32) -> (i32, i32, i32) {
    %c0_i32 = arith.constant 0 : i32
    %c0_i32_0 = arith.constant 0 : i32
    %c0_i32_1 = arith.constant 0 : i32
    return %arg0, %c0_i32, %c0_i32_0 : i32, i32, i32
  }
  func.func @transform_16(%arg0: i32, %arg1: i32) -> (i32, i32, i32) {
    %c0_i32 = arith.constant 0 : i32
    %c0_i32_0 = arith.constant 0 : i32
    %c0_i32_1 = arith.constant 0 : i32
    return %arg0, %c0_i32, %c0_i32_0 : i32, i32, i32
  }
}

</mosaic_0001>

<bundles_post_ra>
// kernel: tpu_custom_call.1
= control target key start
LH: loop header
LB: loop body
LE: loop exit
PB: predicated region body
PF: predicated region fallthrough
CT: control target
= control target key end

     0   :  { %s10144_s0 = inlined_call_operand.vmem [shape: bf16[2,80,20], index: 0, kind: input, shape index: {}]   ;;  %s10145_s1 = inlined_call_operand.vmem [shape: bf16[20,128], index: 1, kind: input, shape index: {}]   ;;  %s10146_s2 = inlined_call_operand.vmem [shape: f32[1,128], index: 2, kind: input, shape index: {}]   ;;  %s10147_s3 = inlined_call_operand.hbm [shape: bf16[128,384], index: 3, kind: input, shape index: {}]   ;;  %s10148_s4 = inlined_call_operand.vmem [shape: f32[1,384], index: 4, kind: input, shape index: {}]   ;;  %s10149_s5 = inlined_call_operand.vmem [shape: bf16[128,1024], index: 5, kind: input, shape index: {}]   ;;  %s10150_s6 = inlined_call_operand.vmem [shape: f32[1,1024], index: 6, kind: input, shape index: {}]   ;;  %s10151_s7 = inlined_call_operand.hbm [shape: bf16[1024,512], index: 7, kind: input, shape index: {}]   ;;  %s10152_s8 = inlined_call_operand.vmem [shape: f32[1,512], index: 8, kind: input, shape index: {}]   ;;  %s10153_s9 = inlined_call_operand.vmem [shape: bf16[512,256], index: 9, kind: input, shape index: {}]   ;;  %s10154_s10 = inlined_call_operand.vmem [shape: f32[1,256], index: 10, kind: input, shape index: {}]   ;;  %s10155_s11 = inlined_call_operand.vmem [shape: bf16[256,400], index: 11, kind: input, shape index: {}]   ;;  %s10156_s12 = inlined_call_operand.vmem [shape: f32[1,400], index: 12, kind: input, shape index: {}]   ;;  %s10157_s13 = inlined_call_operand.vmem [shape: bf16[256,1], index: 13, kind: input, shape index: {}]   ;;  %s10158_s14 = inlined_call_operand.<no memory space> [shape: f32[1,1], index: 14, kind: input, shape index: {}]   ;;  %s10159_s15 = inlined_call_operand.hbm [shape: f32[2,1,400], index: 15, kind: output, shape index: {0}]   ;;  %s10160_s16 = inlined_call_operand.vmem [shape: f32[2,1,1], index: 16, kind: output, shape index: {1}]  }
   0x1   :  { %10169 = sst [smem:[#allocation21_spill]] %s10144_s0  ;;  %v22_v0 = vstv %s10158_s14 }
   0x2   :  { %10170 = sst [smem:[#allocation22_spill]] %s10147_s3  ;;  %23 = vst [vmem:[#allocation4] sm:$0x1] %v22_v0 }
   0x3   :  { %24 = vsyncpa [#allocation6], 0 }
   0x4   :  { %25 = vsyncpa [#allocation9], 0 }
   0x5   :  { %26 = vsyncpa [#allocation7], 0 }
   0x6   :  { %28 = vsyncpa [#allocation7 + $0x1], 0  ;;  %s8112_s23 = smov 0   ;;  %s8114_s24 = smov 0  }
   0x7   :  { %s8116_s25 = smov 0   ;;  %s8118_s26 = smov 0  }
   0x8   :  { %s8120_s27 = smov 0   ;;  %s8122_s28 = smov 0  }
   0x9 LB: > { %10171 = sst [smem:[#allocation14_spill]] %s7995_s23  ;;  %s5295_s14 = sadd.s32 4294967295, %s8015_s28   ;;  %s8015_s28 = sphi %s8122_s28, %s34_s28   ;;  %s8011_s27 = sphi %s8120_s27, %s10197_s27   ;;  %s8007_s26 = sphi %s8118_s26, %s10200_s26   ;;  %s8003_s25 = sphi %s8116_s25, %s10195_s25   ;;  %s7999_s24 = sphi %s8114_s24, %s10199_s24   ;;  %s7995_s23 = sphi %s8112_s23, %s10198_s23  }
   0xa   : > { %10172 = sst [smem:[#allocation15_spill]] %s8003_s25  ;;  %s5296_s29 = sadd.s32 4294967294, %s8015_s28  }
   0xb   : > { %10173 = sst [smem:[#allocation16_spill]] %s8011_s27  ;;  %s46_s30 = sadd.s32 1, %s8011_s27 }
   0xc   : > { %10174 = sst [smem:[#allocation17_spill]] %s8015_s28  ;;  %s375_s0 = sadd.s32 1, %s8003_s25 }
   0xd   : > { %p48_p0 = scmp.ge.s32.totalorder %s46_s30, 2  ;;  %p385_p1 = scmp.ne.s32.totalorder %s8003_s25, %s7999_s24 }
   0xe   : > { %p386_p2 = scmp.eq.s32.totalorder %s5295_s14, 1  ;;  %p391_p3 = scmp.ne.s32.totalorder %s7999_s24, %s7995_s23 }
   0xf   : > { %s10202_s30 = smov (%p48_p0, %s46_s30), 0  ;;  %p392_p5 = scmp.eq.s32.totalorder %s5296_s29, 1 }
  0x10   : > { %10175 = sst [smem:[#allocation18_spill]] %s10202_s30  ;;  %p8152_p4 = por %p386_p2, %p385_p1 }
  0x11   : > { %s372_s18 = ssub.s32 %s8011_s27, %s10202_s30  ;;  %p5297_p6 = scmp.ge.s32.totalorder %s8015_s28, 1 }
  0x12   : > { %p373_p7 = scmp.eq.s32.totalorder %s372_s18, 0  ;;  %p8159_p8 = por %p392_p5, %p391_p3 }
  0x13   : > { %p425_p9 = scmp.lt.s32.totalorder %s8015_s28, 3  ;;  %p8171_p11 = scmp.eq.s32.totalorder %s5295_s14, 0 }
  0x14   : > { %s10177_s19 = scalar_select %p8159_p8, 1, 0 }
  0x15   : > { %s8165_s20 = scalar_select %p373_p7, %s8003_s25, %s375_s0  }
  0x16   : > { %10178 = sst [smem:[#allocation19_spill]] %s10177_s19  ;;  %p8167_p10 = pnand %p5297_p6, %p425_p9 }
  0x17   : > { %10179 = sst [smem:[#allocation20_spill]] %s8165_s20  ;;  %s8017_s27 = smov [#allocation5]  }
  0x18   : > { %s10182_s3 = sld [smem:[#allocation22_spill]]  ;;  %p7796_p12 = pneg %p8167_p10 }
  0x19   : > { %s444_s0 = sshll.u32 %s8017_s27, 4  ;;  %s465_s14 = sshll.u32 %s10151_s7, 4  ;;  %s445_s0 = int_to_ptr.vmem [resolvable:$true] %s444_s0  ;;  %s466_s14 = int_to_ptr.hbm [resolvable:$true] %s465_s14 }
  0x1a   : > { %p7797_p13 = pnand %p8171_p11, %p7796_p12  ;;  %s8018_s19 = smov 192  }
  0x1b   : > { %s8019_s23 = smov 12   ;;  %s8020_s28 = smov [#allocation8]  }
  0x1c   : > { %s467_s30 = sshll.u32 %s8020_s28, 4  ;;  %s8021_s29 = smov 256   ;;  %s468_s30 = int_to_ptr.vmem [resolvable:$true] %s467_s30 }
  0x1d   : > { %517 = sbr.rel (%p8167_p10) target bundleno = 1308 (0x51c), region = 80 }
  0x1e   : > { %s442_s18 = sshll.u32 %s10182_s3, 4  ;;  %s8022_s3 = smov 16   ;;  %s443_s18 = int_to_ptr.hbm [resolvable:$true] %s442_s18 }
  0x1f   : > { %7799 = dma.hbm_to_vmem [thread:$0]  (!%p7797_p13), %s443_s18, 3072, %s445_s0, [#allocation6], %s8018_s19, %s8018_s19, %s8019_s23  }
  0x20   : > { %7802 = dma.hbm_to_vmem [thread:$0]  (!%p7797_p13), %s466_s14, 32768, %s468_s30, [#allocation9], %s8021_s29, %s8021_s29, %s8022_s3  }
  0x22   : > { %7982 = dma.done.wait (%p8171_p11), [#allocation6], 3072  }
  0x23   : > { %7984 = vsyncadd (%p8171_p11), [#allocation6], 4294964224 }
  0x24   : > { %7986 = dma.done.wait (%p8171_p11), [#allocation9], 32768  }
  0x25   : > { %7988 = vsyncadd (%p8171_p11), [#allocation9], 4294934528  ;;  %p581_p0 = scmp.lt.s32.totalorder %s8007_s26, 1  ;;  %v616_v1 = vld [vmem:[%s10145_s1 + $0x8] sm:$0x3]  ;;  %vm671_vm0 = vcmask 1041408  }
  0x26   : > { %v651_v2 = vunpack.c.l.b16 %v616_v1  ;;  %v7296_v5 = vld [vmem:[%s10145_s1] sm:$0xff]  ;;  %s10183_s22 = sld [smem:[#allocation21_spill]]  ;;  %vm655_vm1 = vcmask 162816   ;;  %v5421_v9 = vld [vmem:[#allocation5 + $0xa8] sm:$0xf]  ;;  %vm1063_vm3 = vcmask 1040384  }
  0x27   : > { %s8197_s23 = scalar_select %p581_p0, %s8007_s26, 1  ;;  %v7319_v10 = vld [vmem:[#allocation5 + $0xb0] sm:$0xf0]  ;;  %v7318_v11 = vld [vmem:[#allocation5 + $0xac] sm:$0xf]  ;;  %vm4987_vm4 = vcmask 1042434  }
  0x28   : > { %v653_v3 = vpack.c.b16 %v651_v2, %v651_v2  ;;  %v5422_v12 = vor.u32 %v7319_v10, %v5421_v9  ;;  %v5423_v13 = vld [vmem:[#allocation5 + $0xb4] sm:$0xf0]  ;;  %v5429_v14 = vld [vmem:[#allocation5 + $0xb0] sm:$0xf]  ;;  %v7320_v15 = vld [vmem:[#allocation5 + $0xb8] sm:$0xf0] }
  0x29   : > { %s7785_s27 = smul.u32 40, %s8197_s23  ;;  %v5426_v16 = vor.u32 %v7318_v11, %v5423_v13  ;;  %v5430_v17 = vor.u32 %v7320_v15, %v5429_v14  ;;  %v5409_v18 = vld [vmem:[#allocation5 + $0x90] sm:$0xf]  ;;  %v7316_v19 = vld [vmem:[#allocation5 + $0x98] sm:$0xf0]  ;;  %s572_s14 = sand.u32 1, %s7999_s24  }
  0x2a   : > { %v673_v4 = vsel %vm671_vm0, %v653_v3, 0  ;;  %v7315_v20 = vld [vmem:[#allocation5 + $0x94] sm:$0xf]  ;;  %892 = vmatpush.bf16.msra.mxu1 %v5422_v12  ;;  %v5410_v21 = vor.u32 %v7316_v19, %v5409_v18  ;;  %v5411_v22 = vld [vmem:[#allocation5 + $0x9c] sm:$0xf0]  ;;  %s7288_s30 = sshll.u32 %s8007_s26, 2 }
  0x2b   : > { %681 = vmatpush.bf16.msra.mxu0 %v673_v4  ;;  %v5417_v23 = vld [vmem:[#allocation5 + $0x98] sm:$0xf]  ;;  %v7317_v24 = vld [vmem:[#allocation5 + $0xa0] sm:$0xf0]  ;;  %926 = vmatpush.bf16.msra.mxu2 %v5426_v16  ;;  %v5414_v25 = vor.u32 %v7315_v20, %v5411_v22  ;;  %v7312_v29 = vld [vmem:[#allocation5 + $0x7c] sm:$0xf] }
  0x2c   : > { %s8210_s18 = scalar_lea.vmem %s10183_s22, %s7785_s27  ;;  %960 = vmatpush.bf16.msra.mxu3 %v5430_v17  ;;  %v5418_v26 = vor.u32 %v7317_v24, %v5417_v23  ;;  %v5397_v27 = vld [vmem:[#allocation5 + $0x78] sm:$0xf]  ;;  %v7313_v28 = vld [vmem:[#allocation5 + $0x80] sm:$0xf0]  ;;  %v5399_v30 = vld [vmem:[#allocation5 + $0x84] sm:$0xf0]  ;;  %s5173_s27 = scalar_lea.hbm %s10159_s15, %s7288_s30 }
  0x2d   : > { %v7291_v6 = vld [vmem:[%s8210_s18] sm:$0xff]  ;;  %v7292_v7 = vld [vmem:[%s8210_s18 + $0x8] sm:$0xff]  ;;  %v7293_v8 = vld [vmem:[%s8210_s18 + $0x10] sm:$0xff]  ;;  %v5398_v33 = vor.u32 %v7313_v28, %v5397_v27  ;;  %v5402_v34 = vor.u32 %v7312_v29, %v5399_v30  ;;  %s5304_s29 = sshll.u32 %s572_s14, 2  ;;  %s5177_s19 = sshll.u32 %s5173_s27, 4  ;;  %s5178_s19 = int_to_ptr.hbm [resolvable:$true] %s5177_s19 }
  0x2e   : > { %v5405_v31 = vld [vmem:[#allocation5 + $0x80] sm:$0xf]  ;;  %v7314_v32 = vld [vmem:[#allocation5 + $0x88] sm:$0xf0]  ;;  %893 = vmatpush.bf16.msra.mxu1 %v5410_v21  ;;  %v7309_v38 = vld [vmem:[#allocation5 + $0x64] sm:$0xf] }
  0x2f   : > { %682 = vmatpush.bf16.msra.mxu0 %v7296_v5  ;;  %927 = vmatpush.bf16.msra.mxu2 %v5414_v25  ;;  %v5406_v35 = vor.u32 %v7314_v32, %v5405_v31  ;;  %v5385_v36 = vld [vmem:[#allocation5 + $0x60] sm:$0xf]  ;;  %v7310_v37 = vld [vmem:[#allocation5 + $0x68] sm:$0xf0]  ;;  %v5387_v39 = vld [vmem:[#allocation5 + $0x6c] sm:$0xf0] }
  0x30   : > { %961 = vmatpush.bf16.msra.mxu3 %v5418_v26  ;;  %v5393_v40 = vld [vmem:[#allocation5 + $0x68] sm:$0xf]  ;;  %v7311_v41 = vld [vmem:[#allocation5 + $0x70] sm:$0xf0]  ;;  %v5386_v42 = vor.u32 %v7310_v37, %v5385_v36  ;;  %v5390_v44 = vor.u32 %v7309_v38, %v5387_v39  ;;  %v7306_v49 = vld [vmem:[#allocation5 + $0x4c] sm:$0xf] }
  0x31   : > { %v7294_v43 = vld [vmem:[%s8210_s18 + $0x18] sm:$0xff]  ;;  %v5394_v45 = vor.u32 %v7311_v41, %v5393_v40  ;;  %v7295_v46 = vld [vmem:[%s8210_s18 + $0x20] sm:$0xff]  ;;  %v5373_v47 = vld [vmem:[#allocation5 + $0x48] sm:$0xf]  ;;  %s574_s28 = scalar_lea.vmem [#allocation10], %s5304_s29  ;;  %s5160_s20 = scalar_lea.sflag [#allocation7], %s572_s14 }
  0x32   : > { %5330 = vmatmul.msk.bf16.vlgmr.msra.gmra.mxu0 %vm655_vm1, %v7291_v6  ;;  %894 = vmatpush.bf16.msra.mxu1 %v5398_v33  ;;  %v7307_v48 = vld [vmem:[#allocation5 + $0x50] sm:$0xf0]  ;;  %v5375_v51 = vld [vmem:[#allocation5 + $0x54] sm:$0xf0]  ;;  %v5381_v52 = vld [vmem:[#allocation5 + $0x50] sm:$0xf] }
  0x33   : > { %928 = vmatpush.bf16.msra.mxu2 %v5402_v34  ;;  %v5374_v50 = vor.u32 %v7307_v48, %v5373_v47  ;;  %v7308_v53 = vld [vmem:[#allocation5 + $0x58] sm:$0xf0]  ;;  %v5378_v54 = vor.u32 %v7306_v49, %v5375_v51  ;;  %v5361_v56 = vld [vmem:[#allocation5 + $0x30] sm:$0xf]  ;;  %v7303_v58 = vld [vmem:[#allocation5 + $0x34] sm:$0xf] }
  0x34   : > { %962 = vmatpush.bf16.msra.mxu3 %v5406_v35  ;;  %v5382_v55 = vor.u32 %v7308_v53, %v5381_v52  ;;  %v7304_v57 = vld [vmem:[#allocation5 + $0x38] sm:$0xf0]  ;;  %v5363_v60 = vld [vmem:[#allocation5 + $0x3c] sm:$0xf0]  ;;  %v5369_v61 = vld [vmem:[#allocation5 + $0x38] sm:$0xf] }
  0x35   : > { %v5362_v59 = vor.u32 %v7304_v57, %v5361_v56  ;;  %v7305_v62 = vld [vmem:[#allocation5 + $0x40] sm:$0xf0]  ;;  %v5366_v63 = vor.u32 %v7303_v58, %v5363_v60  ;;  %v5349_v1 = vld [vmem:[#allocation5 + $0x18] sm:$0xf]  ;;  %v7300_v3 = vld [vmem:[#allocation5 + $0x1c] sm:$0xf] }
  0x36   : > { %895 = vmatpush.bf16.msra.mxu1 %v5386_v42  ;;  %v5370_v0 = vor.u32 %v7305_v62, %v5369_v61  ;;  %v7301_v2 = vld [vmem:[#allocation5 + $0x20] sm:$0xf0]  ;;  %v5351_v5 = vld [vmem:[#allocation5 + $0x24] sm:$0xf0]  ;;  %v5357_v6 = vld [vmem:[#allocation5 + $0x20] sm:$0xf] }
  0x37   : > { %929 = vmatpush.bf16.msra.mxu2 %v5390_v44  ;;  %v5350_v4 = vor.u32 %v7301_v2, %v5349_v1  ;;  %v5337_v10 = vld [vmem:[#allocation5] sm:$0xf]  ;;  %v7298_v11 = vld [vmem:[#allocation5 + $0x8] sm:$0xf0]  ;;  %v7297_v12 = vld [vmem:[#allocation5 + $0x4] sm:$0xf] }
  0x38   : > { %963 = vmatpush.bf16.msra.mxu3 %v5394_v45  ;;  %v5338_v13 = vor.u32 %v7298_v11, %v5337_v10  ;;  %v5339_v14 = vld [vmem:[#allocation5 + $0xc] sm:$0xf0]  ;;  %v5345_v15 = vld [vmem:[#allocation5 + $0x8] sm:$0xf]  ;;  %v7299_v16 = vld [vmem:[#allocation5 + $0x10] sm:$0xf0] }
  0x39   : > { %v5342_v17 = vor.u32 %v7297_v12, %v5339_v14  ;;  %v5346_v18 = vor.u32 %v7299_v16, %v5345_v15  ;;  %v8225_v20 = vld [vmem:[%s10146_s2] ss:$0 sm:$0xff]  ;;  %v7335_v44 = vld [vmem:[%s10149_s5 + $0x1c4] sm:$0xf]  ;;  %v5553_v47 = vld [vmem:[%s10149_s5 + $0x1c8] sm:$0xf] }
  0x3a   : > { %896 = vmatpush.bf16.msra.mxu1 %v5374_v50  ;;  %v5489_v42 = vld [vmem:[%s10149_s5 + $0x1c0] sm:$0xf]  ;;  %v7352_v48 = vld [vmem:[%s10149_s5 + $0x1e4] sm:$0xf0]  ;;  %v7351_v51 = vld [vmem:[%s10149_s5 + $0x1cc] sm:$0xf] }
  0x3b   : > { %930 = vmatpush.bf16.msra.mxu2 %v5378_v54  ;;  %v5554_v50 = vor.u32 %v7352_v48, %v5553_v47  ;;  %v5555_v52 = vld [vmem:[%s10149_s5 + $0x1e8] sm:$0xf0]  ;;  %v5481_v53 = vld [vmem:[%s10149_s5 + $0x180] sm:$0xf]  ;;  %v7333_v56 = vld [vmem:[%s10149_s5 + $0x184] sm:$0xf] }
  0x3c   : > { %964 = vmatpush.bf16.msra.mxu3 %v5382_v55  ;;  %v5558_v54 = vor.u32 %v7351_v51, %v5555_v52  ;;  %v7334_v55 = vld [vmem:[%s10149_s5 + $0x19c] sm:$0xf0]  ;;  %v5483_v58 = vld [vmem:[%s10149_s5 + $0x1a0] sm:$0xf0]  ;;  %v7350_v60 = vld [vmem:[%s10149_s5 + $0x1a4] sm:$0xf0] }
  0x3d   : > { %v5482_v57 = vor.u32 %v7334_v55, %v5481_v53  ;;  %v5486_v61 = vor.u32 %v7333_v56, %v5483_v58  ;;  %v5473_v1 = vld [vmem:[%s10149_s5 + $0x140] sm:$0xf]  ;;  %v7347_v10 = vld [vmem:[%s10149_s5 + $0x14c] sm:$0xf]  ;;  %v7325_v53 = vld [vmem:[%s10149_s5 + $0x84] sm:$0xf] }
  0x3e   : > { %897 = vmatpush.bf16.msra.mxu1 %v5362_v59  ;;  %v5545_v59 = vld [vmem:[%s10149_s5 + $0x188] sm:$0xf]  ;;  %v5539_v14 = vld [vmem:[%s10149_s5 + $0x168] sm:$0xf0]  ;;  %v5449_v51 = vld [vmem:[%s10149_s5 + $0x80] sm:$0xf] }
  0x3f   : > { %931 = vmatpush.bf16.msra.mxu2 %v5366_v63  ;;  %v5546_v62 = vor.u32 %v7350_v60, %v5545_v59  ;;  %v7349_v63 = vld [vmem:[%s10149_s5 + $0x18c] sm:$0xf]  ;;  %v5542_v16 = vor.u32 %v7347_v10, %v5539_v14  ;;  %v7326_v52 = vld [vmem:[%s10149_s5 + $0x9c] sm:$0xf0]  ;;  %v5451_v55 = vld [vmem:[%s10149_s5 + $0xa0] sm:$0xf0] }
  0x40   : > { %965 = vmatpush.bf16.msra.mxu3 %v5370_v0  ;;  %v5547_v0 = vld [vmem:[%s10149_s5 + $0x1a8] sm:$0xf0]  ;;  %v5513_v56 = vld [vmem:[%s10149_s5 + $0x88] sm:$0xf]  ;;  %v5454_v58 = vor.u32 %v7325_v53, %v5451_v55  ;;  %s10100_s26 = sshll.u32 %s574_s28, 4  ;;  %s7943_s21 = sshra.s32 %s5178_s19, 4  ;;  %s5176_s26 = int_to_ptr.vmem [resolvable:$true] %s10100_s26  ;;  %s7944_s21 = int_to_ptr.hbm [resolvable:$true] %s7943_s21 }
  0x41   : > { %v5550_v2 = vor.u32 %v7349_v63, %v5547_v0  ;;  %v7343_v48 = vld [vmem:[%s10149_s5 + $0xcc] sm:$0xf]  ;;  %v5441_v63 = vld [vmem:[%s10149_s5 + $0x40] sm:$0xf]  ;;  %s7945_s22 = scalar_lea.hbm %s7944_s21, 4  ;;  %s7949_s30 = scalar_lea.hbm %s10159_s15, 8 }
  0x42   : > { %5331 = vmatmul.msk.bf16.gmra.mxu0 %vm655_vm1, %v7292_v7  ;;  %v7302_v7 = vld [vmem:[#allocation5 + $0x28] sm:$0xf0]  ;;  %898 = vmatpush.bf16.msra.mxu1 %v5350_v4  ;;  %v7331_v4 = vld [vmem:[%s10149_s5 + $0x144] sm:$0xf]  ;;  %v7341_v60 = vld [vmem:[%s10149_s5 + $0x8c] sm:$0xf]  ;;  %p7946_p1 = scmp.ne.s32.totalorder %s7944_s21, %s7945_s22  ;;  %p7950_p5 = scmp.lt.s32.totalorder %s7944_s21, %s10159_s15 }
  0x43   : > { %v5358_v9 = vor.u32 %v7302_v7, %v5357_v6  ;;  %v7324_v0 = vld [vmem:[%s10149_s5 + $0x5c] sm:$0xf0]  ;;  %p7951_p6 = scmp.lt.s32.totalorder %s7949_s30, %s7945_s22 }
  0x44   : > { %p7947_p2 = pnand %p7946_p1, %p8152_p4 }
  0x45   : > { %966 = vmatpush.bf16.msra.mxu3 %v5358_v9  ;;  %v7348_v9 = vld [vmem:[%s10149_s5 + $0x164] sm:$0xf0]  ;;  %p7952_p7 = por %p7951_p6, %p7950_p5 }
  0x46   : > { %899 = vmatpush.bf16.msra.mxu1 %v5338_v13  ;;  %p7948_p3 = pneg %p7947_p2 }
  0x48   : > { %p7953_p9 = pnand %p7952_p7, %p7948_p3 }
  0x49   : > { %967 = vmatpush.bf16.msra.mxu3 %v5346_v18  ;;  %v7330_v18 = vld [vmem:[%s10149_s5 + $0x11c] sm:$0xf0] }
  0x4d   : > { %1436 = vmatpush.bf16.msrb.mxu3 %v5558_v54  ;;  %v5450_v54 = vor.u32 %v7326_v52, %v5449_v51 }
  0x51   : > { %1437 = vmatpush.bf16.msrb.mxu3 %v5550_v2  ;;  %v7323_v2 = vld [vmem:[%s10149_s5 + $0x44] sm:$0xf] }
  0x52   : > { %5332 = vmatmul.msk.bf16.gmra.mxu0 %vm655_vm1, %v7293_v8  ;;  %v5354_v8 = vor.u32 %v7300_v3, %v5351_v5  ;;  %v7332_v3 = vld [vmem:[%s10149_s5 + $0x15c] sm:$0xf0]  ;;  %v5475_v5 = vld [vmem:[%s10149_s5 + $0x160] sm:$0xf0] }
  0x53   : > { %v5474_v7 = vor.u32 %v7332_v3, %v5473_v1  ;;  %v5478_v12 = vor.u32 %v7331_v4, %v5475_v5  ;;  %v5442_v1 = vor.u32 %v7324_v0, %v5441_v63  ;;  %v5443_v3 = vld [vmem:[%s10149_s5 + $0x60] sm:$0xf0]  ;;  %v5505_v4 = vld [vmem:[%s10149_s5 + $0x48] sm:$0xf]  ;;  %v5619_v63 = vld [vmem:[%s10149_s5 + $0x1f0] sm:$0xf0] }
  0x54   : > { %932 = vmatpush.bf16.msra.mxu2 %v5354_v8  ;;  %v5537_v8 = vld [vmem:[%s10149_s5 + $0x148] sm:$0xf]  ;;  %v5446_v5 = vor.u32 %v7323_v2, %v5443_v3  ;;  %v5681_v0 = vld [vmem:[%s10149_s5 + $0x1d8] sm:$0xf] }
  0x55   : > { %v5538_v13 = vor.u32 %v7348_v9, %v5537_v8  ;;  %1438 = vmatpush.bf16.msrb.mxu3 %v5542_v16  ;;  %v5507_v8 = vld [vmem:[%s10149_s5 + $0x68] sm:$0xf0]  ;;  %v5497_v16 = vld [vmem:[%s10149_s5 + $0x8] sm:$0xf] }
  0x58   : > { %933 = vmatpush.bf16.msra.mxu2 %v5342_v17  ;;  %v5465_v17 = vld [vmem:[%s10149_s5 + $0x100] sm:$0xf] }
  0x5c   : > { %1402 = vmatpush.bf16.msrb.mxu2 %v5554_v50 }
  0x60   : > { %1403 = vmatpush.bf16.msrb.mxu2 %v5546_v62 }
  0x62   : > { %5333 = vmatmul.msk.bf16.gmra.mxu0 %vm655_vm1, %v7294_v43  ;;  %v7336_v43 = vld [vmem:[%s10149_s5 + $0x1dc] sm:$0xf0] }
  0x63   : > { %v5490_v45 = vor.u32 %v7336_v43, %v5489_v42  ;;  %v7327_v42 = vld [vmem:[%s10149_s5 + $0xc4] sm:$0xf] }
  0x64   : > { %1404 = vmatpush.bf16.msrb.mxu2 %v5538_v13  ;;  %v7321_v13 = vld [vmem:[%s10149_s5 + $0x4] sm:$0xf] }
  0x65   : > { %1174 = vmatpush.bf16.msrb.mxu0 %v5490_v45  ;;  %v7344_v45 = vld [vmem:[%s10149_s5 + $0xe4] sm:$0xf0] }
  0x69   : > { %1175 = vmatpush.bf16.msrb.mxu0 %v5482_v57  ;;  %v7342_v57 = vld [vmem:[%s10149_s5 + $0xa4] sm:$0xf0] }
  0x6a   : > { %v5514_v59 = vor.u32 %v7342_v57, %v5513_v56 }
  0x6d   : > { %1176 = vmatpush.bf16.msrb.mxu0 %v5474_v7  ;;  %v7339_v7 = vld [vmem:[%s10149_s5 + $0x4c] sm:$0xf] }
  0x6e   : > { %v5510_v10 = vor.u32 %v7339_v7, %v5507_v8  ;;  %v5609_v8 = vld [vmem:[%s10149_s5 + $0x190] sm:$0xf] }
  0x72   : > { %5334 = vmatmul.msk.bf16.gmra.mxu0 %vm655_vm1, %v7295_v46  ;;  %v5491_v46 = vld [vmem:[%s10149_s5 + $0x1e0] sm:$0xf0] }
  0x73   : > { %v5494_v49 = vor.u32 %v7335_v44, %v5491_v46  ;;  %v5521_v44 = vld [vmem:[%s10149_s5 + $0xc8] sm:$0xf] }
  0x74   : > { %v5522_v47 = vor.u32 %v7344_v45, %v5521_v44 }
  0x75   : > { %1208 = vmatpush.bf16.msrb.mxu1 %v5494_v49  ;;  %v5523_v49 = vld [vmem:[%s10149_s5 + $0xe8] sm:$0xf0] }
  0x76   : > { %v5526_v50 = vor.u32 %v7343_v48, %v5523_v49 }
  0x79   : > { %1209 = vmatpush.bf16.msrb.mxu1 %v5486_v61  ;;  %v5515_v61 = vld [vmem:[%s10149_s5 + $0xa8] sm:$0xf0] }
  0x7a   : > { %v5518_v62 = vor.u32 %v7341_v60, %v5515_v61  ;;  %v7367_v60 = vld [vmem:[%s10149_s5 + $0x1d4] sm:$0xf] }
  0x7b   : > { %v5622_v3 = vor.u32 %v7367_v60, %v5619_v63  ;;  %v7377_v63 = vld [vmem:[%s10149_s5 + $0x11c] sm:$0xf] }
  0x7d   : > { %1210 = vmatpush.bf16.msrb.mxu1 %v5478_v12  ;;  %v7322_v12 = vld [vmem:[%s10149_s5 + $0x1c] sm:$0xf0] }
  0xaf   : > { %v684_v19 = vpop.f32.mrf.mxu0 }
  0xb0   : > { %v685_v21 = vadd.f32 %v8225_v20, %v684_v19  ;;  %v7329_v19 = vld [vmem:[%s10149_s5 + $0x104] sm:$0xf] }
  0xb2   : > { %v709_v24 = vmax.f32 %v685_v21, 0.0  ;;  %v5467_v21 = vld [vmem:[%s10149_s5 + $0x120] sm:$0xf0] }
  0xb7   : > { %v686_v22 = vpop.f32.mrf.mxu0 }
  0xb8   : > { %v687_v23 = vadd.f32 %v8225_v20, %v686_v22  ;;  %v5529_v22 = vld [vmem:[%s10149_s5 + $0x108] sm:$0xf] }
  0xba   : > { %v710_v25 = vmax.f32 %v687_v23, 0.0  ;;  %v7346_v23 = vld [vmem:[%s10149_s5 + $0x124] sm:$0xf0] }
  0xbc   : > { %v719_v26 = vpack.c.bf16 %v710_v25, %v709_v24 }
  0xbe   : > { %900 = vmatmul.bf16.vlgmr.msra.gmra.mxu1 %v719_v26  ;;  %934 = vmatmul.bf16.vlgmr.msra.gmra.mxu2 %v719_v26 }
  0xbf   : > { %968 = vmatmul.bf16.vlgmr.msra.gmra.mxu3 %v719_v26  ;;  %v689_v27 = vpop.f32.mrf.mxu0  ;;  %v7345_v26 = vld [vmem:[%s10149_s5 + $0x10c] sm:$0xf] }
  0xc0   : > { %v690_v28 = vadd.f32 %v8225_v20, %v689_v27  ;;  %v5531_v27 = vld [vmem:[%s10149_s5 + $0x128] sm:$0xf0] }
  0xc2   : > { %v711_v31 = vmax.f32 %v690_v28, 0.0  ;;  %v5466_v28 = vor.u32 %v7330_v18, %v5465_v17  ;;  %v7338_v17 = vld [vmem:[%s10149_s5 + $0x24] sm:$0xf0] }
  0xc4   : > { %1177 = vmatpush.bf16.msrb.mxu0 %v5466_v28 }
  0xc7   : > { %v691_v29 = vpop.f32.mrf.mxu0 }
  0xc8   : > { %v692_v30 = vadd.f32 %v8225_v20, %v691_v29 }
  0xca   : > { %v712_v32 = vmax.f32 %v692_v30, 0.0  ;;  %v5470_v30 = vor.u32 %v7329_v19, %v5467_v21  ;;  %v5498_v19 = vor.u32 %v7338_v17, %v5497_v16  ;;  %v7337_v21 = vld [vmem:[%s10149_s5 + $0xc] sm:$0xf]  ;;  %v7381_v16 = vld [vmem:[%s10149_s5 + $0x19c] sm:$0xf] }
  0xcc   : > { %v720_v33 = vpack.c.bf16 %v712_v32, %v711_v31  ;;  %v5530_v31 = vor.u32 %v7346_v23, %v5529_v22  ;;  %v5534_v32 = vor.u32 %v7345_v26, %v5531_v27  ;;  %1211 = vmatpush.bf16.msrb.mxu1 %v5470_v30  ;;  %v5499_v22 = vld [vmem:[%s10149_s5 + $0x28] sm:$0xf0] }
  0xcd   : > { %v5502_v23 = vor.u32 %v7337_v21, %v5499_v22  ;;  %v5601_v22 = vld [vmem:[%s10149_s5 + $0x150] sm:$0xf] }
  0xce   : > { %905 = vmatmul.bf16.gmra.mxu1 %v720_v33  ;;  %939 = vmatmul.bf16.gmra.mxu2 %v720_v33 }
  0xcf   : > { %973 = vmatmul.bf16.gmra.mxu3 %v720_v33  ;;  %v694_v34 = vpop.f32.mrf.mxu0  ;;  %1405 = vmatpush.bf16.msrb.mxu2 %v5530_v31 }
  0xd0   : > { %v695_v35 = vadd.f32 %v8225_v20, %v694_v34  ;;  %1439 = vmatpush.bf16.msrb.mxu3 %v5534_v32 }
  0xd2   : > { %v713_v38 = vmax.f32 %v695_v35, 0.0 }
  0xd3   : > { %1406 = vmatpush.bf16.msrb.mxu2 %v5522_v47 }
  0xd4   : > { %1440 = vmatpush.bf16.msrb.mxu3 %v5526_v50 }
  0xd7   : > { %v696_v36 = vpop.f32.mrf.mxu0  ;;  %1407 = vmatpush.bf16.msrb.mxu2 %v5514_v59  ;;  %v7368_v59 = vld [vmem:[%s10149_s5 + $0x1ec] sm:$0xf0] }
  0xd8   : > { %v697_v37 = vadd.f32 %v8225_v20, %v696_v36  ;;  %1441 = vmatpush.bf16.msrb.mxu3 %v5518_v62 }
  0xda   : > { %v714_v39 = vmax.f32 %v697_v37, 0.0 }
  0xdc   : > { %v721_v40 = vpack.c.bf16 %v714_v39, %v713_v38  ;;  %1442 = vmatpush.bf16.msrb.mxu3 %v5510_v10 }
  0xde   : > { %910 = vmatmul.bf16.gmra.mxu1 %v721_v40  ;;  %944 = vmatmul.bf16.gmra.mxu2 %v721_v40 }
  0xdf   : > { %978 = vmatmul.bf16.gmra.mxu3 %v721_v40  ;;  %v699_v41 = vpop.f32.mrf.mxu0  ;;  %v5457_v40 = vld [vmem:[%s10149_s5 + $0xc0] sm:$0xf] }
  0xe0   : > { %v700_v6 = vadd.f32 %v8225_v20, %v699_v41  ;;  %v7328_v41 = vld [vmem:[%s10149_s5 + $0xdc] sm:$0xf0]  ;;  %1443 = vmatpush.bf16.msrb.mxu3 %v5502_v23  ;;  %v7364_v23 = vld [vmem:[%s10149_s5 + $0x16c] sm:$0xf0] }
  0xe1   : > { %v5458_v43 = vor.u32 %v7328_v41, %v5457_v40 }
  0xe2   : > { %v715_v24 = vmax.f32 %v700_v6, 0.0  ;;  %v7340_v6 = vld [vmem:[%s10149_s5 + $0x64] sm:$0xf0] }
  0xe3   : > { %1178 = vmatpush.bf16.msrb.mxu0 %v5458_v43  ;;  %v5506_v9 = vor.u32 %v7340_v6, %v5505_v4  ;;  %v5683_v6 = vld [vmem:[%s10149_s5 + $0x1f8] sm:$0xf0] }
  0xe5   : > { %1408 = vmatpush.bf16.msrb.mxu2 %v5506_v9  ;;  %v7366_v9 = vld [vmem:[%s10149_s5 + $0x1ac] sm:$0xf0] }
  0xe6   : > { %v5610_v10 = vor.u32 %v7366_v9, %v5609_v8  ;;  %v5587_v9 = vld [vmem:[%s10149_s5 + $0xf0] sm:$0xf0] }
  0xe7   : > { %v701_v11 = vpop.f32.mrf.mxu0  ;;  %1179 = vmatpush.bf16.msrb.mxu0 %v5450_v54 }
  0xe8   : > { %v702_v15 = vadd.f32 %v8225_v20, %v701_v11  ;;  %v5433_v11 = vld [vmem:[%s10149_s5] sm:$0xf] }
  0xe9   : > { %v5434_v14 = vor.u32 %v7322_v12, %v5433_v11  ;;  %1409 = vmatpush.bf16.msrb.mxu2 %v5498_v19  ;;  %v7365_v11 = vld [vmem:[%s10149_s5 + $0x194] sm:$0xf] }
  0xea   : > { %v716_v25 = vmax.f32 %v702_v15, 0.0  ;;  %v5435_v15 = vld [vmem:[%s10149_s5 + $0x20] sm:$0xf0]  ;;  %v5611_v12 = vld [vmem:[%s10149_s5 + $0x1b0] sm:$0xf0] }
  0xeb   : > { %1180 = vmatpush.bf16.msrb.mxu0 %v5442_v1  ;;  %v5438_v18 = vor.u32 %v7321_v13, %v5435_v15  ;;  %v7384_v1 = vld [vmem:[%s10149_s5 + $0x1f4] sm:$0xf0]  ;;  %v5614_v13 = vor.u32 %v7365_v11, %v5611_v12 }
  0xec   : > { %v722_v29 = vpack.c.bf16 %v716_v25, %v715_v24  ;;  %v756_v24 = vld [vmem:[%s10148_s4] sm:$0x7]  ;;  %v5682_v4 = vor.u32 %v7384_v1, %v5681_v0  ;;  %v7382_v15 = vld [vmem:[%s10149_s5 + $0x1b4] sm:$0xf0] }
  0xed   : > { %v8432_v26 = vperm.slane %v756_v24, 0  ;;  %v8434_v27 = vperm.slane %v756_v24, 1  ;;  %v8436_v28 = vperm.slane %v756_v24, 2  ;;  %v7363_v24 = vld [vmem:[%s10149_s5 + $0x154] sm:$0xf] }
  0xee   : > { %915 = vmatmul.bf16.gmra.mxu1 %v722_v29  ;;  %949 = vmatmul.bf16.gmra.mxu2 %v722_v29  ;;  %v7376_v11 = vld [vmem:[%s10149_s5 + $0xf4] sm:$0xf0] }
  0xef   : > { %983 = vmatmul.bf16.gmra.mxu3 %v722_v29  ;;  %v704_v33 = vpop.f32.mrf.mxu0  ;;  %1181 = vmatpush.bf16.msrb.mxu0 %v5434_v14  ;;  %v5673_v14 = vld [vmem:[%s10149_s5 + $0x198] sm:$0xf] }
  0xf0   : > { %v705_v34 = vadd.f32 %v8225_v20, %v704_v33  ;;  %1858 = vmatpush.bf16.msra.mxu2 %v5682_v4  ;;  %v5674_v17 = vor.u32 %v7382_v15, %v5673_v14  ;;  %v5585_v4 = vld [vmem:[%s10149_s5 + $0xd0] sm:$0xf]  ;;  %v7375_v14 = vld [vmem:[%s10149_s5 + $0xdc] sm:$0xf] }
  0xf1   : > { %v5651_v15 = vld [vmem:[%s10149_s5 + $0xf8] sm:$0xf0] }
  0xf2   : > { %v717_v37 = vmax.f32 %v705_v34, 0.0 }
  0xf4   : > { %1859 = vmatpush.bf16.msra.mxu2 %v5674_v17  ;;  %v5654_v17 = vor.u32 %v7375_v14, %v5651_v15 }
  0xf7   : > { %v706_v35 = vpop.f32.mrf.mxu0 }
  0xf8   : > { %v707_v36 = vadd.f32 %v8225_v20, %v706_v35  ;;  %v5459_v20 = vld [vmem:[%s10149_s5 + $0xe0] sm:$0xf0] }
  0xf9   : > { %v5462_v46 = vor.u32 %v7327_v42, %v5459_v20 }
  0xfa   : > { %v718_v38 = vmax.f32 %v707_v36, 0.0 }
  0xfb   : > { %1212 = vmatpush.bf16.msrb.mxu1 %v5462_v46 }
  0xfc   : > { %v723_v39 = vpack.c.bf16 %v718_v38, %v717_v37 }
  0xfe   : > { %920 = vmatmul.bf16.gmra.mxu1 %v723_v39  ;;  %954 = vmatmul.bf16.gmra.mxu2 %v723_v39 }
  0xff   : > { %988 = vmatmul.bf16.gmra.mxu3 %v723_v39  ;;  %1213 = vmatpush.bf16.msrb.mxu1 %v5454_v58  ;;  %v5617_v58 = vld [vmem:[%s10149_s5 + $0x1d0] sm:$0xf] }
 0x100   : > { %v5618_v62 = vor.u32 %v7368_v59, %v5617_v58  ;;  %v5595_v58 = vld [vmem:[%s10149_s5 + $0x130] sm:$0xf0] }
 0x102   : > { %1630 = vmatpush.bf16.msra.mxu0 %v5618_v62  ;;  %v7378_v62 = vld [vmem:[%s10149_s5 + $0x134] sm:$0xf0] }
 0x103   : > { %1214 = vmatpush.bf16.msrb.mxu1 %v5446_v5  ;;  %v7383_v5 = vld [vmem:[%s10149_s5 + $0x1dc] sm:$0xf] }
 0x104   : > { %v5686_v7 = vor.u32 %v7383_v5, %v5683_v6  ;;  %v7360_v5 = vld [vmem:[%s10149_s5 + $0xec] sm:$0xf0]  ;;  %v7359_v6 = vld [vmem:[%s10149_s5 + $0xd4] sm:$0xf] }
 0x105   : > { %v5586_v8 = vor.u32 %v7360_v5, %v5585_v4 }
 0x106   : > { %1892 = vmatpush.bf16.msra.mxu3 %v5686_v7  ;;  %1631 = vmatpush.bf16.msra.mxu0 %v5610_v10  ;;  %v5649_v10 = vld [vmem:[%s10149_s5 + $0xd8] sm:$0xf] }
 0x107   : > { %1215 = vmatpush.bf16.msrb.mxu1 %v5438_v18  ;;  %v5675_v18 = vld [vmem:[%s10149_s5 + $0x1b8] sm:$0xf0] }
 0x108   : > { %v5678_v21 = vor.u32 %v7381_v16, %v5675_v18  ;;  %v5650_v16 = vor.u32 %v7376_v11, %v5649_v10  ;;  %v5577_v18 = vld [vmem:[%s10149_s5 + $0x90] sm:$0xf]  ;;  %v10168_v10 = vlaneseq }
 0x10a   : > { %1893 = vmatpush.bf16.msra.mxu3 %v5678_v21  ;;  %vm8691_vm2 = vcmp.lt.s32.totalorder %v10168_v10, 256 }
 0x10b   : > { %1664 = vmatpush.bf16.msra.mxu1 %v5622_v3 }
 0x10f   : > { %1665 = vmatpush.bf16.msra.mxu1 %v5614_v13  ;;  %v5590_v13 = vor.u32 %v7359_v6, %v5587_v9  ;;  %v7353_v6 = vld [vmem:[%s10149_s5 + $0x14] sm:$0xf] }
 0x13b   : > { %v901_v25 = vpop.f32.mrf.mxu1 }
 0x13c   : > { %v902_v30 = vadd.f32 %v901_v25, %v8432_v26 }
 0x13e   : > { %v994_v36 = vmax.f32 %v902_v30, 0.0 }
 0x141   : > { %v935_v29 = vpop.f32.mrf.mxu2 }
 0x142   : > { %v936_v31 = vadd.f32 %v935_v29, %v8434_v27  ;;  %v969_v32 = vpop.f32.mrf.mxu3 }
 0x143   : > { %v970_v33 = vadd.f32 %v969_v32, %v8436_v28  ;;  %v903_v34 = vpop.f32.mrf.mxu1  ;;  %v5603_v32 = vld [vmem:[%s10149_s5 + $0x170] sm:$0xf0] }
 0x144   : > { %v904_v35 = vadd.f32 %v903_v34, %v8432_v26  ;;  %v995_v47 = vmax.f32 %v936_v31, 0.0  ;;  %v5602_v31 = vor.u32 %v7364_v23, %v5601_v22  ;;  %v7380_v34 = vld [vmem:[%s10149_s5 + $0x174] sm:$0xf0]  ;;  %v7357_v22 = vld [vmem:[%s10149_s5 + $0x94] sm:$0xf] }
 0x145   : > { %v996_v50 = vmax.f32 %v970_v33, 0.0  ;;  %v5665_v33 = vld [vmem:[%s10149_s5 + $0x158] sm:$0xf]  ;;  %v5579_v23 = vld [vmem:[%s10149_s5 + $0xb0] sm:$0xf0] }
 0x146   : > { %v997_v37 = vmax.f32 %v904_v35, 0.0  ;;  %1632 = vmatpush.bf16.msra.mxu0 %v5602_v31 }
 0x148   : > { %v8442_v38 = vpack.c.bf16 %v997_v37, %v994_v36  ;;  %v5606_v37 = vor.u32 %v7363_v24, %v5603_v32  ;;  %v5582_v24 = vor.u32 %v7357_v22, %v5579_v23  ;;  %v5643_v32 = vld [vmem:[%s10149_s5 + $0xb8] sm:$0xf0] }
 0x149   : > { %v8444_v39 = vpop.f32.mrf.mxu2 }
 0x14a   : > { %v8446_v40 = vpop.f32.mrf.mxu3  ;;  %1182 = vmatmul.bf16.vlgmr.msrb.gmra.mxu0 %v8442_v38  ;;  %1216 = vmatmul.bf16.vlgmr.msrb.gmra.mxu1 %v8442_v38 }
 0x14b   : > { %1410 = vmatmul.bf16.vlgmr.msrb.gmra.mxu2 %v8442_v38  ;;  %1444 = vmatmul.bf16.vlgmr.msrb.gmra.mxu3 %v8442_v38  ;;  %v906_v41 = vpop.f32.mrf.mxu1 }
 0x14c   : > { %v907_v43 = vadd.f32 %v906_v41, %v8432_v26  ;;  %v5666_v41 = vor.u32 %v7380_v34, %v5665_v33  ;;  %1666 = vmatpush.bf16.msra.mxu1 %v5606_v37  ;;  %v7355_v37 = vld [vmem:[%s10149_s5 + $0x54] sm:$0xf] }
 0x14e   : > { %v1000_v52 = vmax.f32 %v907_v43, 0.0  ;;  %v5667_v43 = vld [vmem:[%s10149_s5 + $0x178] sm:$0xf0]  ;;  %1860 = vmatpush.bf16.msra.mxu2 %v5666_v41 }
 0x151   : > { %v940_v42 = vpop.f32.mrf.mxu2 }
 0x152   : > { %v941_v20 = vadd.f32 %v940_v42, %v8434_v27  ;;  %v974_v44 = vpop.f32.mrf.mxu3  ;;  %v7379_v42 = vld [vmem:[%s10149_s5 + $0x15c] sm:$0xf] }
 0x153   : > { %v975_v45 = vadd.f32 %v974_v44, %v8436_v28  ;;  %v908_v46 = vpop.f32.mrf.mxu1 }
 0x154   : > { %v1001_v48 = vmax.f32 %v941_v20, 0.0  ;;  %v909_v49 = vadd.f32 %v908_v46, %v8432_v26 }
 0x155   : > { %v1002_v51 = vmax.f32 %v975_v45, 0.0  ;;  %v5670_v45 = vor.u32 %v7379_v42, %v5667_v43 }
 0x156   : > { %v8456_v53 = vmax.f32 %v995_v47, %v1001_v48  ;;  %v1003_v54 = vmax.f32 %v909_v49, 0.0  ;;  %v5593_v47 = vld [vmem:[%s10149_s5 + $0x110] sm:$0xf] }
 0x157   : > { %v8458_v55 = vmax.f32 %v996_v50, %v1002_v51  ;;  %v7362_v48 = vld [vmem:[%s10149_s5 + $0x12c] sm:$0xf0]  ;;  %1894 = vmatpush.bf16.msra.mxu3 %v5670_v45  ;;  %v5633_v45 = vld [vmem:[%s10149_s5 + $0x58] sm:$0xf] }
 0x158   : > { %v8460_v56 = vpack.c.bf16 %v1003_v54, %v1000_v52  ;;  %v5594_v52 = vor.u32 %v7362_v48, %v5593_v47  ;;  %v7361_v54 = vld [vmem:[%s10149_s5 + $0x114] sm:$0xf] }
 0x159   : > { %v8462_v57 = vpop.f32.mrf.mxu2  ;;  %v5598_v60 = vor.u32 %v7361_v54, %v5595_v58 }
 0x15a   : > { %v8473_v61 = vpop.f32.mrf.mxu3  ;;  %1187 = vmatmul.bf16.gmra.mxu0 %v8460_v56  ;;  %1221 = vmatmul.bf16.gmra.mxu1 %v8460_v56  ;;  %v943_v23 = vadd.f32 %v8462_v57, %v8434_v27 }
 0x15b   : > { %1415 = vmatmul.bf16.gmra.mxu2 %v8460_v56  ;;  %1449 = vmatmul.bf16.gmra.mxu3 %v8460_v56  ;;  %v911_v2 = vpop.f32.mrf.mxu1 }
 0x15c   : > { %v912_v25 = vadd.f32 %v911_v2, %v8432_v26  ;;  %1633 = vmatpush.bf16.msra.mxu0 %v5594_v52  ;;  %1667 = vmatpush.bf16.msra.mxu1 %v5598_v60  ;;  %v5635_v52 = vld [vmem:[%s10149_s5 + $0x78] sm:$0xf0] }
 0x15e   : > { %v1006_v49 = vmax.f32 %v912_v25, 0.0  ;;  %v5641_v25 = vld [vmem:[%s10149_s5 + $0x98] sm:$0xf] }
 0x160   : > { %1634 = vmatpush.bf16.msra.mxu0 %v5586_v8  ;;  %1668 = vmatpush.bf16.msra.mxu1 %v5590_v13  ;;  %v5563_v8 = vld [vmem:[%s10149_s5 + $0x30] sm:$0xf0]  ;;  %v7369_v13 = vld [vmem:[%s10149_s5 + $0x1c] sm:$0xf] }
 0x161   : > { %v945_v19 = vpop.f32.mrf.mxu2  ;;  %v5566_v11 = vor.u32 %v7353_v6, %v5563_v8 }
 0x162   : > { %v946_v29 = vadd.f32 %v945_v19, %v8434_v27  ;;  %v979_v30 = vpop.f32.mrf.mxu3  ;;  %v7358_v19 = vld [vmem:[%s10149_s5 + $0xac] sm:$0xf0] }
 0x163   : > { %v980_v35 = vadd.f32 %v979_v30, %v8436_v28  ;;  %v913_v36 = vpop.f32.mrf.mxu1  ;;  %v5578_v21 = vor.u32 %v7358_v19, %v5577_v18  ;;  %v7373_v30 = vld [vmem:[%s10149_s5 + $0x9c] sm:$0xf] }
 0x164   : > { %v1007_v20 = vmax.f32 %v946_v29, 0.0  ;;  %v914_v44 = vadd.f32 %v913_v36, %v8432_v26  ;;  %v7374_v29 = vld [vmem:[%s10149_s5 + $0xb4] sm:$0xf0]  ;;  %1669 = vmatpush.bf16.msra.mxu1 %v5582_v24  ;;  %v5646_v34 = vor.u32 %v7373_v30, %v5643_v32  ;;  %v7356_v36 = vld [vmem:[%s10149_s5 + $0x6c] sm:$0xf0]  ;;  %v938_v24 = vadd.f32 %v8444_v39, %v8434_v27 }
 0x165   : > { %v1008_v46 = vmax.f32 %v980_v35, 0.0  ;;  %v5642_v31 = vor.u32 %v7374_v29, %v5641_v25  ;;  %1635 = vmatpush.bf16.msra.mxu0 %v5578_v21  ;;  %v5569_v35 = vld [vmem:[%s10149_s5 + $0x50] sm:$0xf]  ;;  %v8023_v21 = vmov -inf   ;;  %v977_v25 = vadd.f32 %v8473_v61, %v8436_v28 }
 0x166   : > { %v8553_v50 = vmax.f32 %v8456_v53, %v1007_v20  ;;  %v1009_v51 = vmax.f32 %v914_v44, 0.0  ;;  %v5657_v53 = vld [vmem:[%s10149_s5 + $0x118] sm:$0xf]  ;;  %v5570_v20 = vor.u32 %v7356_v36, %v5569_v35  ;;  %v5571_v44 = vld [vmem:[%s10149_s5 + $0x70] sm:$0xf0]  ;;  %598 = vst [vmem:[#allocation2] sm:$0xff] %v8023_v21 }
 0x167   : > { %v8562_v59 = vmax.f32 %v8458_v55, %v1008_v46  ;;  %v5658_v1 = vor.u32 %v7378_v62, %v5657_v53  ;;  %v5659_v55 = vld [vmem:[%s10149_s5 + $0x138] sm:$0xf0]  ;;  %v7372_v46 = vld [vmem:[%s10149_s5 + $0x74] sm:$0xf0]  ;;  %603 = vst.msk [vmem:[#allocation3] sm:$0x3] %vm8691_vm2, %v8023_v21 }
 0x168   : > { %v8573_v0 = vpack.c.bf16 %v1009_v51, %v1006_v49  ;;  %v5662_v3 = vor.u32 %v7377_v63, %v5659_v55  ;;  %v5574_v49 = vor.u32 %v7355_v37, %v5571_v44  ;;  %v7371_v51 = vld [vmem:[%s10149_s5 + $0x5c] sm:$0xf]  ;;  %v5634_v60 = vor.u32 %v7372_v46, %v5633_v45  ;;  %v5561_v63 = vld [vmem:[%s10149_s5 + $0x10] sm:$0xf] }
 0x169   : > { %v8578_v2 = vpop.f32.mrf.mxu2  ;;  %1861 = vmatpush.bf16.msra.mxu2 %v5658_v1  ;;  %v5638_v53 = vor.u32 %v7371_v51, %v5635_v52  ;;  %1636 = vmatpush.bf16.msra.mxu0 %v5570_v20  ;;  %v7354_v1 = vld [vmem:[%s10149_s5 + $0x2c] sm:$0xf0]  ;;  %v1004_v36 = vmax.f32 %v943_v23, 0.0 }
 0x16a   : > { %v8589_v7 = vpop.f32.mrf.mxu3  ;;  %1192 = vmatmul.bf16.gmra.mxu0 %v8573_v0  ;;  %1226 = vmatmul.bf16.gmra.mxu1 %v8573_v0  ;;  %v5562_v5 = vor.u32 %v7354_v1, %v5561_v63  ;;  %v948_v30 = vadd.f32 %v8578_v2, %v8434_v27 }
 0x16b   : > { %1420 = vmatmul.bf16.gmra.mxu2 %v8573_v0  ;;  %1454 = vmatmul.bf16.gmra.mxu3 %v8573_v0  ;;  %v916_v12 = vpop.f32.mrf.mxu1  ;;  %v982_v57 = vadd.f32 %v8589_v7, %v8436_v28 }
 0x16c   : > { %1895 = vmatpush.bf16.msra.mxu3 %v5662_v3  ;;  %v917_v41 = vadd.f32 %v916_v12, %v8432_v26  ;;  %1670 = vmatpush.bf16.msra.mxu1 %v5574_v49  ;;  %v5625_v12 = vld [vmem:[%s10149_s5 + $0x18] sm:$0xf]  ;;  %v1010_v44 = vmax.f32 %v948_v30, 0.0 }
 0x16d   : > { %1862 = vmatpush.bf16.msra.mxu2 %v5650_v16  ;;  %1637 = vmatpush.bf16.msra.mxu0 %v5562_v5  ;;  %v1011_v7 = vmax.f32 %v982_v57, 0.0 }
 0x16e   : > { %v1012_v55 = vmax.f32 %v917_v41, 0.0  ;;  %v998_v41 = vmax.f32 %v938_v24, 0.0  ;;  %v1029_v23 = vld [vmem:[#allocation3] sm:$0x3] }
 0x170   : > { %1896 = vmatpush.bf16.msra.mxu3 %v5654_v17  ;;  %1671 = vmatpush.bf16.msra.mxu1 %v5566_v11  ;;  %v1031_v49 = vmax.f32 %v998_v41, %v1004_v36 }
 0x171   : > { %v950_v33 = vpop.f32.mrf.mxu2  ;;  %1863 = vmatpush.bf16.msra.mxu2 %v5642_v31 }
 0x172   : > { %v951_v42 = vadd.f32 %v950_v33, %v8434_v27  ;;  %v984_v43 = vpop.f32.mrf.mxu3 }
 0x173   : > { %v985_v47 = vadd.f32 %v984_v43, %v8436_v28  ;;  %v918_v48 = vpop.f32.mrf.mxu1 }
 0x174   : > { %v1013_v54 = vmax.f32 %v951_v42, 0.0  ;;  %v919_v58 = vadd.f32 %v918_v48, %v8432_v26  ;;  %1897 = vmatpush.bf16.msra.mxu3 %v5646_v34  ;;  %v972_v34 = vadd.f32 %v8446_v40, %v8436_v28  ;;  %v1005_v42 = vmax.f32 %v977_v25, 0.0 }
 0x175   : > { %v1014_v62 = vmax.f32 %v985_v47, 0.0  ;;  %1864 = vmatpush.bf16.msra.mxu2 %v5634_v60 }
 0x176   : > { %v1034_v3 = vmax.f32 %v8553_v50, %v1013_v54  ;;  %v1015_v4 = vmax.f32 %v919_v58, 0.0  ;;  %v7370_v50 = vld [vmem:[%s10149_s5 + $0x34] sm:$0xf0]  ;;  %v999_v47 = vmax.f32 %v972_v34, 0.0 }
 0x177   : > { %v1049_v9 = vmax.f32 %v8562_v59, %v1014_v62  ;;  %v5626_v15 = vor.u32 %v7370_v50, %v5625_v12  ;;  %v5627_v59 = vld [vmem:[%s10149_s5 + $0x38] sm:$0xf0] }
 0x178   : > { %v8685_v14 = vpack.c.bf16 %v1015_v4, %v1012_v55  ;;  %1898 = vmatpush.bf16.msra.mxu3 %v5638_v53  ;;  %v5630_v18 = vor.u32 %v7369_v13, %v5627_v59  ;;  %v1046_v54 = vmax.f32 %v999_v47, %v1005_v42 }
 0x179   : > { %v952_v16 = vpop.f32.mrf.mxu2  ;;  %1865 = vmatpush.bf16.msra.mxu2 %v5626_v15 }
 0x17a   : > { %v986_v19 = vpop.f32.mrf.mxu3  ;;  %1197 = vmatmul.bf16.gmra.mxu0 %v8685_v14  ;;  %1231 = vmatmul.bf16.gmra.mxu1 %v8685_v14  ;;  %v953_v61 = vadd.f32 %v952_v16, %v8434_v27  ;;  %v1048_v63 = vmax.f32 %v1046_v54, %v1011_v7  ;;  %v1316_v7 = vld [vmem:[%s10150_s6 + $0x2] sm:$0x3] }
 0x17b   : > { %1425 = vmatmul.bf16.gmra.mxu2 %v8685_v14  ;;  %1459 = vmatmul.bf16.gmra.mxu3 %v8685_v14  ;;  %v921_v22 = vpop.f32.mrf.mxu1  ;;  %v987_v43 = vadd.f32 %v986_v19, %v8436_v28  ;;  %v8768_v54 = vperm.slane %v1316_v7, 0 }
 0x17c   : > { %1899 = vmatpush.bf16.msra.mxu3 %v5630_v18  ;;  %v922_v31 = vadd.f32 %v921_v22, %v8432_v26  ;;  %v1016_v51 = vmax.f32 %v953_v61, 0.0 }
 0x17d   : > { %v1017_v58 = vmax.f32 %v987_v43, 0.0 }
 0x17e   : > { %v1018_v45 = vmax.f32 %v922_v31, 0.0 }
 0x17f   : > { %v1050_v4 = vmax.f32 %v1048_v63, %v1017_v58  ;;  %v8770_v58 = vperm.slane %v1316_v7, 1 }
 0x181   : > { %v955_v29 = vpop.f32.mrf.mxu2 }
 0x182   : > { %v956_v32 = vadd.f32 %v955_v29, %v8434_v27  ;;  %v989_v33 = vpop.f32.mrf.mxu3 }
 0x183   : > { %v990_v39 = vadd.f32 %v989_v33, %v8436_v28  ;;  %v923_v35 = vpop.f32.mrf.mxu1 }
 0x184   : > { %v1019_v37 = vmax.f32 %v956_v32, 0.0  ;;  %v924_v2 = vadd.f32 %v923_v35, %v8432_v26  ;;  %v1033_v26 = vmax.f32 %v1031_v49, %v1010_v44 }
 0x185   : > { %v1020_v20 = vmax.f32 %v990_v39, 0.0 }
 0x186   : > { %v1036_v40 = vmax.f32 %v1034_v3, %v1019_v37  ;;  %v1021_v46 = vmax.f32 %v924_v2, 0.0  ;;  %v1035_v55 = vmax.f32 %v1033_v26, %v1016_v51 }
 0x187   : > { %v1051_v48 = vmax.f32 %v1049_v9, %v1020_v20 }
 0x188   : > { %v8719_v52 = vpack.c.bf16 %v1021_v46, %v1018_v45 }
 0x189   : > { %v957_v60 = vpop.f32.mrf.mxu2 }
 0x18a   : > { %v958_v53 = vadd.f32 %v957_v60, %v8434_v27  ;;  %v991_v62 = vpop.f32.mrf.mxu3  ;;  %1202 = vmatmul.bf16.gmra.mxu0 %v8719_v52  ;;  %1236 = vmatmul.bf16.gmra.mxu1 %v8719_v52 }
 0x18b   : > { %v992_v1 = vadd.f32 %v991_v62, %v8436_v28  ;;  %1430 = vmatmul.bf16.gmra.mxu2 %v8719_v52  ;;  %1464 = vmatmul.bf16.gmra.mxu3 %v8719_v52 }
 0x18c   : > { %v1022_v3 = vmax.f32 %v958_v53, 0.0 }
 0x18d   : > { %v1023_v5 = vmax.f32 %v992_v1, 0.0 }
 0x18e   : > { %v1037_v6 = vmax.f32 %v1035_v55, %v1022_v3 }
 0x18f   : > { %v1052_v8 = vmax.f32 %v1050_v4, %v1023_v5 }
 0x190   : > { %v1038_v9 = vmax.f32 %v1036_v40, %v1037_v6  ;;  %v1088_v40 = vld [vmem:[%s10150_s6] sm:$0x3] }
 0x191   : > { %v1053_v27 = vmax.f32 %v1051_v48, %v1052_v8  ;;  %v8764_v51 = vperm.slane %v1088_v40, 0 }
 0x192   : > { %v1039_v11 = vrot.slane %v1038_v9, 4 }
 0x193   : > { %v1054_v12 = vrot.slane %v1053_v27, 4 }
 0x194   : > { %v1040_v50 = vmax.f32 %v1038_v9, %v1039_v11 }
 0x195   : > { %v1055_v13 = vmax.f32 %v1053_v27, %v1054_v12 }
 0x196   : > { %v1041_v15 = vrot.slane %v1040_v50, 2 }
 0x197   : > { %v1056_v59 = vrot.slane %v1055_v13, 2 }
 0x198   : > { %v1042_v16 = vmax.f32 %v1040_v50, %v1041_v15 }
 0x199   : > { %v1057_v28 = vmax.f32 %v1055_v13, %v1056_v59 }
 0x19a   : > { %1638 = vmatmul.bf16.vlgmr.msra.gmra.mxu0 %v8442_v38  ;;  %1672 = vmatmul.bf16.vlgmr.msra.gmra.mxu1 %v8442_v38  ;;  %v1043_v18 = vrot.slane %v1042_v16, 1 }
 0x19b   : > { %v1058_v19 = vrot.slane %v1057_v28, 1  ;;  %1866 = vmatmul.bf16.vlgmr.msra.gmra.mxu2 %v8442_v38  ;;  %1900 = vmatmul.bf16.vlgmr.msra.gmra.mxu3 %v8442_v38 }
 0x19c   : > { %v1044_v22 = vmax.f32 %v1042_v16, %v1043_v18 }
 0x19d   : > { %v1059_v21 = vmax.f32 %v1057_v28, %v1058_v19 }
 0x19f   : > { %v1062_v24 = vrot.slane %v1059_v21, 7 }
 0x1a1   : > { %v1064_v25 = vsel %vm1063_vm3, %v1044_v22, %v1062_v24 }
 0x1a2   : > { %v1066_v29 = vmax.f32 %v1029_v23, %v1064_v25 }
 0x1a4   : > { %1071 = vst.msk [vmem:[#allocation3] sm:$0x3] %vm8691_vm2, %v1066_v29 }
 0x1aa   : > { %1643 = vmatmul.bf16.gmra.mxu0 %v8460_v56  ;;  %1677 = vmatmul.bf16.gmra.mxu1 %v8460_v56 }
 0x1ab   : > { %1871 = vmatmul.bf16.gmra.mxu2 %v8460_v56  ;;  %1905 = vmatmul.bf16.gmra.mxu3 %v8460_v56 }
 0x1ba   : > { %1648 = vmatmul.bf16.gmra.mxu0 %v8573_v0  ;;  %1682 = vmatmul.bf16.gmra.mxu1 %v8573_v0 }
 0x1bb   : > { %1876 = vmatmul.bf16.gmra.mxu2 %v8573_v0  ;;  %1910 = vmatmul.bf16.gmra.mxu3 %v8573_v0 }
 0x1c7   : > { %v1183_v38 = vpop.f32.mrf.mxu0  ;;  %v1217_v30 = vpop.f32.mrf.mxu1 }
 0x1c8   : > { %v1184_v60 = vadd.f32 %v1183_v38, %v8764_v51 }
 0x1ca   : > { %1653 = vmatmul.bf16.gmra.mxu0 %v8685_v14  ;;  %1687 = vmatmul.bf16.gmra.mxu1 %v8685_v14  ;;  %v1242_v9 = vmax.f32 %v1184_v60, 0.0 }
 0x1cb   : > { %1881 = vmatmul.bf16.gmra.mxu2 %v8685_v14  ;;  %1915 = vmatmul.bf16.gmra.mxu3 %v8685_v14 }
 0x1ce   : > { %v1411_v31 = vpop.f32.mrf.mxu2  ;;  %v1445_v56 = vpop.f32.mrf.mxu3 }
 0x1cf   : > { %v1185_v32 = vpop.f32.mrf.mxu0  ;;  %v1219_v33 = vpop.f32.mrf.mxu1  ;;  %v1412_v53 = vadd.f32 %v1411_v31, %v8768_v54  ;;  %v1446_v62 = vadd.f32 %v1445_v56, %v8770_v58 }
 0x1d0   : > { %v1186_v50 = vadd.f32 %v1185_v32, %v8764_v51 }
 0x1d1   : > { %v1470_v16 = vmax.f32 %v1412_v53, 0.0  ;;  %v1471_v28 = vmax.f32 %v1446_v62, 0.0 }
 0x1d2   : > { %v1244_v31 = vmax.f32 %v1186_v50, 0.0 }
 0x1d6   : > { %v1413_v34 = vpop.f32.mrf.mxu2  ;;  %v1447_v57 = vpop.f32.mrf.mxu3 }
 0x1d7   : > { %v1188_v39 = vpop.f32.mrf.mxu0  ;;  %v1222_v35 = vpop.f32.mrf.mxu1  ;;  %v1414_v15 = vadd.f32 %v1413_v34, %v8768_v54  ;;  %v1448_v59 = vadd.f32 %v1447_v57, %v8770_v58 }
 0x1d8   : > { %v1189_v63 = vadd.f32 %v1188_v39, %v8764_v51 }
 0x1d9   : > { %v1472_v32 = vmax.f32 %v1414_v15, 0.0 }
 0x1da   : > { %1658 = vmatmul.bf16.gmra.mxu0 %v8719_v52  ;;  %1692 = vmatmul.bf16.gmra.mxu1 %v8719_v52  ;;  %v1246_v18 = vmax.f32 %v1189_v63, 0.0 }
 0x1db   : > { %1886 = vmatmul.bf16.gmra.mxu2 %v8719_v52  ;;  %1920 = vmatmul.bf16.gmra.mxu3 %v8719_v52  ;;  %v8766_v52 = vperm.slane %v1088_v40, 1 }
 0x1dc   : > { %v1263_v34 = vmax.f32 %v1242_v9, %v1246_v18 }
 0x1dd   : > { %v1218_v26 = vadd.f32 %v1217_v30, %v8766_v52  ;;  %v1223_v1 = vadd.f32 %v1222_v35, %v8766_v52  ;;  %v1220_v13 = vadd.f32 %v1219_v33, %v8766_v52  ;;  %v1473_v33 = vmax.f32 %v1448_v59, 0.0 }
 0x1de   : > { %v1416_v0 = vpop.f32.mrf.mxu2  ;;  %v1450_v36 = vpop.f32.mrf.mxu3 }
 0x1df   : > { %v1190_v61 = vpop.f32.mrf.mxu0  ;;  %v1224_v14 = vpop.f32.mrf.mxu1  ;;  %v1417_v4 = vadd.f32 %v1416_v0, %v8768_v54  ;;  %v1451_v5 = vadd.f32 %v1450_v36, %v8770_v58  ;;  %v1243_v27 = vmax.f32 %v1218_v26, 0.0  ;;  %v1247_v19 = vmax.f32 %v1223_v1, 0.0 }
 0x1e0   : > { %v1191_v11 = vadd.f32 %v1190_v61, %v8764_v51  ;;  %v1225_v12 = vadd.f32 %v1224_v14, %v8766_v52  ;;  %v1245_v56 = vmax.f32 %v1220_v13, 0.0 }
 0x1e1   : > { %v1474_v21 = vmax.f32 %v1417_v4, 0.0  ;;  %v1475_v22 = vmax.f32 %v1451_v5, 0.0  ;;  %v1278_v57 = vmax.f32 %v1243_v27, %v1247_v19 }
 0x1e2   : > { %v1248_v25 = vmax.f32 %v1191_v11, 0.0  ;;  %v1249_v29 = vmax.f32 %v1225_v12, 0.0 }
 0x1e3   : > { %v1491_v61 = vmax.f32 %v1470_v16, %v1474_v21  ;;  %v1506_v14 = vmax.f32 %v1471_v28, %v1475_v22 }
 0x1e4   : > { %v1264_v7 = vmax.f32 %v1244_v31, %v1248_v25 }
 0x1e6   : > { %v1418_v37 = vpop.f32.mrf.mxu2  ;;  %v1452_v2 = vpop.f32.mrf.mxu3 }
 0x1e7   : > { %v1193_v41 = vpop.f32.mrf.mxu0  ;;  %v1227_v42 = vpop.f32.mrf.mxu1  ;;  %v1419_v23 = vadd.f32 %v1418_v37, %v8768_v54  ;;  %v1453_v24 = vadd.f32 %v1452_v2, %v8770_v58 }
 0x1e8   : > { %v1194_v38 = vadd.f32 %v1193_v41, %v8764_v51  ;;  %v1228_v30 = vadd.f32 %v1227_v42, %v8766_v52  ;;  %v1279_v42 = vmax.f32 %v1245_v56, %v1249_v29 }
 0x1e9   : > { %v1476_v37 = vmax.f32 %v1419_v23, 0.0  ;;  %v1477_v2 = vmax.f32 %v1453_v24, 0.0 }
 0x1ea   : > { %v1250_v60 = vmax.f32 %v1194_v38, 0.0  ;;  %v1251_v26 = vmax.f32 %v1228_v30, 0.0 }
 0x1eb   : > { %v1492_v9 = vmax.f32 %v1472_v32, %v1476_v37  ;;  %v1507_v27 = vmax.f32 %v1473_v33, %v1477_v2 }
 0x1ec   : > { %v1265_v12 = vmax.f32 %v1263_v34, %v1250_v60 }
 0x1ee   : > { %v8750_v43 = vpop.f32.mrf.mxu2  ;;  %v8752_v20 = vpop.f32.mrf.mxu3 }
 0x1ef   : > { %v1195_v44 = vpop.f32.mrf.mxu0  ;;  %v1229_v45 = vpop.f32.mrf.mxu1  ;;  %v1422_v53 = vadd.f32 %v8750_v43, %v8768_v54 }
 0x1f0   : > { %v1196_v39 = vadd.f32 %v1195_v44, %v8764_v51  ;;  %v1230_v35 = vadd.f32 %v1229_v45, %v8766_v52  ;;  %v1456_v44 = vadd.f32 %v8752_v20, %v8770_v58  ;;  %v1280_v20 = vmax.f32 %v1278_v57, %v1251_v26 }
 0x1f1   : > { %v1478_v50 = vmax.f32 %v1422_v53, 0.0 }
 0x1f2   : > { %v1252_v63 = vmax.f32 %v1196_v39, 0.0  ;;  %v1253_v1 = vmax.f32 %v1230_v35, 0.0  ;;  %v1479_v13 = vmax.f32 %v1456_v44, 0.0 }
 0x1f4   : > { %v1266_v59 = vmax.f32 %v1264_v7, %v1252_v63  ;;  %v1493_v7 = vmax.f32 %v1491_v61, %v1478_v50 }
 0x1f6   : > { %v8757_v46 = vpop.f32.mrf.mxu2  ;;  %v8759_v47 = vpop.f32.mrf.mxu3 }
 0x1f7   : > { %v1198_v48 = vpop.f32.mrf.mxu0  ;;  %v1232_v49 = vpop.f32.mrf.mxu1  ;;  %v1424_v11 = vadd.f32 %v8757_v46, %v8768_v54  ;;  %v1458_v43 = vadd.f32 %v8759_v47, %v8770_v58 }
 0x1f8   : > { %v1199_v45 = vadd.f32 %v1198_v48, %v8764_v51  ;;  %v1233_v62 = vadd.f32 %v1232_v49, %v8766_v52 }
 0x1f9   : > { %v1480_v46 = vmax.f32 %v1424_v11, 0.0  ;;  %v1481_v21 = vmax.f32 %v1458_v43, 0.0 }
 0x1fa   : > { %v1254_v15 = vmax.f32 %v1199_v45, 0.0 }
 0x1fb   : > { %v1494_v26 = vmax.f32 %v1492_v9, %v1480_v46 }
 0x1fc   : > { %v1267_v31 = vmax.f32 %v1265_v12, %v1254_v15 }
 0x1fe   : > { %v8778_v55 = vpop.f32.mrf.mxu2  ;;  %v8780_v3 = vpop.f32.mrf.mxu3 }
 0x1ff   : > { %v1200_v6 = vpop.f32.mrf.mxu0  ;;  %v1234_v8 = vpop.f32.mrf.mxu1  ;;  %v1427_v47 = vadd.f32 %v8778_v55, %v8768_v54  ;;  %v1461_v22 = vadd.f32 %v8780_v3, %v8770_v58 }
 0x200   : > { %v1201_v4 = vadd.f32 %v1200_v6, %v8764_v51  ;;  %v1235_v5 = vadd.f32 %v1234_v8, %v8766_v52  ;;  %v1255_v6 = vmax.f32 %v1233_v62, 0.0  ;;  %v1281_v8 = vmax.f32 %v1279_v42, %v1253_v1 }
 0x201   : > { %v1482_v35 = vmax.f32 %v1427_v47, 0.0  ;;  %v1483_v3 = vmax.f32 %v1461_v22, 0.0  ;;  %v1508_v42 = vmax.f32 %v1506_v14, %v1479_v13 }
 0x202   : > { %v1256_v16 = vmax.f32 %v1201_v4, 0.0  ;;  %v1257_v28 = vmax.f32 %v1235_v5, 0.0  ;;  %v1282_v56 = vmax.f32 %v1280_v20, %v1255_v6 }
 0x203   : > { %v1495_v61 = vmax.f32 %v1493_v7, %v1482_v35  ;;  %v1510_v14 = vmax.f32 %v1508_v42, %v1483_v3 }
 0x204   : > { %v1268_v34 = vmax.f32 %v1266_v59, %v1256_v16  ;;  %v1283_v57 = vmax.f32 %v1281_v8, %v1257_v28 }
 0x206   : > { %v1428_v0 = vpop.f32.mrf.mxu2  ;;  %v1462_v36 = vpop.f32.mrf.mxu3 }
 0x207   : > { %v1203_v40 = vpop.f32.mrf.mxu0  ;;  %v1237_v41 = vpop.f32.mrf.mxu1  ;;  %v1429_v32 = vadd.f32 %v1428_v0, %v8768_v54  ;;  %v1463_v33 = vadd.f32 %v1462_v36, %v8770_v58  ;;  %v1509_v36 = vmax.f32 %v1507_v27, %v1481_v21 }
 0x208   : > { %v1204_v48 = vadd.f32 %v1203_v40, %v8764_v51  ;;  %v1238_v49 = vadd.f32 %v1237_v41, %v8766_v52 }
 0x209   : > { %v1484_v60 = vmax.f32 %v1429_v32, 0.0  ;;  %v1485_v0 = vmax.f32 %v1463_v33, 0.0 }
 0x20a   : > { %v1258_v25 = vmax.f32 %v1204_v48, 0.0  ;;  %v1259_v29 = vmax.f32 %v1238_v49, 0.0 }
 0x20b   : > { %v1496_v9 = vmax.f32 %v1494_v26, %v1484_v60  ;;  %v1511_v27 = vmax.f32 %v1509_v36, %v1485_v0  ;;  %v1490_v60 = vld [vmem:[#allocation2 + $0x2] sm:$0x3] }
 0x20c   : > { %v1269_v40 = vmax.f32 %v1267_v31, %v1258_v25 }
 0x20e   : > { %v1431_v18 = vpop.f32.mrf.mxu2  ;;  %v1465_v19 = vpop.f32.mrf.mxu3 }
 0x20f   : > { %v1205_v23 = vpop.f32.mrf.mxu0  ;;  %v1239_v24 = vpop.f32.mrf.mxu1  ;;  %v1432_v37 = vadd.f32 %v1431_v18, %v8768_v54  ;;  %v1466_v2 = vadd.f32 %v1465_v19, %v8770_v58 }
 0x210   : > { %v1206_v38 = vadd.f32 %v1205_v23, %v8764_v51  ;;  %v1240_v30 = vadd.f32 %v1239_v24, %v8766_v52  ;;  %v1284_v51 = vmax.f32 %v1282_v56, %v1259_v29 }
 0x211   : > { %v1486_v63 = vmax.f32 %v1432_v37, 0.0  ;;  %v1487_v1 = vmax.f32 %v1466_v2, 0.0 }
 0x212   : > { %v1260_v55 = vmax.f32 %v1206_v38, 0.0  ;;  %v1261_v39 = vmax.f32 %v1240_v30, 0.0 }
 0x213   : > { %v1497_v15 = vmax.f32 %v1495_v61, %v1486_v63  ;;  %v1512_v6 = vmax.f32 %v1510_v14, %v1487_v1  ;;  %v5801_v1 = vld [vmem:[#allocation8 + $0xe0] sm:$0xf]  ;;  %v7447_v14 = vld [vmem:[#allocation8 + $0x1ec] sm:$0xf0] }
 0x214   : > { %v1270_v41 = vmax.f32 %v1268_v34, %v1260_v55  ;;  %v1285_v52 = vmax.f32 %v1283_v57, %v1261_v39  ;;  %v1262_v34 = vld [vmem:[#allocation2] sm:$0x3]  ;;  %v5929_v61 = vld [vmem:[#allocation8 + $0x1e0] sm:$0xf] }
 0x216   : > { %v1271_v53 = vmax.f32 %v1269_v40, %v1270_v41  ;;  %v1286_v44 = vmax.f32 %v1284_v51, %v1285_v52  ;;  %v1433_v45 = vpop.f32.mrf.mxu2  ;;  %v1467_v62 = vpop.f32.mrf.mxu3 }
 0x217   : > { %v1434_v4 = vadd.f32 %v1433_v45, %v8768_v54  ;;  %v1468_v5 = vadd.f32 %v1467_v62, %v8770_v58  ;;  %v8822_v11 = vpop.f32.mrf.mxu0  ;;  %v8824_v43 = vpop.f32.mrf.mxu1  ;;  %v1544_v45 = vld [vmem:[%s10150_s6 + $0x4] sm:$0x3] }
 0x218   : > { %v1272_v12 = vrot.slane %v1271_v53, 4  ;;  %v1287_v20 = vrot.slane %v1286_v44, 4 }
 0x219   : > { %v1488_v48 = vmax.f32 %v1434_v4, 0.0  ;;  %v1489_v49 = vmax.f32 %v1468_v5, 0.0  ;;  %v7415_v4 = vld [vmem:[#allocation8 + $0xec] sm:$0xf0] }
 0x21a   : > { %v1273_v50 = vmax.f32 %v1271_v53, %v1272_v12  ;;  %v1288_v13 = vmax.f32 %v1286_v44, %v1287_v20  ;;  %v5802_v5 = vor.u32 %v7415_v4, %v5801_v1  ;;  %v8859_v12 = vperm.slane %v1544_v45, 0  ;;  %v5753_v1 = vld [vmem:[#allocation8 + $0x80] sm:$0xf]  ;;  %v7403_v4 = vld [vmem:[#allocation8 + $0x8c] sm:$0xf0] }
 0x21b   : > { %v1498_v59 = vmax.f32 %v1496_v9, %v1488_v48  ;;  %v1513_v54 = vmax.f32 %v1511_v27, %v1489_v49  ;;  %v8861_v20 = vperm.slane %v1544_v45, 1  ;;  %v5930_v9 = vor.u32 %v7447_v14, %v5929_v61  ;;  %v6057_v27 = vld [vmem:[#allocation8 + $0x2e0] sm:$0xf]  ;;  %v7479_v48 = vld [vmem:[#allocation8 + $0x2ec] sm:$0xf0] }
 0x21c   : > { %v1274_v8 = vrot.slane %v1273_v50, 2  ;;  %v1289_v58 = vrot.slane %v1288_v13, 2  ;;  %v1772_v49 = vld [vmem:[%s10150_s6 + $0x6] sm:$0x3]  ;;  %3559 = vmatpush.bf16.msrb.mxu0 %v5802_v5  ;;  %v5881_v5 = vld [vmem:[#allocation8 + $0x180] sm:$0xf] }
 0x21d   : > { %v1499_v16 = vmax.f32 %v1497_v15, %v1498_v59  ;;  %v1514_v28 = vmax.f32 %v1512_v6, %v1513_v54  ;;  %v7511_v15 = vld [vmem:[#allocation8 + $0x3ec] sm:$0xf0]  ;;  %3572 = vmatpush.bf16.msrb.mxu1 %v5930_v9  ;;  %v5785_v59 = vld [vmem:[#allocation8 + $0xc0] sm:$0xf]  ;;  %v5754_v9 = vor.u32 %v7403_v4, %v5753_v1 }
 0x21e   : > { %v1275_v18 = vmax.f32 %v1273_v50, %v1274_v8  ;;  %v1290_v19 = vmax.f32 %v1288_v13, %v1289_v58  ;;  %v8826_v46 = vpop.f32.mrf.mxu2  ;;  %v8828_v21 = vpop.f32.mrf.mxu3  ;;  %v6058_v50 = vor.u32 %v7479_v48, %v6057_v27  ;;  %v6185_v13 = vld [vmem:[#allocation8 + $0x3e0] sm:$0xf]  ;;  %v7411_v54 = vld [vmem:[#allocation8 + $0xcc] sm:$0xf0] }
 0x21f   : > { %v1500_v47 = vrot.slane %v1499_v16, 4  ;;  %v1515_v22 = vrot.slane %v1514_v28, 4  ;;  %v8830_v23 = vpop.f32.mrf.mxu0  ;;  %v8832_v24 = vpop.f32.mrf.mxu1  ;;  %v6186_v6 = vor.u32 %v7511_v15, %v6185_v13  ;;  %v5913_v8 = vld [vmem:[#allocation8 + $0x1c0] sm:$0xf]  ;;  %v5786_v58 = vor.u32 %v7411_v54, %v5785_v59  ;;  %v7435_v27 = vld [vmem:[#allocation8 + $0x18c] sm:$0xf0] }
 0x220   : > { %v1276_v25 = vrot.slane %v1275_v18, 1  ;;  %v1291_v29 = vrot.slane %v1290_v19, 1  ;;  %3585 = vmatpush.bf16.msrb.mxu2 %v6058_v50  ;;  %v8898_v61 = vadd.f32 %v8830_v23, %v8859_v12  ;;  %v8902_v14 = vadd.f32 %v8832_v24, %v8861_v20  ;;  %v6009_v48 = vld [vmem:[#allocation8 + $0x280] sm:$0xf]  ;;  %v7499_v59 = vld [vmem:[#allocation8 + $0x38c] sm:$0xf0] }
 0x221   : > { %v1501_v38 = vmax.f32 %v1499_v16, %v1500_v47  ;;  %v1516_v30 = vmax.f32 %v1514_v28, %v1515_v22  ;;  %v7443_v16 = vld [vmem:[#allocation8 + $0x1cc] sm:$0xf0]  ;;  %v6041_v28 = vld [vmem:[#allocation8 + $0x2c0] sm:$0xf]  ;;  %3598 = vmatpush.bf16.msrb.mxu3 %v6186_v6  ;;  %3560 = vmatpush.bf16.msrb.mxu0 %v5786_v58  ;;  %v5882_v23 = vor.u32 %v7435_v27, %v5881_v5 }
 0x222   : > { %v1292_v31 = vmax.f32 %v1290_v19, %v1291_v29  ;;  %v1277_v33 = vmax.f32 %v1275_v18, %v1276_v25  ;;  %v7475_v18 = vld [vmem:[#allocation8 + $0x2cc] sm:$0xf0]  ;;  %v8866_v19 = vperm.slane %v1772_v49, 0  ;;  %v5914_v25 = vor.u32 %v7443_v16, %v5913_v8  ;;  %v6137_v24 = vld [vmem:[#allocation8 + $0x380] sm:$0xf] }
 0x223   : > { %v1502_v56 = vrot.slane %v1501_v38, 2  ;;  %v1517_v32 = vrot.slane %v1516_v30, 2  ;;  %v6042_v29 = vor.u32 %v7475_v18, %v6041_v28  ;;  %v6138_v28 = vor.u32 %v7499_v59, %v6137_v24  ;;  %v5737_v18 = vld [vmem:[#allocation8 + $0x60] sm:$0xf]  ;;  %v7395_v1 = vld [vmem:[#allocation8 + $0x4c] sm:$0xf0] }
 0x224   : > { %v1295_v57 = vrot.slane %v1292_v31, 7  ;;  %v8874_v31 = vadd.f32 %v8822_v11, %v8859_v12  ;;  %3573 = vmatpush.bf16.msrb.mxu1 %v5914_v25  ;;  %v7439_v11 = vld [vmem:[#allocation8 + $0x1ac] sm:$0xf0]  ;;  %v5849_v4 = vld [vmem:[#allocation8 + $0x140] sm:$0xf] }
 0x225   : > { %v1503_v55 = vmax.f32 %v1501_v38, %v1502_v56  ;;  %v1518_v39 = vmax.f32 %v1516_v30, %v1517_v32  ;;  %v6169_v38 = vld [vmem:[#allocation8 + $0x3c0] sm:$0xf]  ;;  %v7507_v30 = vld [vmem:[#allocation8 + $0x3cc] sm:$0xf0]  ;;  %v8878_v56 = vadd.f32 %v8824_v43, %v8861_v20  ;;  %3586 = vmatpush.bf16.msrb.mxu2 %v6042_v29  ;;  %v8888_v43 = vadd.f32 %v8826_v46, %v8866_v19 }
 0x226   : > { %v1296_v35 = vsel %vm1063_vm3, %v1277_v33, %v1295_v57  ;;  %v8835_v3 = vpop.f32.mrf.mxu2  ;;  %v8837_v37 = vpop.f32.mrf.mxu3  ;;  %v5769_v57 = vld [vmem:[#allocation8 + $0xa0] sm:$0xf]  ;;  %v7399_v25 = vld [vmem:[#allocation8 + $0x6c] sm:$0xf0] }
 0x227   : > { %v1298_v2 = vmax.f32 %v1262_v34, %v1296_v35  ;;  %v1504_v40 = vrot.slane %v1503_v55, 1  ;;  %v1519_v51 = vrot.slane %v1518_v39, 1  ;;  %v8839_v41 = vpop.f32.mrf.mxu0  ;;  %v8841_v52 = vpop.f32.mrf.mxu1  ;;  %v6170_v34 = vor.u32 %v7507_v30, %v6169_v38  ;;  %v5865_v29 = vld [vmem:[#allocation8 + $0x160] sm:$0xf]  ;;  %v7431_v30 = vld [vmem:[#allocation8 + $0x16c] sm:$0xf0] }
 0x228   : > { %v8884_v35 = vperm.slane %v1772_v49, 1  ;;  %v7467_v49 = vld [vmem:[#allocation8 + $0x28c] sm:$0xf0]  ;;  %v1926_v50 = vmax.f32 %v8888_v43, 0.0  ;;  %v8907_v13 = vadd.f32 %v8835_v3, %v8866_v19  ;;  %v8919_v8 = vadd.f32 %v8839_v41, %v8859_v12  ;;  %v6297_v43 = vld [vmem:[#allocation8 + $0x4c0] sm:$0xf] }
 0x229   : > { %1299 = vst.msk [vmem:[#allocation2] sm:$0x3] %vm8691_vm2, %v1298_v2  ;;  %v1520_v7 = vmax.f32 %v1518_v39, %v1519_v51  ;;  %v1505_v42 = vmax.f32 %v1503_v55, %v1504_v40  ;;  %v7407_v55 = vld [vmem:[#allocation8 + $0xac] sm:$0xf0]  ;;  %v5897_v39 = vld [vmem:[#allocation8 + $0x1a0] sm:$0xf]  ;;  %3599 = vmatpush.bf16.msrb.mxu3 %v6170_v34  ;;  %v6010_v6 = vor.u32 %v7467_v49, %v6009_v48 }
 0x22a   : > { %v5770_v2 = vor.u32 %v7407_v55, %v5769_v57  ;;  %v6025_v40 = vld [vmem:[#allocation8 + $0x2a0] sm:$0xf]  ;;  %v5898_v51 = vor.u32 %v7439_v11, %v5897_v39  ;;  %v8894_v46 = vadd.f32 %v8828_v21, %v8884_v35  ;;  %v8915_v54 = vadd.f32 %v8837_v37, %v8884_v35  ;;  %v7427_v48 = vld [vmem:[#allocation8 + $0x14c] sm:$0xf0] }
 0x22b   : > { %v1523_v0 = vrot.slane %v1520_v7, 7  ;;  %v7471_v7 = vld [vmem:[#allocation8 + $0x2ac] sm:$0xf0]  ;;  %v8923_v3 = vadd.f32 %v8841_v52, %v8861_v20  ;;  %v1700_v38 = vmax.f32 %v8898_v61, 0.0  ;;  %v5738_v41 = vor.u32 %v7399_v25, %v5737_v18  ;;  %v5993_v34 = vld [vmem:[#allocation8 + $0x260] sm:$0xf] }
 0x22c   : > { %3561 = vmatpush.bf16.msrb.mxu0 %v5770_v2  ;;  %3574 = vmatpush.bf16.msrb.mxu1 %v5898_v51  ;;  %v1927_v37 = vmax.f32 %v8894_v46, 0.0  ;;  %v1701_v52 = vmax.f32 %v8902_v14, 0.0  ;;  %v1928_v57 = vmax.f32 %v8907_v13, 0.0  ;;  %v5866_v39 = vor.u32 %v7431_v30, %v5865_v29  ;;  %v7463_v2 = vld [vmem:[#allocation8 + $0x26c] sm:$0xf0] }
 0x22d   : > { %v1524_v26 = vsel %vm1063_vm3, %v1505_v42, %v1523_v0  ;;  %v6153_v42 = vld [vmem:[#allocation8 + $0x3a0] sm:$0xf]  ;;  %v1699_v0 = vmax.f32 %v8878_v56, 0.0  ;;  %v1702_v51 = vmax.f32 %v8919_v8, 0.0  ;;  %v7539_v46 = vld [vmem:[#allocation8 + $0x4cc] sm:$0xf0] }
 0x22e   : > { %v1526_v36 = vmax.f32 %v1490_v60, %v1524_v26  ;;  %v8846_v53 = vpop.f32.mrf.mxu2  ;;  %v8848_v44 = vpop.f32.mrf.mxu3  ;;  %v1698_v60 = vmax.f32 %v8874_v31, 0.0  ;;  %v6026_v26 = vor.u32 %v7471_v7, %v6025_v40  ;;  %v6121_v11 = vld [vmem:[#allocation8 + $0x360] sm:$0xf]  ;;  %v1703_v7 = vmax.f32 %v8923_v3, 0.0 }
 0x22f   : > { %v8853_v62 = vpop.f32.mrf.mxu0  ;;  %v8855_v63 = vpop.f32.mrf.mxu1  ;;  %v8935_v55 = vadd.f32 %v8846_v53, %v8866_v19  ;;  %v8942_v53 = vadd.f32 %v8848_v44, %v8884_v35  ;;  %v5977_v49 = vld [vmem:[#allocation8 + $0x240] sm:$0xf] }
 0x230   : > { %1527 = vst.msk [vmem:[#allocation2 + $0x2] sm:$0x3] %vm8691_vm2, %v1526_v36  ;;  %v7503_v36 = vld [vmem:[#allocation8 + $0x3ac] sm:$0xf0]  ;;  %3587 = vmatpush.bf16.msrb.mxu2 %v6026_v26  ;;  %3562 = vmatpush.bf16.msrb.mxu0 %v5754_v9  ;;  %v8946_v5 = vadd.f32 %v8853_v62, %v8859_v12  ;;  %v8950_v9 = vadd.f32 %v8855_v63, %v8861_v20  ;;  %v6105_v18 = vld [vmem:[#allocation8 + $0x340] sm:$0xf] }
 0x231   : > { %v6154_v45 = vor.u32 %v7503_v36, %v6153_v42  ;;  %3575 = vmatpush.bf16.msrb.mxu1 %v5882_v23  ;;  %v5994_v42 = vor.u32 %v7463_v2, %v5993_v34  ;;  %v7495_v26 = vld [vmem:[#allocation8 + $0x36c] sm:$0xf0]  ;;  %v5850_v62 = vor.u32 %v7427_v48, %v5849_v4  ;;  %v6441_v40 = vld [vmem:[#allocation8 + $0x5e0] sm:$0xf] }
 0x232   : > { %v6122_v36 = vor.u32 %v7495_v26, %v6121_v11  ;;  %v7459_v23 = vld [vmem:[#allocation8 + $0x24c] sm:$0xf0]  ;;  %v5833_v11 = vld [vmem:[#allocation8 + $0x120] sm:$0xf] }
 0x233   : > { %3600 = vmatpush.bf16.msrb.mxu3 %v6154_v45  ;;  %v5721_v45 = vld [vmem:[#allocation8 + $0x40] sm:$0xf]  ;;  %v7491_v63 = vld [vmem:[#allocation8 + $0x34c] sm:$0xf0] }
 0x234   : > { %3588 = vmatpush.bf16.msrb.mxu2 %v6010_v6  ;;  %3563 = vmatpush.bf16.msrb.mxu0 %v5738_v41  ;;  %v5722_v27 = vor.u32 %v7395_v1, %v5721_v45  ;;  %v1930_v6 = vmax.f32 %v8935_v55, 0.0  ;;  %v6106_v34 = vor.u32 %v7491_v63, %v6105_v18  ;;  %v7391_v2 = vld [vmem:[#allocation8 + $0x2c] sm:$0xf0]  ;;  %v5689_v18 = vld [vmem:[#allocation8] sm:$0xf] }
 0x235   : > { %3576 = vmatpush.bf16.msrb.mxu1 %v5866_v39  ;;  %v5705_v39 = vld [vmem:[#allocation8 + $0x20] sm:$0xf]  ;;  %v7423_v26 = vld [vmem:[#allocation8 + $0x12c] sm:$0xf0] }
 0x236   : > { %v8868_v47 = vpop.f32.mrf.mxu2  ;;  %v8870_v22 = vpop.f32.mrf.mxu3  ;;  %v5834_v1 = vor.u32 %v7423_v26, %v5833_v11  ;;  %v7455_v4 = vld [vmem:[#allocation8 + $0x22c] sm:$0xf0]  ;;  %v9017_v31 = vmax.f32 %v1926_v50, %v1930_v6 }
 0x237   : > { %v8880_v32 = vpop.f32.mrf.mxu0  ;;  %v8882_v33 = vpop.f32.mrf.mxu1  ;;  %3601 = vmatpush.bf16.msrb.mxu3 %v6138_v28  ;;  %v8955_v24 = vadd.f32 %v8868_v47, %v8866_v19  ;;  %v5978_v28 = vor.u32 %v7459_v23, %v5977_v49  ;;  %v8961_v25 = vadd.f32 %v8870_v22, %v8884_v35  ;;  %v1931_v22 = vmax.f32 %v8942_v53, 0.0  ;;  %v7387_v63 = vld [vmem:[#allocation8 + $0xc] sm:$0xf0]  ;;  %v6073_v53 = vld [vmem:[#allocation8 + $0x300] sm:$0xf] }
 0x238   : > { %3589 = vmatpush.bf16.msrb.mxu2 %v5994_v42  ;;  %v8965_v29 = vadd.f32 %v8880_v32, %v8859_v12  ;;  %v8969_v47 = vadd.f32 %v8882_v33, %v8861_v20  ;;  %3564 = vmatpush.bf16.msrb.mxu0 %v5722_v27  ;;  %v1704_v42 = vmax.f32 %v8946_v5, 0.0  ;;  %v5706_v32 = vor.u32 %v7391_v2, %v5705_v39  ;;  %v6089_v27 = vld [vmem:[#allocation8 + $0x320] sm:$0xf]  ;;  %v7419_v26 = vld [vmem:[#allocation8 + $0x10c] sm:$0xf0] }
 0x239   : > { %3577 = vmatpush.bf16.msrb.mxu1 %v5850_v62  ;;  %v1705_v33 = vmax.f32 %v8950_v9, 0.0  ;;  %v1932_v45 = vmax.f32 %v8955_v24, 0.0  ;;  %v7487_v62 = vld [vmem:[#allocation8 + $0x32c] sm:$0xf0]  ;;  %v5817_v39 = vld [vmem:[#allocation8 + $0x100] sm:$0xf] }
 0x23a   : > { %v6313_v49 = vld [vmem:[#allocation8 + $0x4e0] sm:$0xf]  ;;  %v7575_v48 = vld [vmem:[#allocation8 + $0x5ec] sm:$0xf0] }
 0x23b   : > { %3602 = vmatpush.bf16.msrb.mxu3 %v6122_v36  ;;  %v5961_v36 = vld [vmem:[#allocation8 + $0x220] sm:$0xf]  ;;  %v6442_v8 = vor.u32 %v7575_v48, %v6441_v40  ;;  %v7639_v55 = vld [vmem:[#allocation8 + $0x7ec] sm:$0xf0] }
 0x23c   : > { %3590 = vmatpush.bf16.msrb.mxu2 %v5978_v28  ;;  %3565 = vmatpush.bf16.msrb.mxu0 %v5706_v32  ;;  %v5962_v23 = vor.u32 %v7455_v4, %v5961_v36  ;;  %v6090_v28 = vor.u32 %v7487_v62, %v6089_v27  ;;  %v5690_v32 = vor.u32 %v7387_v63, %v5689_v18  ;;  %v5945_v36 = vld [vmem:[#allocation8 + $0x200] sm:$0xf] }
 0x23d   : > { %3578 = vmatpush.bf16.msrb.mxu1 %v5834_v1  ;;  %v7451_v1 = vld [vmem:[#allocation8 + $0x20c] sm:$0xf0]  ;;  %v6425_v48 = vld [vmem:[#allocation8 + $0x5c0] sm:$0xf] }
 0x23e   : > { %v8909_v21 = vpop.f32.mrf.mxu2  ;;  %v8911_v15 = vpop.f32.mrf.mxu3  ;;  %v5946_v10 = vor.u32 %v7451_v1, %v5945_v36  ;;  %v9040_v36 = vmax.f32 %v1700_v38, %v1704_v42  ;;  %v6281_v42 = vld [vmem:[#allocation8 + $0x4a0] sm:$0xf] }
 0x23f   : > { %v8925_v58 = vpop.f32.mrf.mxu0  ;;  %v8927_v16 = vpop.f32.mrf.mxu1  ;;  %3603 = vmatpush.bf16.msrb.mxu3 %v6106_v34  ;;  %v8984_v34 = vadd.f32 %v8909_v21, %v8866_v19  ;;  %v8988_v2 = vadd.f32 %v8911_v15, %v8884_v35  ;;  %v5818_v15 = vor.u32 %v7419_v26, %v5817_v39  ;;  %v6697_v39 = vld [vmem:[#allocation8 + $0x7e0] sm:$0xf] }
 0x240   : > { %v8992_v11 = vadd.f32 %v8925_v58, %v8859_v12  ;;  %3591 = vmatpush.bf16.msrb.mxu2 %v5962_v23  ;;  %v8996_v4 = vadd.f32 %v8927_v16, %v8861_v20  ;;  %v7483_v58 = vld [vmem:[#allocation8 + $0x30c] sm:$0xf0]  ;;  %v9005_v23 = vmax.f32 %v1698_v60, %v1702_v51  ;;  %3566 = vmatpush.bf16.msrb.mxu0 %v5690_v32  ;;  %v6569_v51 = vld [vmem:[#allocation8 + $0x6e0] sm:$0xf] }
 0x241   : > { %v6074_v63 = vor.u32 %v7483_v58, %v6073_v53  ;;  %3579 = vmatpush.bf16.msrb.mxu1 %v5818_v15  ;;  %v7607_v53 = vld [vmem:[#allocation8 + $0x6ec] sm:$0xf0]  ;;  %v9021_v32 = vmax.f32 %v1927_v37, %v1931_v22  ;;  %v1934_v56 = vmax.f32 %v8984_v34, 0.0  ;;  %v6698_v6 = vor.u32 %v7639_v55, %v6697_v39  ;;  %v6553_v26 = vld [vmem:[#allocation8 + $0x6c0] sm:$0xf] }
 0x242   : > { %v6570_v3 = vor.u32 %v7607_v53, %v6569_v51  ;;  %v1708_v50 = vmax.f32 %v8992_v11, 0.0  ;;  %v6298_v22 = vor.u32 %v7539_v46, %v6297_v43  ;;  %v7603_v15 = vld [vmem:[#allocation8 + $0x6cc] sm:$0xf0]  ;;  %v6681_v58 = vld [vmem:[#allocation8 + $0x7c0] sm:$0xf] }
 0x243   : > { %3604 = vmatpush.bf16.msrb.mxu3 %v6090_v28  ;;  %v9011_v28 = vmax.f32 %v1699_v0, %v1703_v7  ;;  %v1935_v0 = vmax.f32 %v8988_v2, 0.0  ;;  %v1709_v7 = vmax.f32 %v8996_v4, 0.0  ;;  %v6554_v61 = vor.u32 %v7603_v15, %v6553_v26  ;;  %v7567_v39 = vld [vmem:[#allocation8 + $0x5ac] sm:$0xf0]  ;;  %v6265_v26 = vld [vmem:[#allocation8 + $0x480] sm:$0xf] }
 0x244   : > { %3592 = vmatpush.bf16.msrb.mxu2 %v5946_v10  ;;  %v7599_v55 = vld [vmem:[#allocation8 + $0x6ac] sm:$0xf0]  ;;  %v10187_v15 = vmax.f32 %v8915_v54, 0.0 }
 0x245   : > { %3624 = vmatpush.bf16.msra.mxu1 %v6442_v8  ;;  %v1948_v8 = vmax.f32 %v1928_v57, %v1932_v45  ;;  %v7631_v45 = vld [vmem:[#allocation8 + $0x7ac] sm:$0xf0] }
 0x246   : > { %v1879_v44 = vpop.f32.mrf.mxu2  ;;  %v8957_v59 = vpop.f32.mrf.mxu3  ;;  %v7591_v11 = vld [vmem:[#allocation8 + $0x66c] sm:$0xf0] }
 0x247   : > { %v8971_v41 = vpop.f32.mrf.mxu0  ;;  %v8973_v30 = vpop.f32.mrf.mxu1  ;;  %v8999_v21 = vadd.f32 %v1879_v44, %v8866_v19  ;;  %v7543_v44 = vld [vmem:[#allocation8 + $0x4ec] sm:$0xf0]  ;;  %3605 = vmatpush.bf16.msrb.mxu3 %v6074_v63  ;;  %v9030_v37 = vadd.f32 %v8957_v59, %v8884_v35 }
 0x248   : > { %v6314_v60 = vor.u32 %v7543_v44, %v6313_v49  ;;  %v9034_v10 = vadd.f32 %v8971_v41, %v8859_v12  ;;  %3637 = vmatpush.bf16.msra.mxu2 %v6570_v3  ;;  %v7571_v49 = vld [vmem:[#allocation8 + $0x5cc] sm:$0xf0]  ;;  %v9044_v59 = vadd.f32 %v8973_v30, %v8861_v20  ;;  %v6409_v30 = vld [vmem:[#allocation8 + $0x5a0] sm:$0xf] }
 0x249   : > { %v1936_v40 = vmax.f32 %v8999_v21, 0.0  ;;  %v6426_v41 = vor.u32 %v7571_v49, %v6425_v48  ;;  %v7635_v63 = vld [vmem:[#allocation8 + $0x7cc] sm:$0xf0]  ;;  %v6537_v3 = vld [vmem:[#allocation8 + $0x6a0] sm:$0xf]  ;;  %v1937_v9 = vmax.f32 %v9030_v37, 0.0  ;;  %v6410_v57 = vor.u32 %v7567_v39, %v6409_v30 }
 0x24a   : > { %3611 = vmatpush.bf16.msra.mxu0 %v6314_v60  ;;  %v6682_v38 = vor.u32 %v7635_v63, %v6681_v58  ;;  %v7535_v60 = vld [vmem:[#allocation8 + $0x4ac] sm:$0xf0]  ;;  %v1710_v14 = vmax.f32 %v9034_v10, 0.0  ;;  %v1711_v10 = vmax.f32 %v9044_v59, 0.0  ;;  %v10188_v63 = vmax.f32 %v8965_v29, 0.0 }
 0x24b   : > { %3650 = vmatpush.bf16.msra.mxu3 %v6698_v6  ;;  %v6282_v53 = vor.u32 %v7535_v60, %v6281_v42  ;;  %3625 = vmatpush.bf16.msra.mxu1 %v6426_v41  ;;  %v6538_v6 = vor.u32 %v7599_v55, %v6537_v3  ;;  %v10186_v41 = vmax.f32 %v8961_v25, 0.0  ;;  %v7531_v42 = vld [vmem:[#allocation8 + $0x48c] sm:$0xf0]  ;;  %v6393_v60 = vld [vmem:[#allocation8 + $0x580] sm:$0xf]  ;;  %v9108_v55 = vmax.f32 %v9021_v32, %v1935_v0 }
 0x24c   : > { %3638 = vmatpush.bf16.msra.mxu2 %v6554_v61  ;;  %v1721_v61 = vmax.f32 %v9005_v23, %v10188_v63  ;;  %v6266_v54 = vor.u32 %v7531_v42, %v6265_v26  ;;  %v7563_v29 = vld [vmem:[#allocation8 + $0x58c] sm:$0xf0]  ;;  %v6649_v3 = vld [vmem:[#allocation8 + $0x780] sm:$0xf]  ;;  %v1950_v34 = vmax.f32 %v1948_v8, %v1936_v40 }
 0x24d   : > { %v9085_v58 = vmax.f32 %v10187_v15, %v10186_v41  ;;  %v7595_v23 = vld [vmem:[#allocation8 + $0x68c] sm:$0xf0]  ;;  %v6633_v40 = vld [vmem:[#allocation8 + $0x760] sm:$0xf] }
 0x24e   : > { %v1882_v27 = vpop.f32.mrf.mxu2  ;;  %v1916_v62 = vpop.f32.mrf.mxu3  ;;  %3612 = vmatpush.bf16.msra.mxu0 %v6298_v22  ;;  %v7559_v0 = vld [vmem:[#allocation8 + $0x56c] sm:$0xf0]  ;;  %v6233_v15 = vld [vmem:[#allocation8 + $0x440] sm:$0xf] }
 0x24f   : > { %v1656_v18 = vpop.f32.mrf.mxu0  ;;  %v1690_v16 = vpop.f32.mrf.mxu1  ;;  %v9047_v1 = vadd.f32 %v1882_v27, %v8866_v19  ;;  %v9050_v44 = vadd.f32 %v1916_v62, %v8884_v35  ;;  %v1735_v27 = vmax.f32 %v1701_v52, %v1705_v33  ;;  %v6665_v33 = vld [vmem:[#allocation8 + $0x7a0] sm:$0xf]  ;;  %3651 = vmatpush.bf16.msra.mxu3 %v6682_v38  ;;  %3626 = vmatpush.bf16.msra.mxu1 %v6410_v57  ;;  %v7523_v63 = vld [vmem:[#allocation8 + $0x44c] sm:$0xf0] }
 0x250   : > { %v9053_v5 = vadd.f32 %v1656_v18, %v8859_v12  ;;  %v9064_v62 = vadd.f32 %v1690_v16, %v8861_v20  ;;  %v6666_v46 = vor.u32 %v7631_v45, %v6665_v33  ;;  %3639 = vmatpush.bf16.msra.mxu2 %v6538_v6  ;;  %v6249_v57 = vld [vmem:[#allocation8 + $0x460] sm:$0xf]  ;;  %v7527_v33 = vld [vmem:[#allocation8 + $0x46c] sm:$0xf0] }
 0x251   : > { %v1938_v22 = vmax.f32 %v9047_v1, 0.0  ;;  %v1939_v48 = vmax.f32 %v9050_v44, 0.0  ;;  %v6377_v45 = vld [vmem:[#allocation8 + $0x560] sm:$0xf]  ;;  %v6250_v32 = vor.u32 %v7527_v33, %v6249_v57 }
 0x252   : > { %v1712_v49 = vmax.f32 %v9053_v5, 0.0  ;;  %v1713_v38 = vmax.f32 %v9064_v62, 0.0  ;;  %3613 = vmatpush.bf16.msra.mxu0 %v6282_v53  ;;  %v10189_v5 = vmax.f32 %v8969_v47, 0.0  ;;  %v6394_v53 = vor.u32 %v7563_v29, %v6393_v60  ;;  %v7627_v47 = vld [vmem:[#allocation8 + $0x78c] sm:$0xf0] }
 0x253   : > { %3652 = vmatpush.bf16.msra.mxu3 %v6666_v46  ;;  %v6505_v6 = vld [vmem:[#allocation8 + $0x660] sm:$0xf]  ;;  %v6378_v21 = vor.u32 %v7559_v0, %v6377_v45  ;;  %v7583_v0 = vld [vmem:[#allocation8 + $0x62c] sm:$0xf0] }
 0x254   : > { %v1736_v30 = vmax.f32 %v9011_v28, %v10189_v5  ;;  %v9103_v28 = vmax.f32 %v9017_v31, %v1934_v56  ;;  %v1723_v31 = vmax.f32 %v1721_v61, %v1710_v14  ;;  %3627 = vmatpush.bf16.msra.mxu1 %v6394_v53  ;;  %v6506_v26 = vor.u32 %v7591_v11, %v6505_v6  ;;  %v6361_v61 = vld [vmem:[#allocation8 + $0x540] sm:$0xf]  ;;  %v7615_v11 = vld [vmem:[#allocation8 + $0x72c] sm:$0xf0] }
 0x255   : > { %v6489_v29 = vld [vmem:[#allocation8 + $0x640] sm:$0xf] }
 0x256   : > { %v1884_v18 = vpop.f32.mrf.mxu2  ;;  %v1918_v51 = vpop.f32.mrf.mxu3  ;;  %3614 = vmatpush.bf16.msra.mxu0 %v6266_v54  ;;  %v1738_v42 = vmax.f32 %v1736_v30, %v1711_v10  ;;  %v7555_v54 = vld [vmem:[#allocation8 + $0x54c] sm:$0xf0]  ;;  %v6601_v6 = vld [vmem:[#allocation8 + $0x720] sm:$0xf] }
 0x257   : > { %v9069_v52 = vadd.f32 %v1884_v18, %v8866_v19  ;;  %v1659_v24 = vpop.f32.mrf.mxu0  ;;  %v1693_v13 = vpop.f32.mrf.mxu1  ;;  %v9072_v16 = vadd.f32 %v1918_v51, %v8884_v35  ;;  %v6521_v18 = vld [vmem:[#allocation8 + $0x680] sm:$0xf]  ;;  %v7619_v10 = vld [vmem:[#allocation8 + $0x74c] sm:$0xf0] }
 0x258   : > { %v9075_v43 = vadd.f32 %v1659_v24, %v8859_v12  ;;  %v9096_v25 = vadd.f32 %v1693_v13, %v8861_v20  ;;  %v6522_v39 = vor.u32 %v7595_v23, %v6521_v18  ;;  %v1722_v24 = vmax.f32 %v9040_v36, %v1708_v50  ;;  %3628 = vmatpush.bf16.msra.mxu1 %v6378_v21  ;;  %v7519_v30 = vld [vmem:[#allocation8 + $0x42c] sm:$0xf0]  ;;  %v6201_v1 = vld [vmem:[#allocation8 + $0x400] sm:$0xf] }
 0x259   : > { %v1940_v59 = vmax.f32 %v9069_v52, 0.0  ;;  %v1941_v62 = vmax.f32 %v9072_v16, 0.0  ;;  %v6650_v13 = vor.u32 %v7627_v47, %v6649_v3  ;;  %v6362_v47 = vor.u32 %v7555_v54, %v6361_v61  ;;  %v7515_v52 = vld [vmem:[#allocation8 + $0x40c] sm:$0xf0]  ;;  %v6457_v21 = vld [vmem:[#allocation8 + $0x600] sm:$0xf] }
 0x25a   : > { %v1714_v51 = vmax.f32 %v9075_v43, 0.0  ;;  %v1737_v43 = vmax.f32 %v1735_v27, %v1709_v7  ;;  %v1715_v50 = vmax.f32 %v9096_v25, 0.0  ;;  %3640 = vmatpush.bf16.msra.mxu2 %v6522_v39  ;;  %v7623_v27 = vld [vmem:[#allocation8 + $0x76c] sm:$0xf0]  ;;  %v1724_v60 = vmax.f32 %v1722_v24, %v1712_v49  ;;  %3615 = vmatpush.bf16.msra.mxu0 %v6250_v32  ;;  %v6617_v39 = vld [vmem:[#allocation8 + $0x740] sm:$0xf] }
 0x25b   : > { %3653 = vmatpush.bf16.msra.mxu3 %v6650_v13  ;;  %v6634_v41 = vor.u32 %v7623_v27, %v6633_v40  ;;  %v6217_v49 = vld [vmem:[#allocation8 + $0x420] sm:$0xf]  ;;  %v6618_v45 = vor.u32 %v7619_v10, %v6617_v39  ;;  %v1952_v32 = vmax.f32 %v1950_v34, %v1940_v59  ;;  %v7579_v40 = vld [vmem:[#allocation8 + $0x60c] sm:$0xf0] }
 0x25c   : > { %v1739_v18 = vmax.f32 %v1737_v43, %v1713_v38  ;;  %v1725_v3 = vmax.f32 %v1723_v31, %v1714_v51  ;;  %v1740_v24 = vmax.f32 %v1738_v42, %v1715_v50  ;;  %v6345_v38 = vld [vmem:[#allocation8 + $0x520] sm:$0xf]  ;;  %v7551_v43 = vld [vmem:[#allocation8 + $0x52c] sm:$0xf0]  ;;  %v1951_v51 = vmax.f32 %v9103_v28, %v1938_v22  ;;  %3629 = vmatpush.bf16.msra.mxu1 %v6362_v47 }
 0x25d   : > { %v1966_v31 = vmax.f32 %v9108_v55, %v1939_v48  ;;  %v6329_v59 = vld [vmem:[#allocation8 + $0x500] sm:$0xf]  ;;  %v7547_v28 = vld [vmem:[#allocation8 + $0x50c] sm:$0xf0] }
 0x25e   : > { %v1887_v56 = vpop.f32.mrf.mxu2  ;;  %v1921_v2 = vpop.f32.mrf.mxu3  ;;  %3641 = vmatpush.bf16.msra.mxu2 %v6506_v26  ;;  %v7611_v26 = vld [vmem:[#allocation8 + $0x70c] sm:$0xf0]  ;;  %v6330_v61 = vor.u32 %v7547_v28, %v6329_v59  ;;  %v6187_v28 = vld [vmem:[#allocation8 + $0x3f0] sm:$0xf0] }
 0x25f   : > { %v9119_v36 = vadd.f32 %v1887_v56, %v8866_v19  ;;  %v9122_v46 = vadd.f32 %v1921_v2, %v8884_v35  ;;  %v1661_v4 = vpop.f32.mrf.mxu0  ;;  %v1695_v7 = vpop.f32.mrf.mxu1  ;;  %3654 = vmatpush.bf16.msra.mxu3 %v6634_v41  ;;  %v6473_v56 = vld [vmem:[#allocation8 + $0x620] sm:$0xf]  ;;  %v1965_v2 = vmax.f32 %v9085_v58, %v1937_v9  ;;  %v6218_v9 = vor.u32 %v7519_v30, %v6217_v49 }
 0x260   : > { %v1662_v8 = vadd.f32 %v1661_v4, %v8859_v12  ;;  %v1696_v14 = vadd.f32 %v1695_v7, %v8861_v20  ;;  %v6234_v12 = vor.u32 %v7523_v63, %v6233_v15  ;;  %v7587_v20 = vld [vmem:[#allocation8 + $0x64c] sm:$0xf0]  ;;  %v6346_v58 = vor.u32 %v7551_v43, %v6345_v38 }
 0x261   : > { %v1942_v5 = vmax.f32 %v9119_v36, 0.0  ;;  %v1943_v25 = vmax.f32 %v9122_v46, 0.0  ;;  %v6490_v13 = vor.u32 %v7587_v20, %v6489_v29  ;;  %v6474_v48 = vor.u32 %v7583_v0, %v6473_v56 }
 0x262   : > { %v1716_v23 = vmax.f32 %v1662_v8, 0.0  ;;  %v1717_v53 = vmax.f32 %v1696_v14, 0.0  ;;  %3616 = vmatpush.bf16.msra.mxu0 %v6234_v12  ;;  %v1967_v55 = vmax.f32 %v1965_v2, %v1941_v62  ;;  %v6602_v7 = vor.u32 %v7615_v11, %v6601_v6  ;;  %3630 = vmatpush.bf16.msra.mxu1 %v6346_v58 }
 0x263   : > { %3642 = vmatpush.bf16.msra.mxu2 %v6490_v13  ;;  %3655 = vmatpush.bf16.msra.mxu3 %v6618_v45  ;;  %v1953_v27 = vmax.f32 %v1951_v51, %v1942_v5  ;;  %v1968_v8 = vmax.f32 %v1966_v31, %v1943_v25  ;;  %v6202_v63 = vor.u32 %v7515_v52, %v6201_v1  ;;  %v6059_v1 = vld [vmem:[#allocation8 + $0x2f0] sm:$0xf0] }
 0x264   : > { %v1726_v57 = vmax.f32 %v1724_v60, %v1716_v23  ;;  %v1741_v33 = vmax.f32 %v1739_v18, %v1717_v53  ;;  %v6458_v62 = vor.u32 %v7579_v40, %v6457_v21  ;;  %v7409_v40 = vld [vmem:[#allocation8 + $0xc4] sm:$0xf] }
 0x266   : > { %v1727_v50 = vmax.f32 %v1725_v3, %v1726_v57  ;;  %v1742_v36 = vmax.f32 %v1740_v24, %v1741_v33  ;;  %v1889_v46 = vpop.f32.mrf.mxu2  ;;  %v1923_v37 = vpop.f32.mrf.mxu3  ;;  %3617 = vmatpush.bf16.msra.mxu0 %v6218_v9  ;;  %3631 = vmatpush.bf16.msra.mxu1 %v6330_v61  ;;  %v1718_v24 = vld [vmem:[#allocation2 + $0x4] sm:$0x3]  ;;  %v7477_v9 = vld [vmem:[#allocation8 + $0x2e4] sm:$0xf] }
 0x267   : > { %v1890_v22 = vadd.f32 %v1889_v46, %v8866_v19  ;;  %v1924_v44 = vadd.f32 %v1923_v37, %v8884_v35  ;;  %v6585_v35 = vld [vmem:[#allocation8 + $0x700] sm:$0xf]  ;;  %3643 = vmatpush.bf16.msra.mxu2 %v6474_v48  ;;  %3656 = vmatpush.bf16.msra.mxu3 %v6602_v7  ;;  %v7445_v46 = vld [vmem:[#allocation8 + $0x1e4] sm:$0xf]  ;;  %v5931_v37 = vld [vmem:[#allocation8 + $0x1f0] sm:$0xf0] }
 0x268   : > { %v1728_v34 = vrot.slane %v1727_v50, 4  ;;  %v1743_v4 = vrot.slane %v1742_v36, 4  ;;  %v6586_v29 = vor.u32 %v7611_v26, %v6585_v35  ;;  %v5915_v35 = vld [vmem:[#allocation8 + $0x1d0] sm:$0xf0]  ;;  %v7473_v26 = vld [vmem:[#allocation8 + $0x2c4] sm:$0xf] }
 0x269   : > { %v1944_v19 = vmax.f32 %v1890_v22, 0.0  ;;  %v1945_v14 = vmax.f32 %v1924_v44, 0.0  ;;  %v7509_v22 = vld [vmem:[#allocation8 + $0x3e4] sm:$0xf] }
 0x26a   : > { %v1729_v41 = vmax.f32 %v1727_v50, %v1728_v34  ;;  %v1744_v15 = vmax.f32 %v1742_v36, %v1743_v4  ;;  %3618 = vmatpush.bf16.msra.mxu0 %v6202_v63  ;;  %v7413_v50 = vld [vmem:[#allocation8 + $0xe4] sm:$0xf]  ;;  %v5803_v36 = vld [vmem:[#allocation8 + $0xf0] sm:$0xf0] }
 0x26b   : > { %v1954_v42 = vmax.f32 %v1952_v32, %v1944_v19  ;;  %v1969_v16 = vmax.f32 %v1967_v55, %v1945_v14  ;;  %3644 = vmatpush.bf16.msra.mxu2 %v6458_v62  ;;  %3657 = vmatpush.bf16.msra.mxu3 %v6586_v29  ;;  %v1946_v32 = vld [vmem:[#allocation2 + $0x6] sm:$0x3]  ;;  %v5806_v17 = vor.u32 %v7413_v50, %v5803_v36  ;;  %v7441_v14 = vld [vmem:[#allocation8 + $0x1c4] sm:$0xf]  ;;  %v6171_v63 = vld [vmem:[#allocation8 + $0x3d0] sm:$0xf0] }
 0x26c   : > { %v1730_v60 = vrot.slane %v1729_v41, 2  ;;  %v1745_v54 = vrot.slane %v1744_v15, 2  ;;  %v5934_v55 = vor.u32 %v7445_v46, %v5931_v37  ;;  %v6190_v19 = vor.u32 %v7509_v22, %v6187_v28  ;;  %v5771_v62 = vld [vmem:[#allocation8 + $0xb0] sm:$0xf0]  ;;  %v7437_v29 = vld [vmem:[#allocation8 + $0x1a4] sm:$0xf] }
 0x26d   : > { %v1955_v5 = vmax.f32 %v1953_v27, %v1954_v42  ;;  %v1970_v25 = vmax.f32 %v1968_v8, %v1969_v16  ;;  %v5787_v27 = vld [vmem:[#allocation8 + $0xd0] sm:$0xf0]  ;;  %v6062_v8 = vor.u32 %v7477_v9, %v6059_v1  ;;  %v5918_v42 = vor.u32 %v7441_v14, %v5915_v35  ;;  %v7405_v16 = vld [vmem:[#allocation8 + $0xa4] sm:$0xf] }
 0x26e   : > { %v1731_v18 = vmax.f32 %v1729_v41, %v1730_v60  ;;  %v1746_v23 = vmax.f32 %v1744_v15, %v1745_v54  ;;  %v6043_v41 = vld [vmem:[#allocation8 + $0x2d0] sm:$0xf0]  ;;  %v7505_v15 = vld [vmem:[#allocation8 + $0x3c4] sm:$0xf]  ;;  %v5790_v61 = vor.u32 %v7409_v40, %v5787_v27 }
 0x26f   : > { %v1956_v53 = vrot.slane %v1955_v5, 4  ;;  %v1971_v12 = vrot.slane %v1970_v25, 4  ;;  %v6046_v60 = vor.u32 %v7473_v26, %v6043_v41  ;;  %v6174_v54 = vor.u32 %v7505_v15, %v6171_v63  ;;  %v7461_v36 = vld [vmem:[#allocation8 + $0x264] sm:$0xf]  ;;  %v5995_v46 = vld [vmem:[#allocation8 + $0x270] sm:$0xf0] }
 0x270   : > { %v1732_v20 = vrot.slane %v1731_v18, 1  ;;  %v1747_v39 = vrot.slane %v1746_v23, 1  ;;  %v7493_v37 = vld [vmem:[#allocation8 + $0x364] sm:$0xf]  ;;  %v6123_v9 = vld [vmem:[#allocation8 + $0x370] sm:$0xf0] }
 0x271   : > { %v1957_v3 = vmax.f32 %v1955_v5, %v1956_v53  ;;  %v1972_v47 = vmax.f32 %v1970_v25, %v1971_v12  ;;  %v5899_v5 = vld [vmem:[#allocation8 + $0x1b0] sm:$0xf0]  ;;  %v7469_v25 = vld [vmem:[#allocation8 + $0x2a4] sm:$0xf]  ;;  %v5774_v12 = vor.u32 %v7405_v16, %v5771_v62 }
 0x272   : > { %v1748_v13 = vmax.f32 %v1746_v23, %v1747_v39  ;;  %v1733_v30 = vmax.f32 %v1731_v18, %v1732_v20  ;;  %v6027_v18 = vld [vmem:[#allocation8 + $0x2b0] sm:$0xf0]  ;;  %v7501_v23 = vld [vmem:[#allocation8 + $0x3a4] sm:$0xf]  ;;  %v5902_v20 = vor.u32 %v7437_v29, %v5899_v5 }
 0x273   : > { %v1958_v10 = vrot.slane %v1957_v3, 2  ;;  %v1973_v49 = vrot.slane %v1972_v47, 2  ;;  %v6155_v53 = vld [vmem:[#allocation8 + $0x3b0] sm:$0xf0]  ;;  %v7401_v39 = vld [vmem:[#allocation8 + $0x84] sm:$0xf] }
 0x274   : > { %v1751_v57 = vrot.slane %v1748_v13, 7  ;;  %v6158_v13 = vor.u32 %v7501_v23, %v6155_v53  ;;  %v5723_v28 = vld [vmem:[#allocation8 + $0x50] sm:$0xf0]  ;;  %v7425_v40 = vld [vmem:[#allocation8 + $0x144] sm:$0xf] }
 0x275   : > { %v1959_v33 = vmax.f32 %v1957_v3, %v1958_v10  ;;  %v1974_v45 = vmax.f32 %v1972_v47, %v1973_v49  ;;  %v5755_v3 = vld [vmem:[#allocation8 + $0x90] sm:$0xf0]  ;;  %v6030_v47 = vor.u32 %v7469_v25, %v6027_v18  ;;  %v7433_v10 = vld [vmem:[#allocation8 + $0x184] sm:$0xf] }
 0x276   : > { %v1752_v38 = vsel %vm1063_vm3, %v1733_v30, %v1751_v57  ;;  %v5883_v49 = vld [vmem:[#allocation8 + $0x190] sm:$0xf0]  ;;  %v7465_v30 = vld [vmem:[#allocation8 + $0x284] sm:$0xf] }
 0x277   : > { %v1754_v43 = vmax.f32 %v1718_v24, %v1752_v38  ;;  %v1960_v56 = vrot.slane %v1959_v33, 1  ;;  %v1975_v2 = vrot.slane %v1974_v45, 1  ;;  %v6011_v24 = vld [vmem:[#allocation8 + $0x290] sm:$0xf0]  ;;  %v7497_v57 = vld [vmem:[#allocation8 + $0x384] sm:$0xf] }
 0x278   : > { %v5739_v38 = vld [vmem:[#allocation8 + $0x70] sm:$0xf0]  ;;  %v7489_v14 = vld [vmem:[#allocation8 + $0x344] sm:$0xf] }
 0x279   : > { %1755 = vst.msk [vmem:[#allocation2 + $0x4] sm:$0x3] %vm8691_vm2, %v1754_v43  ;;  %v1976_v51 = vmax.f32 %v1974_v45, %v1975_v2  ;;  %v1961_v31 = vmax.f32 %v1959_v33, %v1960_v56  ;;  %v6139_v33 = vld [vmem:[#allocation8 + $0x390] sm:$0xf0]  ;;  %v7397_v45 = vld [vmem:[#allocation8 + $0x64] sm:$0xf]  ;;  %v5758_v43 = vor.u32 %v7401_v39, %v5755_v3  ;;  %v5886_v56 = vor.u32 %v7433_v10, %v5883_v49 }
 0x27a   : > { %v5742_v1 = vor.u32 %v7397_v45, %v5739_v38  ;;  %v5851_v27 = vld [vmem:[#allocation8 + $0x150] sm:$0xf0]  ;;  %v7389_v15 = vld [vmem:[#allocation8 + $0x24] sm:$0xf] }
 0x27b   : > { %v1979_v0 = vrot.slane %v1976_v51, 7  ;;  %v6107_v35 = vld [vmem:[#allocation8 + $0x350] sm:$0xf0]  ;;  %v5854_v41 = vor.u32 %v7425_v40, %v5851_v27  ;;  %v7421_v16 = vld [vmem:[#allocation8 + $0x124] sm:$0xf] }
 0x27c   : > { %v5707_v63 = vld [vmem:[#allocation8 + $0x30] sm:$0xf0]  ;;  %v7485_v29 = vld [vmem:[#allocation8 + $0x324] sm:$0xf] }
 0x27d   : > { %v1980_v6 = vsel %vm1063_vm3, %v1961_v31, %v1979_v0  ;;  %v7429_v31 = vld [vmem:[#allocation8 + $0x164] sm:$0xf]  ;;  %v6014_v0 = vor.u32 %v7465_v30, %v6011_v24  ;;  %v5835_v62 = vld [vmem:[#allocation8 + $0x130] sm:$0xf0]  ;;  %v5710_v18 = vor.u32 %v7389_v15, %v5707_v63 }
 0x27e   : > { %v1982_v11 = vmax.f32 %v1946_v32, %v1980_v6  ;;  %v5867_v32 = vld [vmem:[#allocation8 + $0x170] sm:$0xf0]  ;;  %v6142_v6 = vor.u32 %v7497_v57, %v6139_v33  ;;  %v7385_v25 = vld [vmem:[#allocation8 + $0x4] sm:$0xf]  ;;  %v5838_v23 = vor.u32 %v7421_v16, %v5835_v62 }
 0x27f   : > { %v5870_v22 = vor.u32 %v7429_v31, %v5867_v32  ;;  %v6091_v5 = vld [vmem:[#allocation8 + $0x330] sm:$0xf0]  ;;  %v7481_v10 = vld [vmem:[#allocation8 + $0x304] sm:$0xf] }
 0x280   : > { %1983 = vst.msk [vmem:[#allocation2 + $0x6] sm:$0x3] %vm8691_vm2, %v1982_v11  ;;  %v5691_v53 = vld [vmem:[#allocation8 + $0x10] sm:$0xf0]  ;;  %v6094_v3 = vor.u32 %v7485_v29, %v6091_v5  ;;  %v7541_v30 = vld [vmem:[#allocation8 + $0x4e4] sm:$0xf] }
 0x281   : > { %v6075_v49 = vld [vmem:[#allocation8 + $0x310] sm:$0xf0]  ;;  %v7573_v57 = vld [vmem:[#allocation8 + $0x5e4] sm:$0xf]  ;;  %v5694_v38 = vor.u32 %v7385_v25, %v5691_v53 }
 0x282   : > { %v6315_v24 = vld [vmem:[#allocation8 + $0x4f0] sm:$0xf0]  ;;  %v7605_v45 = vld [vmem:[#allocation8 + $0x6e4] sm:$0xf]  ;;  %v6078_v32 = vor.u32 %v7481_v10, %v6075_v49 }
 0x283   : > { %v6443_v33 = vld [vmem:[#allocation8 + $0x5f0] sm:$0xf0]  ;;  %v7533_v40 = vld [vmem:[#allocation8 + $0x4a4] sm:$0xf] }
 0x284   : > { %v6283_v27 = vld [vmem:[#allocation8 + $0x4b0] sm:$0xf0]  ;;  %v7629_v15 = vld [vmem:[#allocation8 + $0x7a4] sm:$0xf] }
 0x285   : > { %v6667_v63 = vld [vmem:[#allocation8 + $0x7b0] sm:$0xf0]  ;;  %v7529_v16 = vld [vmem:[#allocation8 + $0x484] sm:$0xf] }
 0x286   : > { %v6267_v62 = vld [vmem:[#allocation8 + $0x490] sm:$0xf0]  ;;  %v7561_v29 = vld [vmem:[#allocation8 + $0x584] sm:$0xf] }
 0x287   : > { %v9149_v58 = vld [vmem:[#allocation2] sm:$0xff]  ;;  %v7593_v25 = vld [vmem:[#allocation8 + $0x684] sm:$0xf] }
 0x288   : > { %v1989_v44 = vperm.slane %v9149_v58, 0  ;;  %v1990_v48 = vperm.slane %v9149_v58, 1  ;;  %v1991_v52 = vperm.slane %v9149_v58, 2  ;;  %v1992_v59 = vperm.slane %v9149_v58, 3  ;;  %v6395_v5 = vld [vmem:[#allocation8 + $0x590] sm:$0xf0] }
 0x289   : > { %v1993_v2 = vperm.slane %v9149_v58, 4  ;;  %v1994_v51 = vperm.slane %v9149_v58, 5  ;;  %v1995_v11 = vperm.slane %v9149_v58, 6  ;;  %v1996_v50 = vperm.slane %v9149_v58, 7  ;;  %v6651_v53 = vld [vmem:[#allocation8 + $0x790] sm:$0xf0] }
 0x28a   : > { %v9155_v34 = vpack.c.bf16 %v1989_v44, %v1989_v44  ;;  %v9157_v4 = vpack.c.bf16 %v1990_v48, %v1990_v48  ;;  %v9159_v7 = vpack.c.bf16 %v1991_v52, %v1991_v52  ;;  %v9161_v21 = vpack.c.bf16 %v1992_v59, %v1992_v59  ;;  %v7393_v59 = vld [vmem:[#allocation8 + $0x44] sm:$0xf]  ;;  %v6379_v49 = vld [vmem:[#allocation8 + $0x570] sm:$0xf0] }
 0x28b   : > { %v9171_v44 = vpack.c.bf16 %v1993_v2, %v1993_v2  ;;  %v9173_v48 = vpack.c.bf16 %v1994_v51, %v1994_v51  ;;  %v5998_v52 = vor.u32 %v7461_v36, %v5995_v46  ;;  %v9177_v58 = vpack.c.bf16 %v1996_v50, %v1996_v50  ;;  %v7637_v2 = vld [vmem:[#allocation8 + $0x7e4] sm:$0xf]  ;;  %v6699_v51 = vld [vmem:[#allocation8 + $0x7f0] sm:$0xf0] }
 0x28c   : > { %3567 = vmatmul.bf16.vlgmr.msrb.gmra.mxu0 %v9155_v34  ;;  %3580 = vmatmul.bf16.vlgmr.msrb.gmra.mxu1 %v9157_v4  ;;  %v5726_v26 = vor.u32 %v7393_v59, %v5723_v28  ;;  %v6299_v50 = vld [vmem:[#allocation8 + $0x4d0] sm:$0xf0]  ;;  %v6702_v46 = vor.u32 %v7637_v2, %v6699_v51  ;;  %v7557_v10 = vld [vmem:[#allocation8 + $0x564] sm:$0xf] }
 0x28d   : > { %3593 = vmatmul.bf16.vlgmr.msrb.gmra.mxu2 %v9159_v7  ;;  %3606 = vmatmul.bf16.vlgmr.msrb.gmra.mxu3 %v9161_v21  ;;  %v6683_v59 = vld [vmem:[#allocation8 + $0x7d0] sm:$0xf0] }
 0x28e   : > { %3663 = vmatpush.bf16.msrb.mxu0 %v5806_v17  ;;  %3676 = vmatpush.bf16.msrb.mxu1 %v5934_v55  ;;  %v9175_v17 = vpack.c.bf16 %v1995_v11, %v1995_v11  ;;  %v6126_v55 = vor.u32 %v7493_v37, %v6123_v9  ;;  %v7537_v11 = vld [vmem:[#allocation8 + $0x4c4] sm:$0xf]  ;;  %v6427_v9 = vld [vmem:[#allocation8 + $0x5d0] sm:$0xf0] }
 0x28f   : > { %3689 = vmatpush.bf16.msrb.mxu2 %v6062_v8  ;;  %3702 = vmatpush.bf16.msrb.mxu3 %v6190_v19  ;;  %v7457_v8 = vld [vmem:[#allocation8 + $0x244] sm:$0xf]  ;;  %v5979_v19 = vld [vmem:[#allocation8 + $0x250] sm:$0xf0]  ;;  %v6302_v28 = vor.u32 %v7537_v11, %v6299_v50 }
 0x290   : > { %v7569_v37 = vld [vmem:[#allocation8 + $0x5c4] sm:$0xf]  ;;  %v6619_v50 = vld [vmem:[#allocation8 + $0x750] sm:$0xf0] }
 0x291   : > { %v7617_v11 = vld [vmem:[#allocation8 + $0x744] sm:$0xf] }
 0x292   : > { %3664 = vmatpush.bf16.msrb.mxu0 %v5790_v61  ;;  %3677 = vmatpush.bf16.msrb.mxu1 %v5918_v42  ;;  %v5982_v61 = vor.u32 %v7457_v8, %v5979_v19  ;;  %v6110_v42 = vor.u32 %v7489_v14, %v6107_v35  ;;  %v7565_v14 = vld [vmem:[#allocation8 + $0x5a4] sm:$0xf]  ;;  %v6411_v35 = vld [vmem:[#allocation8 + $0x5b0] sm:$0xf0] }
 0x293   : > { %3690 = vmatpush.bf16.msrb.mxu2 %v6046_v60  ;;  %3703 = vmatpush.bf16.msrb.mxu3 %v6174_v54  ;;  %v7453_v60 = vld [vmem:[#allocation8 + $0x224] sm:$0xf]  ;;  %v5963_v54 = vld [vmem:[#allocation8 + $0x230] sm:$0xf0] }
 0x294   : > { %v5966_v39 = vor.u32 %v7453_v60, %v5963_v54  ;;  %v6670_v54 = vor.u32 %v7629_v15, %v6667_v63 }
 0x296   : > { %3665 = vmatpush.bf16.msrb.mxu0 %v5774_v12  ;;  %3678 = vmatpush.bf16.msrb.mxu1 %v5902_v20  ;;  %v7417_v12 = vld [vmem:[#allocation8 + $0x104] sm:$0xf]  ;;  %v5819_v20 = vld [vmem:[#allocation8 + $0x110] sm:$0xf0] }
 0x297   : > { %3691 = vmatpush.bf16.msrb.mxu2 %v6030_v47  ;;  %3704 = vmatpush.bf16.msrb.mxu3 %v6158_v13  ;;  %v7449_v47 = vld [vmem:[#allocation8 + $0x204] sm:$0xf]  ;;  %v5947_v13 = vld [vmem:[#allocation8 + $0x210] sm:$0xf0] }
 0x298   : > { %v5950_v31 = vor.u32 %v7449_v47, %v5947_v13 }
 0x29a   : > { %3666 = vmatpush.bf16.msrb.mxu0 %v5758_v43  ;;  %3679 = vmatpush.bf16.msrb.mxu1 %v5886_v56  ;;  %v5822_v43 = vor.u32 %v7417_v12, %v5819_v20  ;;  %v6571_v56 = vld [vmem:[#allocation8 + $0x6f0] sm:$0xf0]  ;;  %v6270_v12 = vor.u32 %v7529_v16, %v6267_v62  ;;  %v6398_v20 = vor.u32 %v7561_v29, %v6395_v5  ;;  %v7609_v16 = vld [vmem:[#allocation8 + $0x704] sm:$0xf]  ;;  %v5937_v29 = vld [vmem:[#allocation8 + $0x1e8] sm:$0xf] }
 0x29b   : > { %3692 = vmatpush.bf16.msrb.mxu2 %v6014_v0  ;;  %3705 = vmatpush.bf16.msrb.mxu3 %v6142_v6  ;;  %v6318_v0 = vor.u32 %v7541_v30, %v6315_v24  ;;  %v6446_v6 = vor.u32 %v7573_v57, %v6443_v33  ;;  %v6574_v36 = vor.u32 %v7605_v45, %v6571_v56  ;;  %v7589_v30 = vld [vmem:[#allocation8 + $0x664] sm:$0xf]  ;;  %v6507_v24 = vld [vmem:[#allocation8 + $0x670] sm:$0xf0]  ;;  %v7448_v5 = vld [vmem:[#allocation8 + $0x1f4] sm:$0xf0] }
 0x29c   : > { %3619 = vmatmul.bf16.vlgmr.msra.gmra.mxu0 %v9171_v44  ;;  %3632 = vmatmul.bf16.vlgmr.msra.gmra.mxu1 %v9173_v48  ;;  %v7621_v57 = vld [vmem:[#allocation8 + $0x764] sm:$0xf]  ;;  %v6635_v33 = vld [vmem:[#allocation8 + $0x770] sm:$0xf0]  ;;  %v6510_v2 = vor.u32 %v7589_v30, %v6507_v24 }
 0x29d   : > { %3645 = vmatmul.bf16.vlgmr.msra.gmra.mxu2 %v9175_v17  ;;  %3658 = vmatmul.bf16.vlgmr.msra.gmra.mxu3 %v9177_v58  ;;  %v6235_v56 = vld [vmem:[#allocation8 + $0x450] sm:$0xf0]  ;;  %v6638_v51 = vor.u32 %v7621_v57, %v6635_v33  ;;  %v5921_v57 = vld [vmem:[#allocation8 + $0x1c8] sm:$0xf]  ;;  %v7444_v33 = vld [vmem:[#allocation8 + $0x1d4] sm:$0xf0] }
 0x29e   : > { %3667 = vmatpush.bf16.msrb.mxu0 %v5742_v1  ;;  %3680 = vmatpush.bf16.msrb.mxu1 %v5870_v22  ;;  %v7601_v1 = vld [vmem:[#allocation8 + $0x6c4] sm:$0xf]  ;;  %v6555_v22 = vld [vmem:[#allocation8 + $0x6d0] sm:$0xf0] }
 0x29f   : > { %3693 = vmatpush.bf16.msrb.mxu2 %v5998_v52  ;;  %3706 = vmatpush.bf16.msrb.mxu3 %v6126_v55  ;;  %v7633_v52 = vld [vmem:[#allocation8 + $0x7c4] sm:$0xf]  ;;  %v6430_v55 = vor.u32 %v7569_v37, %v6427_v9  ;;  %v6558_v8 = vor.u32 %v7601_v1, %v6555_v22  ;;  %v6219_v9 = vld [vmem:[#allocation8 + $0x430] sm:$0xf0]  ;;  %v6622_v22 = vor.u32 %v7617_v11, %v6619_v50  ;;  %v5905_v11 = vld [vmem:[#allocation8 + $0x1a8] sm:$0xf] }
 0x2a0   : > { %v6686_v19 = vor.u32 %v7633_v52, %v6683_v59  ;;  %v7517_v37 = vld [vmem:[#allocation8 + $0x424] sm:$0xf]  ;;  %v6347_v59 = vld [vmem:[#allocation8 + $0x530] sm:$0xf0]  ;;  %v7440_v50 = vld [vmem:[#allocation8 + $0x1b4] sm:$0xf0] }
 0x2a1   : > { %v7549_v52 = vld [vmem:[#allocation8 + $0x524] sm:$0xf]  ;;  %v6587_v62 = vld [vmem:[#allocation8 + $0x710] sm:$0xf0] }
 0x2a2   : > { %3668 = vmatpush.bf16.msrb.mxu0 %v5726_v26  ;;  %3681 = vmatpush.bf16.msrb.mxu1 %v5854_v41  ;;  %v7597_v26 = vld [vmem:[#allocation8 + $0x6a4] sm:$0xf]  ;;  %v6539_v41 = vld [vmem:[#allocation8 + $0x6b0] sm:$0xf0] }
 0x2a3   : > { %3694 = vmatpush.bf16.msrb.mxu2 %v5982_v61  ;;  %3707 = vmatpush.bf16.msrb.mxu3 %v6110_v42  ;;  %v6286_v61 = vor.u32 %v7533_v40, %v6283_v27  ;;  %v6414_v42 = vor.u32 %v7565_v14, %v6411_v35  ;;  %v6542_v60 = vor.u32 %v7597_v26, %v6539_v41  ;;  %v7613_v40 = vld [vmem:[#allocation8 + $0x724] sm:$0xf]  ;;  %v6603_v27 = vld [vmem:[#allocation8 + $0x730] sm:$0xf0] }
 0x2a4   : > { %v6350_v14 = vor.u32 %v7549_v52, %v6347_v59  ;;  %v6203_v35 = vld [vmem:[#allocation8 + $0x410] sm:$0xf0]  ;;  %v7545_v26 = vld [vmem:[#allocation8 + $0x504] sm:$0xf]  ;;  %v6606_v63 = vor.u32 %v7613_v40, %v6603_v27  ;;  %v5761_v52 = vld [vmem:[#allocation8 + $0x88] sm:$0xf] }
 0x2a5   : > { %v6331_v41 = vld [vmem:[#allocation8 + $0x510] sm:$0xf0]  ;;  %v7404_v59 = vld [vmem:[#allocation8 + $0x94] sm:$0xf0]  ;;  %v5889_v40 = vld [vmem:[#allocation8 + $0x188] sm:$0xf] }
 0x2a6   : > { %3669 = vmatpush.bf16.msrb.mxu0 %v5710_v18  ;;  %3682 = vmatpush.bf16.msrb.mxu1 %v5838_v23  ;;  %v6523_v18 = vld [vmem:[#allocation8 + $0x690] sm:$0xf0]  ;;  %v7625_v23 = vld [vmem:[#allocation8 + $0x784] sm:$0xf]  ;;  %v7436_v27 = vld [vmem:[#allocation8 + $0x194] sm:$0xf0] }
 0x2a7   : > { %3695 = vmatpush.bf16.msrb.mxu2 %v5966_v39  ;;  %3708 = vmatpush.bf16.msrb.mxu3 %v6094_v3  ;;  %v7525_v39 = vld [vmem:[#allocation8 + $0x464] sm:$0xf]  ;;  %v6251_v3 = vld [vmem:[#allocation8 + $0x470] sm:$0xf0]  ;;  %v6526_v47 = vor.u32 %v7593_v25, %v6523_v18  ;;  %v6654_v13 = vor.u32 %v7625_v23, %v6651_v53  ;;  %v6065_v25 = vld [vmem:[#allocation8 + $0x2e8] sm:$0xf]  ;;  %v6334_v23 = vor.u32 %v7545_v26, %v6331_v41 }
 0x2a8   : > { %v6254_v45 = vor.u32 %v7525_v39, %v6251_v3  ;;  %v7480_v53 = vld [vmem:[#allocation8 + $0x2f4] sm:$0xf0]  ;;  %v6590_v3 = vor.u32 %v7609_v16, %v6587_v62  ;;  %v5762_v26 = vor.u32 %v7404_v59, %v5761_v52  ;;  %v5890_v41 = vor.u32 %v7436_v27, %v5889_v40  ;;  %v5873_v16 = vld [vmem:[#allocation8 + $0x168] sm:$0xf] }
 0x2a9   : > { %v6066_v30 = vor.u32 %v7480_v53, %v6065_v25  ;;  %v7432_v62 = vld [vmem:[#allocation8 + $0x174] sm:$0xf0]  ;;  %v6081_v52 = vld [vmem:[#allocation8 + $0x308] sm:$0xf] }
 0x2aa   : > { %3670 = vmatpush.bf16.msrb.mxu0 %v5694_v38  ;;  %3683 = vmatpush.bf16.msrb.mxu1 %v5822_v43  ;;  %v6382_v38 = vor.u32 %v7557_v10, %v6379_v49  ;;  %v7521_v43 = vld [vmem:[#allocation8 + $0x444] sm:$0xf]  ;;  %v5793_v10 = vld [vmem:[#allocation8 + $0xc8] sm:$0xf]  ;;  %v7412_v49 = vld [vmem:[#allocation8 + $0xd4] sm:$0xf0] }
 0x2ab   : > { %3696 = vmatpush.bf16.msrb.mxu2 %v5950_v31  ;;  %3709 = vmatpush.bf16.msrb.mxu3 %v6078_v32  ;;  %v7553_v31 = vld [vmem:[#allocation8 + $0x544] sm:$0xf]  ;;  %v6363_v32 = vld [vmem:[#allocation8 + $0x550] sm:$0xf0]  ;;  %v7396_v53 = vld [vmem:[#allocation8 + $0x54] sm:$0xf0] }
 0x2ac   : > { %v7484_v59 = vld [vmem:[#allocation8 + $0x314] sm:$0xf0]  ;;  %v6449_v40 = vld [vmem:[#allocation8 + $0x5e8] sm:$0xf] }
 0x2ad   : > { %3671 = vmatmul.bf16.vlgmr.msrb.gmra.mxu0 %v9155_v34  ;;  %3684 = vmatmul.bf16.vlgmr.msrb.gmra.mxu1 %v9157_v4  ;;  %v7576_v27 = vld [vmem:[#allocation8 + $0x5f4] sm:$0xf0] }
 0x2ae   : > { %3715 = vmatpush.bf16.msra.mxu0 %v6318_v0  ;;  %3728 = vmatpush.bf16.msra.mxu1 %v6446_v6  ;;  %v7585_v0 = vld [vmem:[#allocation8 + $0x644] sm:$0xf]  ;;  %v6491_v6 = vld [vmem:[#allocation8 + $0x650] sm:$0xf0] }
 0x2af   : > { %3741 = vmatpush.bf16.msra.mxu2 %v6574_v36  ;;  %3754 = vmatpush.bf16.msra.mxu3 %v6702_v46  ;;  %v6238_v36 = vor.u32 %v7521_v43, %v6235_v56  ;;  %v6366_v46 = vor.u32 %v7553_v31, %v6363_v32  ;;  %v6494_v1 = vor.u32 %v7585_v0, %v6491_v6  ;;  %v6177_v43 = vld [vmem:[#allocation8 + $0x3c8] sm:$0xf]  ;;  %v7508_v56 = vld [vmem:[#allocation8 + $0x3d4] sm:$0xf0] }
 0x2b0   : > { %3697 = vmatmul.bf16.vlgmr.msrb.gmra.mxu2 %v9159_v7  ;;  %3710 = vmatmul.bf16.vlgmr.msrb.gmra.mxu3 %v9161_v21  ;;  %v5777_v31 = vld [vmem:[#allocation8 + $0xa8] sm:$0xf]  ;;  %v7408_v32 = vld [vmem:[#allocation8 + $0xb4] sm:$0xf0]  ;;  %v6178_v6 = vor.u32 %v7508_v56, %v6177_v43 }
 0x2b1   : > { %v5841_v43 = vld [vmem:[#allocation8 + $0x128] sm:$0xf]  ;;  %v7424_v56 = vld [vmem:[#allocation8 + $0x134] sm:$0xf0] }
 0x2b2   : > { %3716 = vmatpush.bf16.msra.mxu0 %v6302_v28  ;;  %3729 = vmatpush.bf16.msra.mxu1 %v6430_v55  ;;  %v7581_v28 = vld [vmem:[#allocation8 + $0x624] sm:$0xf]  ;;  %v6475_v55 = vld [vmem:[#allocation8 + $0x630] sm:$0xf0] }
 0x2b3   : > { %3742 = vmatpush.bf16.msra.mxu2 %v6558_v8  ;;  %3755 = vmatpush.bf16.msra.mxu3 %v6686_v19  ;;  %v7513_v8 = vld [vmem:[#allocation8 + $0x404] sm:$0xf]  ;;  %v6222_v19 = vor.u32 %v7517_v37, %v6219_v9  ;;  %v6478_v15 = vor.u32 %v7581_v28, %v6475_v55  ;;  %v6161_v37 = vld [vmem:[#allocation8 + $0x3a8] sm:$0xf]  ;;  %v7504_v9 = vld [vmem:[#allocation8 + $0x3b4] sm:$0xf0] }
 0x2b4   : > { %v6206_v18 = vor.u32 %v7513_v8, %v6203_v35  ;;  %v6162_v55 = vor.u32 %v7504_v9, %v6161_v37  ;;  %v6017_v8 = vld [vmem:[#allocation8 + $0x288] sm:$0xf]  ;;  %v7500_v35 = vld [vmem:[#allocation8 + $0x394] sm:$0xf0] }
 0x2b6   : > { %3717 = vmatpush.bf16.msra.mxu0 %v6286_v61  ;;  %3730 = vmatpush.bf16.msra.mxu1 %v6414_v42  ;;  %v7577_v61 = vld [vmem:[#allocation8 + $0x604] sm:$0xf]  ;;  %v6459_v42 = vld [vmem:[#allocation8 + $0x610] sm:$0xf0] }
 0x2b7   : > { %3743 = vmatpush.bf16.msra.mxu2 %v6542_v60  ;;  %3756 = vmatpush.bf16.msra.mxu3 %v6670_v54  ;;  %v5809_v60 = vld [vmem:[#allocation8 + $0xe8] sm:$0xf]  ;;  %v7416_v54 = vld [vmem:[#allocation8 + $0xf4] sm:$0xf0]  ;;  %v6462_v39 = vor.u32 %v7577_v61, %v6459_v42 }
 0x2ba   : > { %3718 = vmatpush.bf16.msra.mxu0 %v6270_v12  ;;  %3731 = vmatpush.bf16.msra.mxu1 %v6398_v20  ;;  %v6193_v12 = vld [vmem:[#allocation8 + $0x3e8] sm:$0xf]  ;;  %v7512_v20 = vld [vmem:[#allocation8 + $0x3f4] sm:$0xf0] }
 0x2bb   : > { %3744 = vmatpush.bf16.msra.mxu2 %v6526_v47  ;;  %3757 = vmatpush.bf16.msra.mxu3 %v6654_v13  ;;  %v5810_v47 = vor.u32 %v7416_v54, %v5809_v60  ;;  %v5938_v13 = vor.u32 %v7448_v5, %v5937_v29  ;;  %v6194_v24 = vor.u32 %v7512_v20, %v6193_v12  ;;  %v6001_v60 = vld [vmem:[#allocation8 + $0x268] sm:$0xf]  ;;  %v7464_v54 = vld [vmem:[#allocation8 + $0x274] sm:$0xf0] }
 0x2bc   : > { %v6129_v29 = vld [vmem:[#allocation8 + $0x368] sm:$0xf]  ;;  %v7496_v5 = vld [vmem:[#allocation8 + $0x374] sm:$0xf0]  ;;  %v6002_v12 = vor.u32 %v7464_v54, %v6001_v60 }
 0x2bd   : > { %v6130_v20 = vor.u32 %v7496_v5, %v6129_v29  ;;  %v6433_v29 = vld [vmem:[#allocation8 + $0x5c8] sm:$0xf]  ;;  %v7572_v5 = vld [vmem:[#allocation8 + $0x5d4] sm:$0xf0] }
 0x2be   : > { %3719 = vmatpush.bf16.msra.mxu0 %v6254_v45  ;;  %3732 = vmatpush.bf16.msra.mxu1 %v6382_v38  ;;  %v6049_v45 = vld [vmem:[#allocation8 + $0x2c8] sm:$0xf]  ;;  %v7476_v38 = vld [vmem:[#allocation8 + $0x2d4] sm:$0xf0] }
 0x2bf   : > { %3745 = vmatpush.bf16.msra.mxu2 %v6510_v2  ;;  %3758 = vmatpush.bf16.msra.mxu3 %v6638_v51  ;;  %v5794_v2 = vor.u32 %v7412_v49, %v5793_v10  ;;  %v5922_v51 = vor.u32 %v7444_v33, %v5921_v57  ;;  %v6050_v0 = vor.u32 %v7476_v38, %v6049_v45  ;;  %v6113_v10 = vld [vmem:[#allocation8 + $0x348] sm:$0xf]  ;;  %v7492_v49 = vld [vmem:[#allocation8 + $0x354] sm:$0xf0] }
 0x2c0   : > { %v5713_v57 = vld [vmem:[#allocation8 + $0x28] sm:$0xf]  ;;  %v7392_v33 = vld [vmem:[#allocation8 + $0x34] sm:$0xf0]  ;;  %v6114_v38 = vor.u32 %v7492_v49, %v6113_v10 }
 0x2c1   : > { %v6417_v10 = vld [vmem:[#allocation8 + $0x5a8] sm:$0xf]  ;;  %v7568_v49 = vld [vmem:[#allocation8 + $0x5b4] sm:$0xf0] }
 0x2c2   : > { %3720 = vmatpush.bf16.msra.mxu0 %v6238_v36  ;;  %3733 = vmatpush.bf16.msra.mxu1 %v6366_v46  ;;  %v6033_v36 = vld [vmem:[#allocation8 + $0x2a8] sm:$0xf]  ;;  %v7472_v46 = vld [vmem:[#allocation8 + $0x2b4] sm:$0xf0] }
 0x2c3   : > { %3746 = vmatpush.bf16.msra.mxu2 %v6494_v1  ;;  %3759 = vmatpush.bf16.msra.mxu3 %v6622_v22  ;;  %v5778_v1 = vor.u32 %v7408_v32, %v5777_v31  ;;  %v5906_v22 = vor.u32 %v7440_v50, %v5905_v11  ;;  %v6034_v28 = vor.u32 %v7472_v46, %v6033_v36  ;;  %v6097_v31 = vld [vmem:[#allocation8 + $0x328] sm:$0xf]  ;;  %v7488_v32 = vld [vmem:[#allocation8 + $0x334] sm:$0xf0] }
 0x2c4   : > { %v5842_v11 = vor.u32 %v7424_v56, %v5841_v43  ;;  %v7388_v50 = vld [vmem:[#allocation8 + $0x14] sm:$0xf0]  ;;  %v5825_v36 = vld [vmem:[#allocation8 + $0x108] sm:$0xf]  ;;  %v6098_v9 = vor.u32 %v7488_v32, %v6097_v31 }
 0x2c5   : > { %v7420_v46 = vld [vmem:[#allocation8 + $0x114] sm:$0xf0]  ;;  %v6273_v43 = vld [vmem:[#allocation8 + $0x488] sm:$0xf] }
 0x2c6   : > { %3721 = vmatpush.bf16.msra.mxu0 %v6222_v19  ;;  %3734 = vmatpush.bf16.msra.mxu1 %v6350_v14  ;;  %v7468_v19 = vld [vmem:[#allocation8 + $0x294] sm:$0xf0]  ;;  %v6145_v14 = vld [vmem:[#allocation8 + $0x388] sm:$0xf] }
 0x2c7   : > { %3747 = vmatpush.bf16.msra.mxu2 %v6478_v15  ;;  %3760 = vmatpush.bf16.msra.mxu3 %v6606_v63  ;;  %v5745_v15 = vld [vmem:[#allocation8 + $0x68] sm:$0xf]  ;;  %v7400_v63 = vld [vmem:[#allocation8 + $0x74] sm:$0xf0]  ;;  %v6018_v61 = vor.u32 %v7468_v19, %v6017_v8  ;;  %v6146_v42 = vor.u32 %v7500_v35, %v6145_v14  ;;  %v5826_v14 = vor.u32 %v7420_v46, %v5825_v36 }
 0x2c8   : > { %v5746_v25 = vor.u32 %v7400_v63, %v5745_v15  ;;  %v6577_v8 = vld [vmem:[#allocation8 + $0x6e8] sm:$0xf]  ;;  %v7608_v35 = vld [vmem:[#allocation8 + $0x6f4] sm:$0xf0]  ;;  %v6082_v63 = vor.u32 %v7484_v59, %v6081_v52 }
 0x2c9   : > { %v6578_v60 = vor.u32 %v7608_v35, %v6577_v8  ;;  %v7532_v56 = vld [vmem:[#allocation8 + $0x494] sm:$0xf0]  ;;  %v6401_v31 = vld [vmem:[#allocation8 + $0x588] sm:$0xf] }
 0x2ca   : > { %3722 = vmatpush.bf16.msra.mxu0 %v6206_v18  ;;  %3735 = vmatpush.bf16.msra.mxu1 %v6334_v23  ;;  %v5874_v18 = vor.u32 %v7432_v62, %v5873_v16  ;;  %v5729_v23 = vld [vmem:[#allocation8 + $0x48] sm:$0xf]  ;;  %v7540_v62 = vld [vmem:[#allocation8 + $0x4d4] sm:$0xf0]  ;;  %v6274_v36 = vor.u32 %v7532_v56, %v6273_v43 }
 0x2cb   : > { %3748 = vmatpush.bf16.msra.mxu2 %v6462_v39  ;;  %3761 = vmatpush.bf16.msra.mxu3 %v6590_v3  ;;  %v5857_v39 = vld [vmem:[#allocation8 + $0x148] sm:$0xf]  ;;  %v7428_v3 = vld [vmem:[#allocation8 + $0x154] sm:$0xf0] }
 0x2cc   : > { %v6305_v16 = vld [vmem:[#allocation8 + $0x4c8] sm:$0xf]  ;;  %v7564_v32 = vld [vmem:[#allocation8 + $0x594] sm:$0xf0] }
 0x2cd   : > { %3723 = vmatmul.bf16.vlgmr.msra.gmra.mxu0 %v9171_v44  ;;  %3736 = vmatmul.bf16.vlgmr.msra.gmra.mxu1 %v9173_v48  ;;  %v6402_v46 = vor.u32 %v7564_v32, %v6401_v31  ;;  %v6385_v52 = vld [vmem:[#allocation8 + $0x568] sm:$0xf]  ;;  %v7560_v59 = vld [vmem:[#allocation8 + $0x574] sm:$0xf0]  ;;  %v7446_v31 = vld [vmem:[#allocation8 + $0x1ec] sm:$0xf] }
 0x2ce   : > { %3767 = vmatpush.bf16.msrb.mxu0 %v5810_v47  ;;  %3780 = vmatpush.bf16.msrb.mxu1 %v5938_v13  ;;  %v5985_v47 = vld [vmem:[#allocation8 + $0x248] sm:$0xf]  ;;  %v7460_v13 = vld [vmem:[#allocation8 + $0x254] sm:$0xf0]  ;;  %v5939_v32 = vld [vmem:[#allocation8 + $0x1f8] sm:$0xf0] }
 0x2cf   : > { %3793 = vmatpush.bf16.msrb.mxu2 %v6066_v30  ;;  %3806 = vmatpush.bf16.msrb.mxu3 %v6194_v24  ;;  %v5730_v30 = vor.u32 %v7396_v53, %v5729_v23  ;;  %v5858_v24 = vor.u32 %v7428_v3, %v5857_v39  ;;  %v5986_v45 = vor.u32 %v7460_v13, %v5985_v47  ;;  %v6689_v23 = vld [vmem:[#allocation8 + $0x7c8] sm:$0xf]  ;;  %v7636_v53 = vld [vmem:[#allocation8 + $0x7d4] sm:$0xf0] }
 0x2d0   : > { %3749 = vmatmul.bf16.vlgmr.msra.gmra.mxu2 %v9175_v17  ;;  %3762 = vmatmul.bf16.vlgmr.msra.gmra.mxu3 %v9177_v58  ;;  %v6289_v39 = vld [vmem:[#allocation8 + $0x4a8] sm:$0xf]  ;;  %v7536_v3 = vld [vmem:[#allocation8 + $0x4b4] sm:$0xf0]  ;;  %v6690_v13 = vor.u32 %v7636_v53, %v6689_v23 }
 0x2d1   : > { %v7524_v35 = vld [vmem:[#allocation8 + $0x454] sm:$0xf0]  ;;  %v6353_v23 = vld [vmem:[#allocation8 + $0x528] sm:$0xf] }
 0x2d2   : > { %3768 = vmatpush.bf16.msrb.mxu0 %v5794_v2  ;;  %3781 = vmatpush.bf16.msrb.mxu1 %v5922_v51  ;;  %v5969_v2 = vld [vmem:[#allocation8 + $0x228] sm:$0xf]  ;;  %v7456_v51 = vld [vmem:[#allocation8 + $0x234] sm:$0xf0] }
 0x2d3   : > { %3794 = vmatpush.bf16.msrb.mxu2 %v6050_v0  ;;  %3807 = vmatpush.bf16.msrb.mxu3 %v6178_v6  ;;  %v5697_v0 = vld [vmem:[#allocation8 + $0x8] sm:$0xf]  ;;  %v5714_v6 = vor.u32 %v7392_v33, %v5713_v57  ;;  %v5970_v37 = vor.u32 %v7456_v51, %v5969_v2  ;;  %v7632_v33 = vld [vmem:[#allocation8 + $0x7b4] sm:$0xf0] }
 0x2d4   : > { %v5698_v19 = vor.u32 %v7388_v50, %v5697_v0  ;;  %v6673_v57 = vld [vmem:[#allocation8 + $0x7a8] sm:$0xf]  ;;  %v7628_v50 = vld [vmem:[#allocation8 + $0x794] sm:$0xf0] }
 0x2d5   : > { %v6674_v51 = vor.u32 %v7632_v33, %v6673_v57  ;;  %v6529_v0 = vld [vmem:[#allocation8 + $0x688] sm:$0xf]  ;;  %v7552_v53 = vld [vmem:[#allocation8 + $0x534] sm:$0xf0] }
 0x2d6   : > { %3769 = vmatpush.bf16.msrb.mxu0 %v5778_v1  ;;  %3782 = vmatpush.bf16.msrb.mxu1 %v5906_v22  ;;  %v5953_v1 = vld [vmem:[#allocation8 + $0x208] sm:$0xf]  ;;  %v7452_v22 = vld [vmem:[#allocation8 + $0x214] sm:$0xf0] }
 0x2d7   : > { %3795 = vmatpush.bf16.msrb.mxu2 %v6034_v28  ;;  %3808 = vmatpush.bf16.msrb.mxu3 %v6162_v55  ;;  %v6321_v28 = vld [vmem:[#allocation8 + $0x4e8] sm:$0xf]  ;;  %v7544_v55 = vld [vmem:[#allocation8 + $0x4f4] sm:$0xf0]  ;;  %v5954_v15 = vor.u32 %v7452_v22, %v5953_v1 }
 0x2d8   : > { %v6593_v43 = vld [vmem:[#allocation8 + $0x708] sm:$0xf]  ;;  %v7612_v56 = vld [vmem:[#allocation8 + $0x714] sm:$0xf0] }
 0x2da   : > { %3770 = vmatpush.bf16.msrb.mxu0 %v5762_v26  ;;  %3783 = vmatpush.bf16.msrb.mxu1 %v5890_v41  ;;  %v6705_v26 = vld [vmem:[#allocation8 + $0x7e8] sm:$0xf]  ;;  %v7640_v41 = vld [vmem:[#allocation8 + $0x7f4] sm:$0xf0] }
 0x2db   : > { %3796 = vmatpush.bf16.msrb.mxu2 %v6018_v61  ;;  %3809 = vmatpush.bf16.msrb.mxu3 %v6146_v42  ;;  %v6322_v61 = vor.u32 %v7544_v55, %v6321_v28  ;;  %v6450_v42 = vor.u32 %v7576_v27, %v6449_v40  ;;  %v6706_v54 = vor.u32 %v7640_v41, %v6705_v26  ;;  %v6513_v28 = vld [vmem:[#allocation8 + $0x668] sm:$0xf]  ;;  %v7592_v55 = vld [vmem:[#allocation8 + $0x674] sm:$0xf0] }
 0x2dc   : > { %v6641_v40 = vld [vmem:[#allocation8 + $0x768] sm:$0xf]  ;;  %v7624_v27 = vld [vmem:[#allocation8 + $0x774] sm:$0xf0]  ;;  %v6514_v26 = vor.u32 %v7592_v55, %v6513_v28  ;;  %v7442_v28 = vld [vmem:[#allocation8 + $0x1cc] sm:$0xf] }
 0x2dd   : > { %v6642_v41 = vor.u32 %v7624_v27, %v6641_v40  ;;  %v5923_v27 = vld [vmem:[#allocation8 + $0x1d8] sm:$0xf0] }
 0x2de   : > { %3771 = vmatpush.bf16.msrb.mxu0 %v5746_v25  ;;  %3784 = vmatpush.bf16.msrb.mxu1 %v5874_v18  ;;  %v6561_v25 = vld [vmem:[#allocation8 + $0x6c8] sm:$0xf]  ;;  %v7604_v18 = vld [vmem:[#allocation8 + $0x6d4] sm:$0xf0] }
 0x2df   : > { %3797 = vmatpush.bf16.msrb.mxu2 %v6002_v12  ;;  %3810 = vmatpush.bf16.msrb.mxu3 %v6130_v20  ;;  %v6306_v12 = vor.u32 %v7540_v62, %v6305_v16  ;;  %v6434_v20 = vor.u32 %v7572_v5, %v6433_v29  ;;  %v6562_v47 = vor.u32 %v7604_v18, %v6561_v25  ;;  %v6625_v16 = vld [vmem:[#allocation8 + $0x748] sm:$0xf]  ;;  %v7620_v62 = vld [vmem:[#allocation8 + $0x754] sm:$0xf0] }
 0x2e0   : > { %v6225_v29 = vld [vmem:[#allocation8 + $0x428] sm:$0xf]  ;;  %v7520_v5 = vld [vmem:[#allocation8 + $0x434] sm:$0xf0]  ;;  %v6626_v18 = vor.u32 %v7620_v62, %v6625_v16 }
 0x2e2   : > { %3772 = vmatpush.bf16.msrb.mxu0 %v5730_v30  ;;  %3785 = vmatpush.bf16.msrb.mxu1 %v5858_v24  ;;  %v6545_v30 = vld [vmem:[#allocation8 + $0x6a8] sm:$0xf]  ;;  %v7600_v24 = vld [vmem:[#allocation8 + $0x6b4] sm:$0xf0] }
 0x2e3   : > { %3798 = vmatpush.bf16.msrb.mxu2 %v5986_v45  ;;  %3811 = vmatpush.bf16.msrb.mxu3 %v6114_v38  ;;  %v6290_v45 = vor.u32 %v7536_v3, %v6289_v39  ;;  %v6418_v38 = vor.u32 %v7568_v49, %v6417_v10  ;;  %v6546_v2 = vor.u32 %v7600_v24, %v6545_v30  ;;  %v6609_v39 = vld [vmem:[#allocation8 + $0x728] sm:$0xf]  ;;  %v7616_v3 = vld [vmem:[#allocation8 + $0x734] sm:$0xf0] }
 0x2e4   : > { %v6354_v10 = vor.u32 %v7552_v53, %v6353_v23  ;;  %v7516_v49 = vld [vmem:[#allocation8 + $0x414] sm:$0xf0]  ;;  %v6337_v30 = vld [vmem:[#allocation8 + $0x508] sm:$0xf]  ;;  %v6610_v33 = vor.u32 %v7616_v3, %v6609_v39  ;;  %v7402_v3 = vld [vmem:[#allocation8 + $0x8c] sm:$0xf] }
 0x2e5   : > { %v7548_v24 = vld [vmem:[#allocation8 + $0x514] sm:$0xf0] }
 0x2e6   : > { %3773 = vmatpush.bf16.msrb.mxu0 %v5714_v6  ;;  %3786 = vmatpush.bf16.msrb.mxu1 %v5842_v11  ;;  %v7596_v6 = vld [vmem:[#allocation8 + $0x694] sm:$0xf0]  ;;  %v6657_v11 = vld [vmem:[#allocation8 + $0x788] sm:$0xf] }
 0x2e7   : > { %3799 = vmatpush.bf16.msrb.mxu2 %v5970_v37  ;;  %3812 = vmatpush.bf16.msrb.mxu3 %v6098_v9  ;;  %v6257_v37 = vld [vmem:[#allocation8 + $0x468] sm:$0xf]  ;;  %v7528_v9 = vld [vmem:[#allocation8 + $0x474] sm:$0xf0]  ;;  %v6530_v1 = vor.u32 %v7596_v6, %v6529_v0  ;;  %v6658_v22 = vor.u32 %v7628_v50, %v6657_v11  ;;  %v7478_v0 = vld [vmem:[#allocation8 + $0x2ec] sm:$0xf]  ;;  %v6338_v11 = vor.u32 %v7548_v24, %v6337_v30 }
 0x2e8   : > { %v6258_v8 = vor.u32 %v7528_v9, %v6257_v37  ;;  %v6067_v50 = vld [vmem:[#allocation8 + $0x2f8] sm:$0xf0]  ;;  %v6594_v9 = vor.u32 %v7612_v56, %v6593_v43  ;;  %v7466_v24 = vld [vmem:[#allocation8 + $0x28c] sm:$0xf] }
 0x2e9   : > { %v6070_v55 = vor.u32 %v7478_v0, %v6067_v50  ;;  %v5891_v30 = vld [vmem:[#allocation8 + $0x198] sm:$0xf0]  ;;  %v7430_v0 = vld [vmem:[#allocation8 + $0x16c] sm:$0xf] }
 0x2ea   : > { %3774 = vmatpush.bf16.msrb.mxu0 %v5698_v19  ;;  %3787 = vmatpush.bf16.msrb.mxu1 %v5826_v14  ;;  %v6386_v19 = vor.u32 %v7560_v59, %v6385_v52  ;;  %v6241_v14 = vld [vmem:[#allocation8 + $0x448] sm:$0xf]  ;;  %v7410_v52 = vld [vmem:[#allocation8 + $0xcc] sm:$0xf]  ;;  %v5795_v59 = vld [vmem:[#allocation8 + $0xd8] sm:$0xf0] }
 0x2eb   : > { %3800 = vmatpush.bf16.msrb.mxu2 %v5954_v15  ;;  %3813 = vmatpush.bf16.msrb.mxu3 %v6082_v63  ;;  %v6369_v15 = vld [vmem:[#allocation8 + $0x548] sm:$0xf]  ;;  %v7556_v63 = vld [vmem:[#allocation8 + $0x554] sm:$0xf0] }
 0x2ed   : > { %3775 = vmatmul.bf16.vlgmr.msrb.gmra.mxu0 %v9155_v34  ;;  %3788 = vmatmul.bf16.vlgmr.msrb.gmra.mxu1 %v9157_v4 }
 0x2ee   : > { %3819 = vmatpush.bf16.msra.mxu0 %v6322_v61  ;;  %3832 = vmatpush.bf16.msra.mxu1 %v6450_v42  ;;  %v6497_v61 = vld [vmem:[#allocation8 + $0x648] sm:$0xf]  ;;  %v7588_v42 = vld [vmem:[#allocation8 + $0x654] sm:$0xf0] }
 0x2ef   : > { %3845 = vmatpush.bf16.msra.mxu2 %v6578_v60  ;;  %3858 = vmatpush.bf16.msra.mxu3 %v6706_v54  ;;  %v6242_v60 = vor.u32 %v7524_v35, %v6241_v14  ;;  %v6370_v54 = vor.u32 %v7556_v63, %v6369_v15  ;;  %v6498_v25 = vor.u32 %v7588_v42, %v6497_v61  ;;  %v6051_v14 = vld [vmem:[#allocation8 + $0x2d8] sm:$0xf0]  ;;  %v7506_v35 = vld [vmem:[#allocation8 + $0x3cc] sm:$0xf] }
 0x2f0   : > { %3801 = vmatmul.bf16.vlgmr.msrb.gmra.mxu2 %v9159_v7  ;;  %3814 = vmatmul.bf16.vlgmr.msrb.gmra.mxu3 %v9161_v21  ;;  %v5926_v15 = vor.u32 %v7442_v28, %v5923_v27  ;;  %v7406_v63 = vld [vmem:[#allocation8 + $0xac] sm:$0xf]  ;;  %v5779_v61 = vld [vmem:[#allocation8 + $0xb8] sm:$0xf0] }
 0x2f2   : > { %3820 = vmatpush.bf16.msra.mxu0 %v6306_v12  ;;  %3833 = vmatpush.bf16.msra.mxu1 %v6434_v20  ;;  %v6481_v12 = vld [vmem:[#allocation8 + $0x628] sm:$0xf]  ;;  %v7584_v20 = vld [vmem:[#allocation8 + $0x634] sm:$0xf0] }
 0x2f3   : > { %3846 = vmatpush.bf16.msra.mxu2 %v6562_v47  ;;  %3859 = vmatpush.bf16.msra.mxu3 %v6690_v13  ;;  %v6209_v47 = vld [vmem:[#allocation8 + $0x408] sm:$0xf]  ;;  %v6226_v13 = vor.u32 %v7520_v5, %v6225_v29  ;;  %v6482_v57 = vor.u32 %v7584_v20, %v6481_v12  ;;  %v7470_v29 = vld [vmem:[#allocation8 + $0x2ac] sm:$0xf]  ;;  %v6035_v5 = vld [vmem:[#allocation8 + $0x2b8] sm:$0xf0]  ;;  %v5782_v12 = vor.u32 %v7406_v63, %v5779_v61 }
 0x2f4   : > { %v6210_v6 = vor.u32 %v7516_v49, %v6209_v47  ;;  %v5763_v47 = vld [vmem:[#allocation8 + $0x98] sm:$0xf0]  ;;  %v7434_v49 = vld [vmem:[#allocation8 + $0x18c] sm:$0xf] }
 0x2f5   : > { %v5766_v43 = vor.u32 %v7402_v3, %v5763_v47  ;;  %v5894_v56 = vor.u32 %v7434_v49, %v5891_v30  ;;  %v7490_v63 = vld [vmem:[#allocation8 + $0x34c] sm:$0xf]  ;;  %v6115_v61 = vld [vmem:[#allocation8 + $0x358] sm:$0xf0] }
 0x2f6   : > { %3821 = vmatpush.bf16.msra.mxu0 %v6290_v45  ;;  %3834 = vmatpush.bf16.msra.mxu1 %v6418_v38  ;;  %v6465_v45 = vld [vmem:[#allocation8 + $0x608] sm:$0xf]  ;;  %v7580_v38 = vld [vmem:[#allocation8 + $0x614] sm:$0xf0]  ;;  %v5699_v30 = vld [vmem:[#allocation8 + $0x18] sm:$0xf0] }
 0x2f7   : > { %3847 = vmatpush.bf16.msra.mxu2 %v6546_v2  ;;  %3860 = vmatpush.bf16.msra.mxu3 %v6674_v51  ;;  %v7414_v2 = vld [vmem:[#allocation8 + $0xec] sm:$0xf]  ;;  %v5811_v51 = vld [vmem:[#allocation8 + $0xf8] sm:$0xf0]  ;;  %v6466_v37 = vor.u32 %v7580_v38, %v6465_v45 }
 0x2f8   : > { %v7498_v45 = vld [vmem:[#allocation8 + $0x38c] sm:$0xf]  ;;  %v6147_v38 = vld [vmem:[#allocation8 + $0x398] sm:$0xf0] }
 0x2fa   : > { %3822 = vmatpush.bf16.msra.mxu0 %v6274_v36  ;;  %3835 = vmatpush.bf16.msra.mxu1 %v6402_v46  ;;  %v7510_v36 = vld [vmem:[#allocation8 + $0x3ec] sm:$0xf]  ;;  %v6195_v46 = vld [vmem:[#allocation8 + $0x3f8] sm:$0xf0] }
 0x2fb   : > { %3848 = vmatpush.bf16.msra.mxu2 %v6530_v1  ;;  %3861 = vmatpush.bf16.msra.mxu3 %v6658_v22  ;;  %v5814_v1 = vor.u32 %v7414_v2, %v5811_v51  ;;  %v5942_v22 = vor.u32 %v7446_v31, %v5939_v32  ;;  %v6198_v40 = vor.u32 %v7510_v36, %v6195_v46  ;;  %v7398_v2 = vld [vmem:[#allocation8 + $0x6c] sm:$0xf]  ;;  %v5747_v51 = vld [vmem:[#allocation8 + $0x78] sm:$0xf0] }
 0x2fc   : > { %v6150_v32 = vor.u32 %v7498_v45, %v6147_v38  ;;  %v6003_v46 = vld [vmem:[#allocation8 + $0x278] sm:$0xf0]  ;;  %v7450_v38 = vld [vmem:[#allocation8 + $0x20c] sm:$0xf] }
 0x2fe   : > { %3823 = vmatpush.bf16.msra.mxu0 %v6258_v8  ;;  %3836 = vmatpush.bf16.msra.mxu1 %v6386_v19  ;;  %v7474_v8 = vld [vmem:[#allocation8 + $0x2cc] sm:$0xf]  ;;  %v9198_v19 = vld [vmem:[%s10152_s8] sm:$0xf] }
 0x2ff   : > { %3849 = vmatpush.bf16.msra.mxu2 %v6514_v26  ;;  %3862 = vmatpush.bf16.msra.mxu3 %v6642_v41  ;;  %v6179_v26 = vld [vmem:[#allocation8 + $0x3d8] sm:$0xf0]  ;;  %v5798_v41 = vor.u32 %v7410_v52, %v5795_v59  ;;  %v3551_v42 = vperm.slane %v9198_v19, 0  ;;  %v6054_v16 = vor.u32 %v7474_v8, %v6051_v14  ;;  %v5750_v59 = vor.u32 %v7398_v2, %v5747_v51  ;;  %v7542_v51 = vld [vmem:[#allocation8 + $0x4ec] sm:$0xf] }
 0x300   : > { %v6182_v62 = vor.u32 %v7506_v35, %v6179_v26  ;;  %v7426_v35 = vld [vmem:[#allocation8 + $0x14c] sm:$0xf]  ;;  %v5859_v26 = vld [vmem:[#allocation8 + $0x158] sm:$0xf0] }
 0x301   : > { %v6083_v2 = vld [vmem:[#allocation8 + $0x318] sm:$0xf0] }
 0x302   : > { %3824 = vmatpush.bf16.msra.mxu0 %v6242_v60  ;;  %3837 = vmatpush.bf16.msra.mxu1 %v6370_v54  ;;  %v7438_v60 = vld [vmem:[#allocation8 + $0x1ac] sm:$0xf]  ;;  %v5907_v54 = vld [vmem:[#allocation8 + $0x1b8] sm:$0xf0] }
 0x303   : > { %3850 = vmatpush.bf16.msra.mxu2 %v6498_v25  ;;  %3863 = vmatpush.bf16.msra.mxu3 %v6626_v18  ;;  %v7502_v25 = vld [vmem:[#allocation8 + $0x3ac] sm:$0xf]  ;;  %v6163_v18 = vld [vmem:[#allocation8 + $0x3b8] sm:$0xf0]  ;;  %v5910_v20 = vor.u32 %v7438_v60, %v5907_v54 }
 0x304   : > { %v5715_v60 = vld [vmem:[#allocation8 + $0x38] sm:$0xf0] }
 0x306   : > { %3825 = vmatpush.bf16.msra.mxu0 %v6226_v13  ;;  %3838 = vmatpush.bf16.msra.mxu1 %v6354_v10  ;;  %v6038_v13 = vor.u32 %v7470_v29, %v6035_v5  ;;  %v6166_v10 = vor.u32 %v7502_v25, %v6163_v18  ;;  %v6118_v29 = vor.u32 %v7490_v63, %v6115_v61  ;;  %v7422_v5 = vld [vmem:[#allocation8 + $0x12c] sm:$0xf]  ;;  %v5843_v25 = vld [vmem:[#allocation8 + $0x138] sm:$0xf0] }
 0x307   : > { %3851 = vmatpush.bf16.msra.mxu2 %v6482_v57  ;;  %3864 = vmatpush.bf16.msra.mxu3 %v6610_v33  ;;  %v6019_v33 = vld [vmem:[#allocation8 + $0x298] sm:$0xf0]  ;;  %v7454_v18 = vld [vmem:[#allocation8 + $0x22c] sm:$0xf]  ;;  %v5846_v49 = vor.u32 %v7422_v5, %v5843_v25 }
 0x308   : > { %v6022_v31 = vor.u32 %v7466_v24, %v6019_v33  ;;  %v7418_v24 = vld [vmem:[#allocation8 + $0x10c] sm:$0xf]  ;;  %v6563_v61 = vld [vmem:[#allocation8 + $0x6d8] sm:$0xf0] }
 0x309   : > { %v3568_v23 = vpop.f32.mrf.mxu0  ;;  %v3581_v53 = vpop.f32.mrf.mxu1  ;;  %v7602_v63 = vld [vmem:[#allocation8 + $0x6cc] sm:$0xf] }
 0x30a   : > { %3826 = vmatpush.bf16.msra.mxu0 %v6210_v6  ;;  %3839 = vmatpush.bf16.msra.mxu1 %v6338_v11  ;;  %v3569_v39 = vadd.f32 %v3568_v23, %v3551_v42  ;;  %v5875_v6 = vld [vmem:[#allocation8 + $0x178] sm:$0xf0]  ;;  %v7462_v11 = vld [vmem:[#allocation8 + $0x26c] sm:$0xf]  ;;  %v6566_v5 = vor.u32 %v7602_v63, %v6563_v61 }
 0x30b   : > { %3852 = vmatpush.bf16.msra.mxu2 %v6466_v37  ;;  %3865 = vmatpush.bf16.msra.mxu3 %v6594_v9  ;;  %v7494_v37 = vld [vmem:[#allocation8 + $0x36c] sm:$0xf]  ;;  %v6131_v9 = vld [vmem:[#allocation8 + $0x378] sm:$0xf0]  ;;  %v5878_v28 = vor.u32 %v7430_v0, %v5875_v6  ;;  %v6006_v8 = vor.u32 %v7462_v11, %v6003_v46 }
 0x30c   : > { %v3582_v57 = vadd.f32 %v3581_v53, %v3569_v39  ;;  %v6134_v14 = vor.u32 %v7494_v37, %v6131_v9  ;;  %v6099_v39 = vld [vmem:[#allocation8 + $0x338] sm:$0xf0]  ;;  %v7606_v6 = vld [vmem:[#allocation8 + $0x6ec] sm:$0xf] }
 0x30d   : > { %3827 = vmatmul.bf16.vlgmr.msra.gmra.mxu0 %v9171_v44  ;;  %3840 = vmatmul.bf16.vlgmr.msra.gmra.mxu1 %v9173_v48  ;;  %v6451_v0 = vld [vmem:[#allocation8 + $0x5f8] sm:$0xf0]  ;;  %v7638_v46 = vld [vmem:[#allocation8 + $0x7ec] sm:$0xf] }
 0x30e   : > { %3871 = vmatpush.bf16.msrb.mxu0 %v5814_v1  ;;  %3884 = vmatpush.bf16.msrb.mxu1 %v5942_v22  ;;  %v6707_v37 = vld [vmem:[#allocation8 + $0x7f8] sm:$0xf0] }
 0x30f   : > { %3897 = vmatpush.bf16.msrb.mxu2 %v6070_v55  ;;  %3910 = vmatpush.bf16.msrb.mxu3 %v6198_v40  ;;  %v7394_v55 = vld [vmem:[#allocation8 + $0x4c] sm:$0xf]  ;;  %v5731_v40 = vld [vmem:[#allocation8 + $0x58] sm:$0xf0] }
 0x310   : > { %3853 = vmatmul.bf16.vlgmr.msra.gmra.mxu2 %v9175_v17  ;;  %3866 = vmatmul.bf16.vlgmr.msra.gmra.mxu3 %v9177_v58  ;;  %v3594_v50 = vpop.f32.mrf.mxu2  ;;  %v3607_v36 = vpop.f32.mrf.mxu3  ;;  %v5734_v42 = vor.u32 %v7394_v55, %v5731_v40  ;;  %v7538_v55 = vld [vmem:[#allocation8 + $0x4cc] sm:$0xf]  ;;  %v6307_v40 = vld [vmem:[#allocation8 + $0x4d8] sm:$0xf0] }
 0x311   : > { %v3595_v1 = vadd.f32 %v3594_v50, %v3582_v57  ;;  %v3570_v22 = vpop.f32.mrf.mxu0  ;;  %v3583_v52 = vpop.f32.mrf.mxu1  ;;  %v5827_v57 = vld [vmem:[#allocation8 + $0x118] sm:$0xf0] }
 0x312   : > { %3872 = vmatpush.bf16.msrb.mxu0 %v5798_v41  ;;  %3885 = vmatpush.bf16.msrb.mxu1 %v5926_v15  ;;  %v7458_v41 = vld [vmem:[#allocation8 + $0x24c] sm:$0xf]  ;;  %v5987_v15 = vld [vmem:[#allocation8 + $0x258] sm:$0xf0]  ;;  %v5830_v50 = vor.u32 %v7418_v24, %v5827_v57 }
 0x313   : > { %3898 = vmatpush.bf16.msrb.mxu2 %v6054_v16  ;;  %3911 = vmatpush.bf16.msrb.mxu3 %v6182_v62  ;;  %v9205_v27 = vadd.f32 %v3607_v36, %v3595_v1  ;;  %v5862_v16 = vor.u32 %v7426_v35, %v5859_v26  ;;  %v7390_v62 = vld [vmem:[#allocation8 + $0x2c] sm:$0xf]  ;;  %v5990_v54 = vor.u32 %v7458_v41, %v5987_v15  ;;  %v6579_v36 = vld [vmem:[#allocation8 + $0x6f8] sm:$0xf0] }
 0x314   : > { %v7570_v41 = vld [vmem:[#allocation8 + $0x5cc] sm:$0xf]  ;;  %v6435_v15 = vld [vmem:[#allocation8 + $0x5d8] sm:$0xf0] }
 0x315   : > { %v7530_v24 = vld [vmem:[#allocation8 + $0x48c] sm:$0xf]  ;;  %v6275_v57 = vld [vmem:[#allocation8 + $0x498] sm:$0xf0] }
 0x316   : > { %3873 = vmatpush.bf16.msrb.mxu0 %v5782_v12  ;;  %3886 = vmatpush.bf16.msrb.mxu1 %v5910_v20  ;;  %v5971_v12 = vld [vmem:[#allocation8 + $0x238] sm:$0xf0]  ;;  %v7486_v20 = vld [vmem:[#allocation8 + $0x32c] sm:$0xf] }
 0x317   : > { %3899 = vmatpush.bf16.msrb.mxu2 %v6038_v13  ;;  %3912 = vmatpush.bf16.msrb.mxu3 %v6166_v10  ;;  %v7386_v13 = vld [vmem:[#allocation8 + $0xc] sm:$0xf]  ;;  %v5718_v10 = vor.u32 %v7390_v62, %v5715_v60  ;;  %v5974_v33 = vor.u32 %v7454_v18, %v5971_v12  ;;  %v6102_v45 = vor.u32 %v7486_v20, %v6099_v39  ;;  %v6547_v12 = vld [vmem:[#allocation8 + $0x6b8] sm:$0xf0] }
 0x318   : > { %v3596_v23 = vpop.f32.mrf.mxu2  ;;  %v3609_v53 = vpop.f32.mrf.mxu3  ;;  %v5702_v11 = vor.u32 %v7386_v13, %v5699_v30  ;;  %v6310_v62 = vor.u32 %v7538_v55, %v6307_v40  ;;  %v6438_v60 = vor.u32 %v7570_v41, %v6435_v15  ;;  %v7566_v18 = vld [vmem:[#allocation8 + $0x5ac] sm:$0xf]  ;;  %v6675_v39 = vld [vmem:[#allocation8 + $0x7b8] sm:$0xf0] }
 0x319   : > { %v9207_v3 = vpop.f32.mrf.mxu0  ;;  %v9209_v47 = vpop.f32.mrf.mxu1  ;;  %v6419_v23 = vld [vmem:[#allocation8 + $0x5b8] sm:$0xf0]  ;;  %v7598_v53 = vld [vmem:[#allocation8 + $0x6ac] sm:$0xf] }
 0x31a   : > { %3874 = vmatpush.bf16.msrb.mxu0 %v5766_v43  ;;  %3887 = vmatpush.bf16.msrb.mxu1 %v5894_v56  ;;  %v5955_v43 = vld [vmem:[#allocation8 + $0x218] sm:$0xf0]  ;;  %v7482_v56 = vld [vmem:[#allocation8 + $0x30c] sm:$0xf] }
 0x31b   : > { %3900 = vmatpush.bf16.msrb.mxu2 %v6022_v31  ;;  %3913 = vmatpush.bf16.msrb.mxu3 %v6150_v32  ;;  %v6323_v31 = vld [vmem:[#allocation8 + $0x4f8] sm:$0xf0]  ;;  %v7574_v32 = vld [vmem:[#allocation8 + $0x5ec] sm:$0xf]  ;;  %v5958_v9 = vor.u32 %v7450_v38, %v5955_v43  ;;  %v6086_v1 = vor.u32 %v7482_v56, %v6083_v2 }
 0x31c   : > { %v6326_v22 = vor.u32 %v7542_v51, %v6323_v31  ;;  %v6454_v52 = vor.u32 %v7574_v32, %v6451_v0  ;;  %v7630_v20 = vld [vmem:[#allocation8 + $0x7ac] sm:$0xf]  ;;  %v6531_v43 = vld [vmem:[#allocation8 + $0x698] sm:$0xf0]  ;;  %v6278_v51 = vor.u32 %v7530_v24, %v6275_v57 }
 0x31d   : > { %v7594_v38 = vld [vmem:[#allocation8 + $0x68c] sm:$0xf]  ;;  %v6259_v0 = vld [vmem:[#allocation8 + $0x478] sm:$0xf0] }
 0x31e   : > { %3875 = vmatpush.bf16.msrb.mxu0 %v5750_v59  ;;  %3888 = vmatpush.bf16.msrb.mxu1 %v5878_v28  ;;  %v7626_v56 = vld [vmem:[#allocation8 + $0x78c] sm:$0xf]  ;;  %v6243_v40 = vld [vmem:[#allocation8 + $0x458] sm:$0xf0] }
 0x31f   : > { %3901 = vmatpush.bf16.msrb.mxu2 %v6006_v8  ;;  %3914 = vmatpush.bf16.msrb.mxu3 %v6134_v14  ;;  %v6582_v8 = vor.u32 %v7606_v6, %v6579_v36  ;;  %v6710_v14 = vor.u32 %v7638_v46, %v6707_v37  ;;  %v7526_v32 = vld [vmem:[#allocation8 + $0x46c] sm:$0xf]  ;;  %v6534_v6 = vor.u32 %v7594_v38, %v6531_v43  ;;  %v6387_v36 = vld [vmem:[#allocation8 + $0x578] sm:$0xf0] }
 0x320   : > { %v9211_v59 = vpop.f32.mrf.mxu2  ;;  %v9213_v28 = vpop.f32.mrf.mxu3  ;;  %v7590_v46 = vld [vmem:[#allocation8 + $0x66c] sm:$0xf]  ;;  %v6515_v37 = vld [vmem:[#allocation8 + $0x678] sm:$0xf0] }
 0x321   : > { %v3622_v35 = vpop.f32.mrf.mxu0  ;;  %v3635_v26 = vpop.f32.mrf.mxu1  ;;  %v7522_v55 = vld [vmem:[#allocation8 + $0x44c] sm:$0xf]  ;;  %v6499_v61 = vld [vmem:[#allocation8 + $0x658] sm:$0xf0] }
 0x322   : > { %3876 = vmatpush.bf16.msrb.mxu0 %v5734_v42  ;;  %3889 = vmatpush.bf16.msrb.mxu1 %v5862_v16  ;;  %v7634_v42 = vld [vmem:[#allocation8 + $0x7cc] sm:$0xf]  ;;  %v6691_v16 = vld [vmem:[#allocation8 + $0x7d8] sm:$0xf0] }
 0x323   : > { %3902 = vmatpush.bf16.msrb.mxu2 %v5990_v54  ;;  %3915 = vmatpush.bf16.msrb.mxu3 %v6118_v29  ;;  %v7534_v54 = vld [vmem:[#allocation8 + $0x4ac] sm:$0xf]  ;;  %v6291_v29 = vld [vmem:[#allocation8 + $0x4b8] sm:$0xf0]  ;;  %v6694_v25 = vor.u32 %v7634_v42, %v6691_v16 }
 0x324   : > { %v6294_v13 = vor.u32 %v7534_v54, %v6291_v29  ;;  %v7554_v35 = vld [vmem:[#allocation8 + $0x54c] sm:$0xf]  ;;  %v6371_v26 = vld [vmem:[#allocation8 + $0x558] sm:$0xf0]  ;;  %v6246_v54 = vor.u32 %v7522_v55, %v6243_v40  ;;  %v6825_v40 = vld [vmem:[%s10153_s9 + $0xe0] sm:$0xf] }
 0x325   : > { %v7586_v41 = vld [vmem:[#allocation8 + $0x64c] sm:$0xf]  ;;  %v6627_v16 = vld [vmem:[#allocation8 + $0x758] sm:$0xf0]  ;;  %v6374_v29 = vor.u32 %v7554_v35, %v6371_v26 }
 0x326   : > { %3877 = vmatpush.bf16.msrb.mxu0 %v5718_v10  ;;  %3890 = vmatpush.bf16.msrb.mxu1 %v5846_v49  ;;  %v6422_v10 = vor.u32 %v7566_v18, %v6419_v23  ;;  %v7618_v42 = vld [vmem:[#allocation8 + $0x74c] sm:$0xf]  ;;  %v6502_v18 = vor.u32 %v7586_v41, %v6499_v61  ;;  %v6211_v57 = vld [vmem:[#allocation8 + $0x418] sm:$0xf0]  ;;  %v6753_v41 = vld [vmem:[%s10153_s9 + $0x50] sm:$0xf] }
 0x327   : > { %3903 = vmatpush.bf16.msrb.mxu2 %v5974_v33  ;;  %3916 = vmatpush.bf16.msrb.mxu3 %v6102_v45  ;;  %v6678_v33 = vor.u32 %v7630_v20, %v6675_v39  ;;  %v6403_v45 = vld [vmem:[#allocation8 + $0x598] sm:$0xf0]  ;;  %v6630_v23 = vor.u32 %v7618_v42, %v6627_v16  ;;  %v7582_v20 = vld [vmem:[#allocation8 + $0x62c] sm:$0xf] }
 0x328   : > { %v3648_v49 = vpop.f32.mrf.mxu2  ;;  %v3661_v30 = vpop.f32.mrf.mxu3  ;;  %v6483_v39 = vld [vmem:[#allocation8 + $0x638] sm:$0xf0]  ;;  %v7514_v24 = vld [vmem:[#allocation8 + $0x40c] sm:$0xf] }
 0x329   : > { %v7578_v38 = vld [vmem:[#allocation8 + $0x60c] sm:$0xf]  ;;  %v6467_v43 = vld [vmem:[#allocation8 + $0x618] sm:$0xf0] }
 0x32a   : > { %3878 = vmatpush.bf16.msrb.mxu0 %v5702_v11  ;;  %3891 = vmatpush.bf16.msrb.mxu1 %v5830_v50  ;;  %v9219_v2 = vpop.f32.mrf.mxu0  ;;  %v7558_v50 = vld [vmem:[#allocation8 + $0x56c] sm:$0xf]  ;;  %v7654_v55 = vld [vmem:[%s10153_s9 + $0x64] sm:$0xf0] }
 0x32b   : > { %3904 = vmatpush.bf16.msrb.mxu2 %v5958_v9  ;;  %3917 = vmatpush.bf16.msrb.mxu3 %v6086_v1  ;;  %v7622_v9 = vld [vmem:[#allocation8 + $0x76c] sm:$0xf]  ;;  %v6643_v1 = vld [vmem:[#allocation8 + $0x778] sm:$0xf0] }
 0x32c   : > { %v7652_v61 = vld [vmem:[%s10153_s9 + $0x54] sm:$0xf0] }
 0x32d   : > { %3879 = vmatmul.bf16.vlgmr.msrb.gmra.mxu0 %v9155_v34  ;;  %3892 = vmatmul.bf16.vlgmr.msrb.gmra.mxu1 %v9157_v4  ;;  %v6550_v34 = vor.u32 %v7598_v53, %v6547_v12  ;;  %v7562_v4 = vld [vmem:[#allocation8 + $0x58c] sm:$0xf]  ;;  %v6355_v12 = vld [vmem:[#allocation8 + $0x538] sm:$0xf0] }
 0x32e   : > { %3923 = vmatpush.bf16.msra.mxu0 %v6326_v22  ;;  %3936 = vmatpush.bf16.msra.mxu1 %v6454_v52  ;;  %v6406_v31 = vor.u32 %v7562_v4, %v6403_v45  ;;  %v6262_v22 = vor.u32 %v7526_v32, %v6259_v0  ;;  %v6390_v52 = vor.u32 %v7558_v50, %v6387_v36  ;;  %v7550_v53 = vld [vmem:[#allocation8 + $0x52c] sm:$0xf]  ;;  %v6339_v45 = vld [vmem:[#allocation8 + $0x518] sm:$0xf0]  ;;  %v6769_v32 = vld [vmem:[%s10153_s9 + $0x70] sm:$0xf] }
 0x32f   : > { %3949 = vmatpush.bf16.msra.mxu2 %v6582_v8  ;;  %3962 = vmatpush.bf16.msra.mxu3 %v6710_v14  ;;  %v6518_v8 = vor.u32 %v7590_v46, %v6515_v37  ;;  %v6646_v14 = vor.u32 %v7622_v9, %v6643_v1  ;;  %v6358_v30 = vor.u32 %v7550_v53, %v6355_v12  ;;  %v7656_v0 = vld [vmem:[%s10153_s9 + $0x74] sm:$0xf0]  ;;  %v3552_v46 = vperm.slane %v9198_v19, 1 }
 0x330   : > { %3905 = vmatmul.bf16.vlgmr.msrb.gmra.mxu2 %v9159_v7  ;;  %3918 = vmatmul.bf16.vlgmr.msrb.gmra.mxu3 %v9161_v21  ;;  %v6659_v7 = vld [vmem:[#allocation8 + $0x798] sm:$0xf0]  ;;  %v9221_v21 = vpop.f32.mrf.mxu1  ;;  %v6214_v50 = vor.u32 %v7514_v24, %v6211_v57  ;;  %v6470_v37 = vor.u32 %v7578_v38, %v6467_v43  ;;  %v6770_v1 = vor.u32 %v7656_v0, %v6769_v32  ;;  %v7668_v42 = vld [vmem:[%s10153_s9 + $0xd4] sm:$0xf0] }
 0x331   : > { %v6662_v11 = vor.u32 %v7626_v56, %v6659_v7  ;;  %v7648_v12 = vld [vmem:[%s10153_s9 + $0x34] sm:$0xf0] }
 0x332   : > { %3924 = vmatpush.bf16.msra.mxu0 %v6310_v62  ;;  %3937 = vmatpush.bf16.msra.mxu1 %v6438_v60  ;;  %v3674_v62 = vpop.f32.mrf.mxu0  ;;  %v7684_v38 = vld [vmem:[%s10153_s9 + $0x154] sm:$0xf0] }
 0x333   : > { %3950 = vmatpush.bf16.msra.mxu2 %v6566_v5  ;;  %3963 = vmatpush.bf16.msra.mxu3 %v6694_v25  ;;  %v9223_v15 = vpop.f32.mrf.mxu2  ;;  %v9225_v63 = vpop.f32.mrf.mxu3  ;;  %v7518_v5 = vld [vmem:[#allocation8 + $0x42c] sm:$0xf]  ;;  %v6227_v25 = vld [vmem:[#allocation8 + $0x438] sm:$0xf0]  ;;  %v6745_v62 = vld [vmem:[%s10153_s9 + $0x40] sm:$0xf] }
 0x334   : > { %v6230_v49 = vor.u32 %v7518_v5, %v6227_v25 }
 0x336   : > { %3925 = vmatpush.bf16.msra.mxu0 %v6294_v13  ;;  %3938 = vmatpush.bf16.msra.mxu1 %v6422_v10  ;;  %v7614_v13 = vld [vmem:[#allocation8 + $0x72c] sm:$0xf]  ;;  %v6611_v10 = vld [vmem:[#allocation8 + $0x738] sm:$0xf0] }
 0x337   : > { %3951 = vmatpush.bf16.msra.mxu2 %v6550_v34  ;;  %3964 = vmatpush.bf16.msra.mxu3 %v6678_v33  ;;  %v7546_v34 = vld [vmem:[#allocation8 + $0x50c] sm:$0xf]  ;;  %v6486_v33 = vor.u32 %v7582_v20, %v6483_v39  ;;  %v6614_v4 = vor.u32 %v7614_v13, %v6611_v10  ;;  %v6801_v20 = vld [vmem:[%s10153_s9 + $0xb0] sm:$0xf]  ;;  %v6889_v10 = vld [vmem:[%s10153_s9 + $0x160] sm:$0xf] }
 0x338   : > { %v3687_v60 = vpop.f32.mrf.mxu1  ;;  %v6342_v36 = vor.u32 %v7546_v34, %v6339_v45  ;;  %v7664_v13 = vld [vmem:[%s10153_s9 + $0xb4] sm:$0xf0]  ;;  %v6793_v45 = vld [vmem:[%s10153_s9 + $0xa0] sm:$0xf] }
 0x339   : > { %v7650_v60 = vld [vmem:[%s10153_s9 + $0x44] sm:$0xf0]  ;;  %v6802_v34 = vor.u32 %v7664_v13, %v6801_v20  ;;  %v6849_v13 = vld [vmem:[%s10153_s9 + $0x110] sm:$0xf] }
 0x33a   : > { %3926 = vmatpush.bf16.msra.mxu0 %v6278_v51  ;;  %3939 = vmatpush.bf16.msra.mxu1 %v6406_v31  ;;  %v7610_v51 = vld [vmem:[#allocation8 + $0x70c] sm:$0xf]  ;;  %v6595_v31 = vld [vmem:[#allocation8 + $0x718] sm:$0xf0] }
 0x33b   : > { %3952 = vmatpush.bf16.msra.mxu2 %v6534_v6  ;;  %3965 = vmatpush.bf16.msra.mxu3 %v6662_v11  ;;  %v3700_v56 = vpop.f32.mrf.mxu2  ;;  %v3713_v7 = vpop.f32.mrf.mxu3  ;;  %v6833_v6 = vld [vmem:[%s10153_s9 + $0xf0] sm:$0xf]  ;;  %v7672_v11 = vld [vmem:[%s10153_s9 + $0xf4] sm:$0xf0]  ;;  %v6598_v9 = vor.u32 %v7610_v51, %v6595_v31 }
 0x33e   : > { %3927 = vmatpush.bf16.msra.mxu0 %v6262_v22  ;;  %3940 = vmatpush.bf16.msra.mxu1 %v6390_v52  ;;  %v6834_v22 = vor.u32 %v7672_v11, %v6833_v6  ;;  %v6761_v52 = vld [vmem:[%s10153_s9 + $0x60] sm:$0xf] }
 0x33f   : > { %3953 = vmatpush.bf16.msra.mxu2 %v6518_v8  ;;  %3966 = vmatpush.bf16.msra.mxu3 %v6646_v14  ;;  %v7670_v8 = vld [vmem:[%s10153_s9 + $0xe4] sm:$0xf0]  ;;  %v3673_v14 = vadd.f32 %v9219_v2, %v3552_v46  ;;  %v6762_v35 = vor.u32 %v7654_v55, %v6761_v52  ;;  %v6817_v2 = vld [vmem:[%s10153_s9 + $0xd0] sm:$0xf]  ;;  %v6713_v52 = vld [vmem:[%s10153_s9] sm:$0xf] }
 0x340   : > { %v6826_v26 = vor.u32 %v7670_v8, %v6825_v40  ;;  %v6818_v16 = vor.u32 %v7668_v42, %v6817_v2  ;;  %v6785_v46 = vld [vmem:[%s10153_s9 + $0x90] sm:$0xf]  ;;  %v7680_v2 = vld [vmem:[%s10153_s9 + $0x134] sm:$0xf0] }
 0x342   : > { %3928 = vmatpush.bf16.msra.mxu0 %v6246_v54  ;;  %3941 = vmatpush.bf16.msra.mxu1 %v6374_v29  ;;  %v6897_v54 = vld [vmem:[%s10153_s9 + $0x170] sm:$0xf]  ;;  %v7688_v29 = vld [vmem:[%s10153_s9 + $0x174] sm:$0xf0] }
 0x343   : > { %3954 = vmatpush.bf16.msra.mxu2 %v6502_v18  ;;  %3967 = vmatpush.bf16.msra.mxu3 %v6630_v23  ;;  %v6898_v5 = vor.u32 %v7688_v29, %v6897_v54  ;;  %v6746_v23 = vor.u32 %v7650_v60, %v6745_v62  ;;  %v6835_v62 = vld [vmem:[%s10153_s9 + $0xf8] sm:$0xf0]  ;;  %v7653_v54 = vld [vmem:[%s10153_s9 + $0x64] sm:$0xf] }
 0x346   : > { %3929 = vmatpush.bf16.msra.mxu0 %v6230_v49  ;;  %3942 = vmatpush.bf16.msra.mxu1 %v6358_v30  ;;  %v7686_v49 = vld [vmem:[%s10153_s9 + $0x164] sm:$0xf0]  ;;  %v3621_v30 = vadd.f32 %v9207_v3, %v9205_v27  ;;  %v6881_v3 = vld [vmem:[%s10153_s9 + $0x150] sm:$0xf] }
 0x347   : > { %3955 = vmatpush.bf16.msra.mxu2 %v6486_v33  ;;  %3968 = vmatpush.bf16.msra.mxu3 %v6614_v4  ;;  %v6890_v24 = vor.u32 %v7686_v49, %v6889_v10  ;;  %v6729_v33 = vld [vmem:[%s10153_s9 + $0x20] sm:$0xf]  ;;  %v7646_v4 = vld [vmem:[%s10153_s9 + $0x24] sm:$0xf0]  ;;  %v6882_v51 = vor.u32 %v7684_v38, %v6881_v3  ;;  %v7676_v10 = vld [vmem:[%s10153_s9 + $0x114] sm:$0xf0] }
 0x348   : > { %v7662_v27 = vld [vmem:[%s10153_s9 + $0xa4] sm:$0xf0]  ;;  %v3634_v43 = vadd.f32 %v9209_v47, %v3621_v30  ;;  %v6730_v11 = vor.u32 %v7646_v4, %v6729_v33  ;;  %v7644_v47 = vld [vmem:[%s10153_s9 + $0x14] sm:$0xf0]  ;;  %v6819_v33 = vld [vmem:[%s10153_s9 + $0xd8] sm:$0xf0]  ;;  %v6850_v4 = vor.u32 %v7676_v10, %v6849_v13 }
 0x349   : > { %v6867_v13 = vld [vmem:[%s10153_s9 + $0x138] sm:$0xf0] }
 0x34a   : > { %3930 = vmatpush.bf16.msra.mxu0 %v6214_v50  ;;  %3943 = vmatpush.bf16.msra.mxu1 %v6342_v36  ;;  %v3724_v25 = vpop.f32.mrf.mxu0  ;;  %v3737_v18 = vpop.f32.mrf.mxu1  ;;  %v3647_v6 = vadd.f32 %v9211_v59, %v3634_v43  ;;  %v6794_v50 = vor.u32 %v7662_v27, %v6793_v45  ;;  %v6721_v36 = vld [vmem:[%s10153_s9 + $0x10] sm:$0xf]  ;;  %v7660_v59 = vld [vmem:[%s10153_s9 + $0x94] sm:$0xf0]  ;;  %v6841_v45 = vld [vmem:[%s10153_s9 + $0x100] sm:$0xf] }
 0x34b   : > { %3956 = vmatpush.bf16.msra.mxu2 %v6470_v37  ;;  %3969 = vmatpush.bf16.msra.mxu3 %v6598_v9  ;;  %v6873_v9 = vld [vmem:[%s10153_s9 + $0x140] sm:$0xf]  ;;  %v6722_v40 = vor.u32 %v7644_v47, %v6721_v36  ;;  %v6786_v8 = vor.u32 %v7660_v59, %v6785_v46  ;;  %v7674_v27 = vld [vmem:[%s10153_s9 + $0x104] sm:$0xf0]  ;;  %v7649_v43 = vld [vmem:[%s10153_s9 + $0x44] sm:$0xf] }
 0x34c   : > { %v3660_v55 = vadd.f32 %v9213_v28, %v3647_v6  ;;  %v7655_v28 = vld [vmem:[%s10153_s9 + $0x74] sm:$0xf] }
 0x34d   : > { %3931 = vmatmul.bf16.vlgmr.msra.gmra.mxu0 %v9171_v44  ;;  %3944 = vmatmul.bf16.vlgmr.msra.gmra.mxu1 %v9173_v48  ;;  %v3686_v44 = vadd.f32 %v9221_v21, %v3673_v14  ;;  %v6754_v48 = vor.u32 %v7652_v61, %v6753_v41  ;;  %v7666_v21 = vld [vmem:[%s10153_s9 + $0xc4] sm:$0xf0]  ;;  %v6865_v61 = vld [vmem:[%s10153_s9 + $0x130] sm:$0xf]  ;;  %v7647_v46 = vld [vmem:[%s10153_s9 + $0x34] sm:$0xf] }
 0x34e   : > { %4373 = vmatpush.bf16.msrb.mxu0 %v6770_v1  ;;  %4386 = vmatpush.bf16.msrb.mxu1 %v6834_v22  ;;  %v7682_v1 = vld [vmem:[%s10153_s9 + $0x144] sm:$0xf0]  ;;  %v6866_v60 = vor.u32 %v7680_v2, %v6865_v61  ;;  %v7663_v59 = vld [vmem:[%s10153_s9 + $0xb4] sm:$0xf] }
 0x34f   : > { %3957 = vmatmul.bf16.vlgmr.msra.gmra.mxu2 %v9175_v17  ;;  %3970 = vmatmul.bf16.vlgmr.msra.gmra.mxu3 %v9177_v58  ;;  %v6809_v17 = vld [vmem:[%s10153_s9 + $0xc0] sm:$0xf]  ;;  %v3699_v58 = vadd.f32 %v9223_v15, %v3686_v44  ;;  %v6737_v15 = vld [vmem:[%s10153_s9 + $0x30] sm:$0xf]  ;;  %v6874_v22 = vor.u32 %v7682_v1, %v6873_v9  ;;  %v7642_v14 = vld [vmem:[%s10153_s9 + $0x4] sm:$0xf0] }
 0x350   : > { %v6810_v53 = vor.u32 %v7666_v21, %v6809_v17  ;;  %4399 = vmatpush.bf16.msrb.mxu2 %v6898_v5  ;;  %v3975_v17 = vmax.f32 %v3660_v55, 0.0  ;;  %v6803_v9 = vld [vmem:[%s10153_s9 + $0xb8] sm:$0xf0]  ;;  %v7685_v1 = vld [vmem:[%s10153_s9 + $0x164] sm:$0xf] }
 0x351   : > { %v3712_v39 = vadd.f32 %v9225_v63, %v3699_v58  ;;  %v6738_v63 = vor.u32 %v7648_v12, %v6737_v15  ;;  %v6714_v58 = vor.u32 %v7642_v14, %v6713_v52  ;;  %v7669_v15 = vld [vmem:[%s10153_s9 + $0xe4] sm:$0xf]  ;;  %v6827_v12 = vld [vmem:[%s10153_s9 + $0xe8] sm:$0xf0] }
 0x352   : > { %4374 = vmatpush.bf16.msrb.mxu0 %v6762_v35  ;;  %4387 = vmatpush.bf16.msrb.mxu1 %v6826_v26  ;;  %v3726_v32 = vpop.f32.mrf.mxu0  ;;  %v3739_v0 = vpop.f32.mrf.mxu1  ;;  %v6777_v35 = vld [vmem:[%s10153_s9 + $0x80] sm:$0xf]  ;;  %v7658_v26 = vld [vmem:[%s10153_s9 + $0x84] sm:$0xf0]  ;;  %v6731_v14 = vld [vmem:[%s10153_s9 + $0x28] sm:$0xf0] }
 0x353   : > { %v3725_v57 = vadd.f32 %v3724_v25, %v3712_v39  ;;  %v3750_v56 = vpop.f32.mrf.mxu2  ;;  %v3763_v7 = vpop.f32.mrf.mxu3  ;;  %v6778_v21 = vor.u32 %v7658_v26, %v6777_v35  ;;  %v9397_v39 = vpack.c.bf16 %v3975_v17, %v3975_v17  ;;  %v7687_v32 = vld [vmem:[%s10153_s9 + $0x174] sm:$0xf]  ;;  %v6899_v0 = vld [vmem:[%s10153_s9 + $0x178] sm:$0xf0]  ;;  %v7661_v35 = vld [vmem:[%s10153_s9 + $0xa4] sm:$0xf] }
 0x354   : > { %4400 = vmatpush.bf16.msrb.mxu2 %v6890_v24  ;;  %v6830_v24 = vor.u32 %v7669_v15, %v6827_v12  ;;  %v6902_v6 = vor.u32 %v7687_v32, %v6899_v0  ;;  %v6795_v26 = vld [vmem:[%s10153_s9 + $0xa8] sm:$0xf0]  ;;  %v6723_v17 = vld [vmem:[%s10153_s9 + $0x18] sm:$0xf0]  ;;  %v7657_v15 = vld [vmem:[%s10153_s9 + $0x84] sm:$0xf] }
 0x355   : > { %v3738_v31 = vadd.f32 %v3737_v18, %v3725_v57  ;;  %v6857_v18 = vld [vmem:[%s10153_s9 + $0x120] sm:$0xf]  ;;  %v7651_v57 = vld [vmem:[%s10153_s9 + $0x54] sm:$0xf]  ;;  %v6779_v12 = vld [vmem:[%s10153_s9 + $0x88] sm:$0xf0] }
 0x356   : > { %4375 = vmatpush.bf16.msrb.mxu0 %v6754_v48  ;;  %4388 = vmatpush.bf16.msrb.mxu1 %v6818_v16  ;;  %v6771_v48 = vld [vmem:[%s10153_s9 + $0x78] sm:$0xf0]  ;;  %v7671_v16 = vld [vmem:[%s10153_s9 + $0xf4] sm:$0xf]  ;;  %v6961_v32 = vld [vmem:[%s10153_s9 + $0x1f0] sm:$0xf] }
 0x357   : > { %v3751_v37 = vadd.f32 %v3750_v56, %v3738_v31  ;;  %v6774_v5 = vor.u32 %v7655_v28, %v6771_v48  ;;  %v6838_v25 = vor.u32 %v7671_v16, %v6835_v62  ;;  %v6747_v56 = vld [vmem:[%s10153_s9 + $0x48] sm:$0xf0]  ;;  %v6842_v31 = vor.u32 %v7674_v27, %v6841_v45  ;;  %v6883_v28 = vld [vmem:[%s10153_s9 + $0x158] sm:$0xf0]  ;;  %v7675_v27 = vld [vmem:[%s10153_s9 + $0x114] sm:$0xf] }
 0x358   : > { %4401 = vmatpush.bf16.msrb.mxu2 %v6882_v51  ;;  %v6811_v51 = vld [vmem:[%s10153_s9 + $0xc8] sm:$0xf0]  ;;  %v6750_v36 = vor.u32 %v7649_v43, %v6747_v56  ;;  %v6798_v62 = vor.u32 %v7661_v35, %v6795_v26  ;;  %v7673_v43 = vld [vmem:[%s10153_s9 + $0x104] sm:$0xf]  ;;  %v7698_v35 = vld [vmem:[%s10153_s9 + $0x1c4] sm:$0xf0] }
 0x359   : > { %v3764_v41 = vadd.f32 %v3763_v7, %v3751_v37  ;;  %v7665_v7 = vld [vmem:[%s10153_s9 + $0xc4] sm:$0xf]  ;;  %v6739_v37 = vld [vmem:[%s10153_s9 + $0x38] sm:$0xf0]  ;;  %v6843_v56 = vld [vmem:[%s10153_s9 + $0x108] sm:$0xf0] }
 0x35a   : > { %4376 = vmatpush.bf16.msrb.mxu0 %v6746_v23  ;;  %4389 = vmatpush.bf16.msrb.mxu1 %v6810_v53  ;;  %v7678_v23 = vld [vmem:[%s10153_s9 + $0x124] sm:$0xf0]  ;;  %v6763_v53 = vld [vmem:[%s10153_s9 + $0x68] sm:$0xf0]  ;;  %v6814_v47 = vor.u32 %v7665_v7, %v6811_v51  ;;  %v6742_v55 = vor.u32 %v7647_v46, %v6739_v37  ;;  %v6945_v37 = vld [vmem:[%s10153_s9 + $0x1d0] sm:$0xf] }
 0x35b   : > { %v3752_v42 = vpop.f32.mrf.mxu2  ;;  %v3765_v44 = vpop.f32.mrf.mxu3  ;;  %v3976_v29 = vmax.f32 %v3764_v41, 0.0  ;;  %v6858_v20 = vor.u32 %v7678_v23, %v6857_v18  ;;  %v6766_v30 = vor.u32 %v7653_v54, %v6763_v53  ;;  %v7683_v41 = vld [vmem:[%s10153_s9 + $0x154] sm:$0xf]  ;;  %v7681_v54 = vld [vmem:[%s10153_s9 + $0x144] sm:$0xf] }
 0x35c   : > { %4402 = vmatpush.bf16.msrb.mxu2 %v6874_v22  ;;  %v6891_v22 = vld [vmem:[%s10153_s9 + $0x168] sm:$0xf0]  ;;  %v6886_v61 = vor.u32 %v7683_v41, %v6883_v28  ;;  %v7641_v23 = vld [vmem:[%s10153_s9 + $0x4] sm:$0xf] }
 0x35d   : > { %v9405_v49 = vpack.c.bf16 %v3976_v29, %v3976_v29  ;;  %v6894_v52 = vor.u32 %v7685_v1, %v6891_v22  ;;  %v6875_v29 = vld [vmem:[%s10153_s9 + $0x148] sm:$0xf0] }
 0x35e   : > { %4377 = vmatpush.bf16.msrb.mxu0 %v6738_v63  ;;  %4390 = vmatpush.bf16.msrb.mxu1 %v6802_v34  ;;  %v6755_v63 = vld [vmem:[%s10153_s9 + $0x58] sm:$0xf0]  ;;  %v7667_v34 = vld [vmem:[%s10153_s9 + $0xd4] sm:$0xf]  ;;  %v6715_v53 = vld [vmem:[%s10153_s9 + $0x8] sm:$0xf0] }
 0x35f   : > { %v6758_v3 = vor.u32 %v7651_v57, %v6755_v63  ;;  %v6822_v38 = vor.u32 %v7667_v34, %v6819_v33  ;;  %v7677_v57 = vld [vmem:[%s10153_s9 + $0x124] sm:$0xf]  ;;  %v6859_v63 = vld [vmem:[%s10153_s9 + $0x128] sm:$0xf0]  ;;  %v3553_v34 = vperm.slane %v9198_v19, 2  ;;  %v6718_v33 = vor.u32 %v7641_v23, %v6715_v53 }
 0x360   : > { %4403 = vmatpush.bf16.msrb.mxu2 %v6866_v60  ;;  %v7643_v60 = vld [vmem:[%s10153_s9 + $0x14] sm:$0xf]  ;;  %v6862_v45 = vor.u32 %v7677_v57, %v6859_v63  ;;  %v6963_v23 = vld [vmem:[%s10153_s9 + $0x1f8] sm:$0xf0] }
 0x362   : > { %4378 = vmatpush.bf16.msrb.mxu0 %v6730_v11  ;;  %4391 = vmatpush.bf16.msrb.mxu1 %v6794_v50 }
 0x364   : > { %4404 = vmatpush.bf16.msrb.mxu2 %v6858_v20  ;;  %v7679_v20 = vld [vmem:[%s10153_s9 + $0x134] sm:$0xf] }
 0x365   : > { %v6870_v10 = vor.u32 %v7679_v20, %v6867_v13 }
 0x366   : > { %4379 = vmatpush.bf16.msrb.mxu0 %v6722_v40  ;;  %4392 = vmatpush.bf16.msrb.mxu1 %v6786_v8  ;;  %v6806_v40 = vor.u32 %v7663_v59, %v6803_v9  ;;  %v7645_v8 = vld [vmem:[%s10153_s9 + $0x24] sm:$0xf]  ;;  %v7700_v59 = vld [vmem:[%s10153_s9 + $0x1d4] sm:$0xf0] }
 0x367   : > { %v6734_v16 = vor.u32 %v7645_v8, %v6731_v14  ;;  %v6946_v9 = vor.u32 %v7700_v59, %v6945_v37  ;;  %v6937_v14 = vld [vmem:[%s10153_s9 + $0x1c0] sm:$0xf] }
 0x368   : > { %4405 = vmatpush.bf16.msrb.mxu2 %v6850_v4  ;;  %v6782_v4 = vor.u32 %v7657_v15, %v6779_v12  ;;  %v6938_v26 = vor.u32 %v7698_v35, %v6937_v14  ;;  %v7701_v15 = vld [vmem:[%s10153_s9 + $0x1e4] sm:$0xf]  ;;  %v6955_v12 = vld [vmem:[%s10153_s9 + $0x1e8] sm:$0xf0] }
 0x36a   : > { %4380 = vmatpush.bf16.msrb.mxu0 %v6714_v58  ;;  %4393 = vmatpush.bf16.msrb.mxu1 %v6778_v21  ;;  %v9445_v11 = vpop.f32.mrf.mxu0  ;;  %v9447_v50 = vpop.f32.mrf.mxu1  ;;  %v7659_v58 = vld [vmem:[%s10153_s9 + $0x94] sm:$0xf]  ;;  %v6787_v21 = vld [vmem:[%s10153_s9 + $0x98] sm:$0xf0] }
 0x36b   : > { %v6790_v18 = vor.u32 %v7659_v58, %v6787_v21  ;;  %v6913_v58 = vld [vmem:[%s10153_s9 + $0x190] sm:$0xf]  ;;  %v7692_v21 = vld [vmem:[%s10153_s9 + $0x194] sm:$0xf0] }
 0x36c   : > { %4406 = vmatpush.bf16.msrb.mxu2 %v6842_v31  ;;  %v6846_v31 = vor.u32 %v7673_v43, %v6843_v56  ;;  %v7693_v56 = vld [vmem:[%s10153_s9 + $0x1a4] sm:$0xf] }
 0x36d   : > { %4381 = vmatmul.bf16.vlgmr.msrb.gmra.mxu0 %v9397_v39  ;;  %4394 = vmatmul.bf16.vlgmr.msrb.gmra.mxu1 %v9405_v49 }
 0x36e   : > { %4425 = vmatpush.bf16.msra.mxu0 %v6774_v5  ;;  %4438 = vmatpush.bf16.msra.mxu1 %v6838_v25  ;;  %v6878_v5 = vor.u32 %v7681_v54, %v6875_v29  ;;  %v6726_v25 = vor.u32 %v7643_v60, %v6723_v17  ;;  %v6914_v54 = vor.u32 %v7692_v21, %v6913_v58  ;;  %v6905_v29 = vld [vmem:[%s10153_s9 + $0x180] sm:$0xf] }
 0x370   : > { %4451 = vmatpush.bf16.msra.mxu2 %v6902_v6 }
 0x372   : > { %4426 = vmatpush.bf16.msra.mxu0 %v6766_v30  ;;  %4439 = vmatpush.bf16.msra.mxu1 %v6830_v24  ;;  %v3778_v44 = vpop.f32.mrf.mxu0  ;;  %v3791_v48 = vpop.f32.mrf.mxu1 }
 0x373   : > { %v3802_v2 = vpop.f32.mrf.mxu2  ;;  %v3815_v42 = vpop.f32.mrf.mxu3  ;;  %v6921_v44 = vld [vmem:[%s10153_s9 + $0x1a0] sm:$0xf]  ;;  %v7694_v48 = vld [vmem:[%s10153_s9 + $0x1a4] sm:$0xf0] }
 0x374   : > { %4452 = vmatpush.bf16.msra.mxu2 %v6894_v52  ;;  %v6922_v17 = vor.u32 %v7694_v48, %v6921_v44  ;;  %v4047_v44 = vld [vmem:[%s10154_s10] sm:$0x3] }
 0x375   : > { %v4369_v48 = vperm.slane %v4047_v44, 0 }
 0x376   : > { %4427 = vmatpush.bf16.msra.mxu0 %v6758_v3  ;;  %4440 = vmatpush.bf16.msra.mxu1 %v6822_v38  ;;  %v6851_v3 = vld [vmem:[%s10153_s9 + $0x118] sm:$0xf0]  ;;  %v3777_v38 = vadd.f32 %v9445_v11, %v3553_v34 }
 0x377   : > { %v6854_v19 = vor.u32 %v7675_v27, %v6851_v3 }
 0x378   : > { %4453 = vmatpush.bf16.msra.mxu2 %v6886_v61  ;;  %v3790_v7 = vadd.f32 %v9447_v50, %v3777_v38  ;;  %v6953_v50 = vld [vmem:[%s10153_s9 + $0x1e0] sm:$0xf]  ;;  %v6929_v61 = vld [vmem:[%s10153_s9 + $0x1b0] sm:$0xf]  ;;  %v7695_v38 = vld [vmem:[%s10153_s9 + $0x1b4] sm:$0xf] }
 0x37a   : > { %4428 = vmatpush.bf16.msra.mxu0 %v6750_v36  ;;  %4441 = vmatpush.bf16.msra.mxu1 %v6814_v47  ;;  %v3803_v51 = vadd.f32 %v3802_v2, %v3790_v7  ;;  %v7702_v36 = vld [vmem:[%s10153_s9 + $0x1e4] sm:$0xf0]  ;;  %v7696_v2 = vld [vmem:[%s10153_s9 + $0x1b4] sm:$0xf0]  ;;  %v6923_v7 = vld [vmem:[%s10153_s9 + $0x1a8] sm:$0xf0] }
 0x37b   : > { %v3804_v30 = vpop.f32.mrf.mxu2  ;;  %v3817_v24 = vpop.f32.mrf.mxu3  ;;  %v6954_v47 = vor.u32 %v7702_v36, %v6953_v50  ;;  %v7689_v36 = vld [vmem:[%s10153_s9 + $0x184] sm:$0xf] }
 0x37c   : > { %4454 = vmatpush.bf16.msra.mxu2 %v6878_v5  ;;  %v3816_v0 = vadd.f32 %v3815_v42, %v3803_v51  ;;  %v6930_v42 = vor.u32 %v7696_v2, %v6929_v61  ;;  %v7690_v5 = vld [vmem:[%s10153_s9 + $0x184] sm:$0xf0]  ;;  %v7699_v30 = vld [vmem:[%s10153_s9 + $0x1d4] sm:$0xf]  ;;  %v6947_v24 = vld [vmem:[%s10153_s9 + $0x1d8] sm:$0xf0]  ;;  %v6926_v51 = vor.u32 %v7693_v56, %v6923_v7 }
 0x37d   : > { %v6950_v57 = vor.u32 %v7699_v30, %v6947_v24  ;;  %v7049_v24 = vld [vmem:[%s10155_s11 + $0xa0] sm:$0xf]  ;;  %v7767_v7 = vld [vmem:[%s10155_s11 + $0x1ec] sm:$0xf0] }
 0x37e   : > { %4429 = vmatpush.bf16.msra.mxu0 %v6742_v55  ;;  %4442 = vmatpush.bf16.msra.mxu1 %v6806_v40 }
 0x380   : > { %4455 = vmatpush.bf16.msra.mxu2 %v6870_v10  ;;  %v6958_v10 = vor.u32 %v7701_v15, %v6955_v12  ;;  %v7065_v12 = vld [vmem:[%s10155_s11 + $0xc0] sm:$0xf] }
 0x382   : > { %4430 = vmatpush.bf16.msra.mxu0 %v6734_v16  ;;  %4443 = vmatpush.bf16.msra.mxu1 %v6798_v62 }
 0x384   : > { %4456 = vmatpush.bf16.msra.mxu2 %v6862_v45 }
 0x386   : > { %4431 = vmatpush.bf16.msra.mxu0 %v6726_v25  ;;  %4444 = vmatpush.bf16.msra.mxu1 %v6790_v18  ;;  %v6906_v25 = vor.u32 %v7690_v5, %v6905_v29  ;;  %v7703_v18 = vld [vmem:[%s10153_s9 + $0x1f4] sm:$0xf] }
 0x387   : > { %v6966_v53 = vor.u32 %v7703_v18, %v6963_v23  ;;  %v7081_v23 = vld [vmem:[%s10155_s11 + $0xe0] sm:$0xf] }
 0x388   : > { %4457 = vmatpush.bf16.msra.mxu2 %v6854_v19  ;;  %v6931_v19 = vld [vmem:[%s10153_s9 + $0x1b8] sm:$0xf0] }
 0x389   : > { %v6934_v43 = vor.u32 %v7695_v38, %v6931_v19  ;;  %v7017_v38 = vld [vmem:[%s10155_s11 + $0x60] sm:$0xf]  ;;  %v7719_v19 = vld [vmem:[%s10155_s11 + $0x6c] sm:$0xf0] }
 0x38a   : > { %4432 = vmatpush.bf16.msra.mxu0 %v6718_v33  ;;  %4445 = vmatpush.bf16.msra.mxu1 %v6782_v4  ;;  %v3828_v6 = vpop.f32.mrf.mxu0  ;;  %v3841_v11 = vpop.f32.mrf.mxu1  ;;  %v7697_v33 = vld [vmem:[%s10153_s9 + $0x1c4] sm:$0xf]  ;;  %v6939_v4 = vld [vmem:[%s10153_s9 + $0x1c8] sm:$0xf0]  ;;  %v7018_v56 = vor.u32 %v7719_v19, %v7017_v38  ;;  %v6987_v19 = vld [vmem:[%s10155_s11 + $0x30] sm:$0xf0] }
 0x38b   : > { %v3829_v46 = vadd.f32 %v3828_v6, %v3816_v0  ;;  %v6942_v3 = vor.u32 %v7697_v33, %v6939_v4  ;;  %v7691_v0 = vld [vmem:[%s10153_s9 + $0x194] sm:$0xf]  ;;  %v6915_v6 = vld [vmem:[%s10153_s9 + $0x198] sm:$0xf0]  ;;  %v7723_v33 = vld [vmem:[%s10155_s11 + $0x8c] sm:$0xf0] }
 0x38c   : > { %4458 = vmatpush.bf16.msra.mxu2 %v6846_v31  ;;  %v7868_v31 = vld [vmem:[%s10152_s8] sm:$0xf]  ;;  %v7733_v4 = vld [vmem:[%s10155_s11 + $0xe4] sm:$0xf] }
 0x38d   : > { %4433 = vmatmul.bf16.vlgmr.msra.gmra.mxu0 %v9397_v39  ;;  %4446 = vmatmul.bf16.vlgmr.msra.gmra.mxu1 %v9405_v49  ;;  %v7704_v39 = vld [vmem:[%s10153_s9 + $0x1f4] sm:$0xf0]  ;;  %v3842_v1 = vadd.f32 %v3841_v11, %v3829_v46  ;;  %v6918_v11 = vor.u32 %v7691_v0, %v6915_v6  ;;  %v7715_v0 = vld [vmem:[%s10155_s11 + $0x4c] sm:$0xf0]  ;;  %v7193_v6 = vld [vmem:[%s10155_s11 + $0x1c0] sm:$0xf] }
 0x38e   : > { %v6962_v49 = vor.u32 %v7704_v39, %v6961_v32  ;;  %v3554_v32 = vperm.slane %v7868_v31, 3  ;;  %v7067_v31 = vld [vmem:[%s10155_s11 + $0xd0] sm:$0xf0]  ;;  %v7709_v38 = vld [vmem:[%s10155_s11 + $0x24] sm:$0xf] }
 0x390   : > { %4412 = vmatpush.bf16.msrb.mxu3 %v6962_v49 }
 0x392   : > { %v3830_v40 = vpop.f32.mrf.mxu0  ;;  %v3843_v8 = vpop.f32.mrf.mxu1 }
 0x393   : > { %v3854_v22 = vpop.f32.mrf.mxu2  ;;  %v3867_v52 = vpop.f32.mrf.mxu3 }
 0x394   : > { %4413 = vmatpush.bf16.msrb.mxu3 %v6954_v47  ;;  %v3855_v55 = vadd.f32 %v3854_v22, %v3842_v1  ;;  %v6907_v47 = vld [vmem:[%s10153_s9 + $0x188] sm:$0xf0] }
 0x395   : > { %v6910_v46 = vor.u32 %v7689_v36, %v6907_v47  ;;  %v7725_v36 = vld [vmem:[%s10155_s11 + $0xa4] sm:$0xf]  ;;  %v7051_v47 = vld [vmem:[%s10155_s11 + $0xb0] sm:$0xf0] }
 0x396   : > { %v3868_v41 = vadd.f32 %v3867_v52, %v3855_v55 }
 0x398   : > { %4414 = vmatpush.bf16.msrb.mxu3 %v6946_v9  ;;  %v3977_v28 = vmax.f32 %v3868_v41, 0.0 }
 0x39a   : > { %v3981_v16 = vpack.c.bf16 %v3977_v28, %v3977_v28 }
 0x39b   : > { %v3856_v62 = vpop.f32.mrf.mxu2  ;;  %v3869_v60 = vpop.f32.mrf.mxu3 }
 0x39c   : > { %4415 = vmatpush.bf16.msrb.mxu3 %v6938_v26  ;;  %4407 = vmatmul.bf16.vlgmr.msrb.gmra.mxu2 %v3981_v16 }
 0x3a0   : > { %4416 = vmatpush.bf16.msrb.mxu3 %v6930_v42 }
 0x3a4   : > { %4417 = vmatpush.bf16.msrb.mxu3 %v6922_v17 }
 0x3a8   : > { %4418 = vmatpush.bf16.msrb.mxu3 %v6914_v54  ;;  %v4370_v54 = vperm.slane %v4047_v44, 1  ;;  %v7019_v44 = vld [vmem:[%s10155_s11 + $0x70] sm:$0xf0] }
 0x3aa   : > { %v3880_v20 = vpop.f32.mrf.mxu0  ;;  %v3893_v13 = vpop.f32.mrf.mxu1 }
 0x3ab   : > { %v3881_v50 = vadd.f32 %v3880_v20, %v3554_v32  ;;  %v7731_v20 = vld [vmem:[%s10155_s11 + $0xcc] sm:$0xf0] }
 0x3ac   : > { %4419 = vmatpush.bf16.msrb.mxu3 %v6906_v25  ;;  %4459 = vmatmul.bf16.vlgmr.msra.gmra.mxu2 %v3981_v16 }
 0x3ad   : > { %v3894_v37 = vadd.f32 %v3893_v13, %v3881_v50  ;;  %v7066_v13 = vor.u32 %v7731_v20, %v7065_v12  ;;  %v7763_v50 = vld [vmem:[%s10155_s11 + $0x1cc] sm:$0xf0]  ;;  %v7003_v20 = vld [vmem:[%s10155_s11 + $0x50] sm:$0xf0] }
 0x3b0   : > { %4464 = vmatpush.bf16.msra.mxu3 %v6966_v53  ;;  %v7735_v53 = vld [vmem:[%s10155_s11 + $0xec] sm:$0xf0] }
 0x3b1   : > { %v7082_v15 = vor.u32 %v7735_v53, %v7081_v23  ;;  %v7751_v23 = vld [vmem:[%s10155_s11 + $0x16c] sm:$0xf0]  ;;  %v7713_v53 = vld [vmem:[%s10155_s11 + $0x44] sm:$0xf] }
 0x3b2   : > { %v3882_v45 = vpop.f32.mrf.mxu0  ;;  %v3895_v27 = vpop.f32.mrf.mxu1 }
 0x3b3   : > { %v3906_v63 = vpop.f32.mrf.mxu2  ;;  %v3919_v34 = vpop.f32.mrf.mxu3  ;;  %4875 = vmatpush.bf16.msrb.mxu0 %v7082_v15  ;;  %v7083_v27 = vld [vmem:[%s10155_s11 + $0xf0] sm:$0xf0] }
 0x3b4   : > { %4465 = vmatpush.bf16.msra.mxu3 %v6958_v10  ;;  %v3907_v59 = vadd.f32 %v3906_v63, %v3894_v37  ;;  %v7054_v37 = vor.u32 %v7725_v36, %v7051_v47  ;;  %v6971_v36 = vld [vmem:[%s10155_s11 + $0x10] sm:$0xf0]  ;;  %v7041_v47 = vld [vmem:[%s10155_s11 + $0x88] sm:$0xf] }
 0x3b6   : > { %v3920_v9 = vadd.f32 %v3919_v34, %v3907_v59  ;;  %v7033_v34 = vld [vmem:[%s10155_s11 + $0x80] sm:$0xf] }
 0x3b7   : > { %4876 = vmatpush.bf16.msrb.mxu0 %v7066_v13  ;;  %v7034_v45 = vor.u32 %v7723_v33, %v7033_v34  ;;  %v6985_v59 = vld [vmem:[%s10155_s11 + $0x20] sm:$0xf]  ;;  %v7757_v13 = vld [vmem:[%s10155_s11 + $0x1a4] sm:$0xf]  ;;  %v7006_v34 = vor.u32 %v7713_v53, %v7003_v20  ;;  %v7059_v20 = vld [vmem:[%s10155_s11 + $0xb8] sm:$0xf0] }
 0x3b8   : > { %4466 = vmatpush.bf16.msra.mxu3 %v6950_v57  ;;  %v7727_v57 = vld [vmem:[%s10155_s11 + $0xac] sm:$0xf0]  ;;  %v7129_v33 = vld [vmem:[%s10155_s11 + $0x140] sm:$0xf] }
 0x3b9   : > { %v7050_v63 = vor.u32 %v7727_v57, %v7049_v24  ;;  %v7732_v24 = vld [vmem:[%s10155_s11 + $0xd4] sm:$0xf0] }
 0x3bb   : > { %v3908_v39 = vpop.f32.mrf.mxu2  ;;  %v3921_v49 = vpop.f32.mrf.mxu3  ;;  %4877 = vmatpush.bf16.msrb.mxu0 %v7050_v63 }
 0x3bc   : > { %4467 = vmatpush.bf16.msra.mxu3 %v6942_v3  ;;  %v7086_v3 = vor.u32 %v7733_v4, %v7083_v27  ;;  %v7001_v49 = vld [vmem:[%s10155_s11 + $0x40] sm:$0xf]  ;;  %v7753_v4 = vld [vmem:[%s10155_s11 + $0x184] sm:$0xf] }
 0x3be   : > { %4901 = vmatpush.bf16.msrb.mxu2 %v7086_v3  ;;  %v7747_v3 = vld [vmem:[%s10155_s11 + $0x14c] sm:$0xf0] }
 0x3bf   : > { %4878 = vmatpush.bf16.msrb.mxu0 %v7034_v45  ;;  %v7163_v45 = vld [vmem:[%s10155_s11 + $0x190] sm:$0xf0] }
 0x3c0   : > { %4468 = vmatpush.bf16.msra.mxu3 %v6934_v43  ;;  %v7209_v43 = vld [vmem:[%s10155_s11 + $0x1e0] sm:$0xf] }
 0x3c1   : > { %v7210_v32 = vor.u32 %v7767_v7, %v7209_v43  ;;  %v7728_v7 = vld [vmem:[%s10155_s11 + $0xb4] sm:$0xf0] }
 0x3c3   : > { %4879 = vmatpush.bf16.msrb.mxu0 %v7018_v56  ;;  %4888 = vmatpush.bf16.msrb.mxu1 %v7210_v32  ;;  %v7057_v56 = vld [vmem:[%s10155_s11 + $0xa8] sm:$0xf]  ;;  %v7130_v32 = vor.u32 %v7747_v3, %v7129_v33  ;;  %v7760_v33 = vld [vmem:[%s10155_s11 + $0x1b4] sm:$0xf0]  ;;  %v7043_v3 = vld [vmem:[%s10155_s11 + $0x98] sm:$0xf0] }
 0x3c4   : > { %4469 = vmatpush.bf16.msra.mxu3 %v6926_v51  ;;  %v7729_v51 = vld [vmem:[%s10155_s11 + $0xc4] sm:$0xf] }
 0x3c5   : > { %v7070_v39 = vor.u32 %v7729_v51, %v7067_v31  ;;  %v7113_v51 = vld [vmem:[%s10155_s11 + $0x120] sm:$0xf]  ;;  %v7166_v31 = vor.u32 %v7753_v4, %v7163_v45 }
 0x3c7   : > { %4902 = vmatpush.bf16.msrb.mxu2 %v7070_v39  ;;  %v6990_v39 = vor.u32 %v7709_v38, %v6987_v19  ;;  %v7737_v19 = vld [vmem:[%s10155_s11 + $0x104] sm:$0xf] }
 0x3c8   : > { %4470 = vmatpush.bf16.msra.mxu3 %v6918_v11  ;;  %v7002_v11 = vor.u32 %v7715_v0, %v7001_v49  ;;  %v7743_v49 = vld [vmem:[%s10155_s11 + $0x12c] sm:$0xf0]  ;;  %v7749_v0 = vld [vmem:[%s10155_s11 + $0x164] sm:$0xf] }
 0x3ca   : > { %v3932_v1 = vpop.f32.mrf.mxu0  ;;  %v3945_v22 = vpop.f32.mrf.mxu1  ;;  %4880 = vmatpush.bf16.msrb.mxu0 %v7002_v11  ;;  %v7058_v11 = vor.u32 %v7728_v7, %v7057_v56  ;;  %v6977_v56 = vld [vmem:[%s10155_s11 + $0x8] sm:$0xf] }
 0x3cb   : > { %v3933_v52 = vadd.f32 %v3932_v1, %v3920_v9  ;;  %v7711_v9 = vld [vmem:[%s10155_s11 + $0x2c] sm:$0xf0]  ;;  %v7177_v1 = vld [vmem:[%s10155_s11 + $0x1a0] sm:$0xf]  ;;  %4903 = vmatpush.bf16.msrb.mxu2 %v7054_v37  ;;  %v7734_v37 = vld [vmem:[%s10155_s11 + $0xec] sm:$0xf] }
 0x3cc   : > { %4471 = vmatpush.bf16.msra.mxu3 %v6910_v46  ;;  %v7194_v46 = vor.u32 %v7763_v50, %v7193_v6  ;;  %v7147_v6 = vld [vmem:[%s10155_s11 + $0x170] sm:$0xf0]  ;;  %v7705_v50 = vld [vmem:[%s10155_s11 + $0x4] sm:$0xf] }
 0x3cd   : > { %v3946_v55 = vadd.f32 %v3945_v22, %v3933_v52  ;;  %v7759_v22 = vld [vmem:[%s10155_s11 + $0x1ac] sm:$0xf0]  ;;  %v7721_v52 = vld [vmem:[%s10155_s11 + $0x84] sm:$0xf] }
 0x3ce   : > { %4889 = vmatpush.bf16.msrb.mxu1 %v7194_v46  ;;  %v7724_v46 = vld [vmem:[%s10155_s11 + $0x94] sm:$0xf0] }
 0x3d2   : > { %v3958_v40 = vpop.f32.mrf.mxu2  ;;  %v3971_v8 = vpop.f32.mrf.mxu3 }
 0x3d3   : > { %v3959_v14 = vadd.f32 %v3958_v40, %v3946_v55  ;;  %v3934_v35 = vpop.f32.mrf.mxu0  ;;  %v3947_v26 = vpop.f32.mrf.mxu1  ;;  %v7035_v55 = vld [vmem:[%s10155_s11 + $0x90] sm:$0xf0]  ;;  %v6986_v40 = vor.u32 %v7711_v9, %v6985_v59  ;;  %v7091_v59 = vld [vmem:[%s10155_s11 + $0xf8] sm:$0xf0]  ;;  %v7150_v9 = vor.u32 %v7749_v0, %v7147_v6  ;;  %v7718_v0 = vld [vmem:[%s10155_s11 + $0x6c] sm:$0xf] }
 0x3d4   : > { %v7178_v35 = vor.u32 %v7759_v22, %v7177_v1  ;;  %v7038_v26 = vor.u32 %v7721_v52, %v7035_v55  ;;  %v7114_v1 = vor.u32 %v7743_v49, %v7113_v51  ;;  %v6974_v22 = vor.u32 %v7705_v50, %v6971_v36  ;;  %v7745_v52 = vld [vmem:[%s10155_s11 + $0x144] sm:$0xf]  ;;  %v7131_v55 = vld [vmem:[%s10155_s11 + $0x150] sm:$0xf0]  ;;  %v7708_v51 = vld [vmem:[%s10155_s11 + $0x14] sm:$0xf0] }
 0x3d5   : > { %v3972_v41 = vadd.f32 %v3971_v8, %v3959_v14  ;;  %v6969_v8 = vld [vmem:[%s10155_s11] sm:$0xf]  ;;  %v7707_v14 = vld [vmem:[%s10155_s11 + $0xc] sm:$0xf0]  ;;  %4881 = vmatpush.bf16.msrb.mxu0 %v6986_v40  ;;  %v7042_v40 = vor.u32 %v7724_v46, %v7041_v47  ;;  %v7027_v6 = vld [vmem:[%s10155_s11 + $0x78] sm:$0xf0] }
 0x3d6   : > { %4890 = vmatpush.bf16.msrb.mxu1 %v7178_v35  ;;  %4904 = vmatpush.bf16.msrb.mxu2 %v7038_v26  ;;  %v7739_v35 = vld [vmem:[%s10155_s11 + $0x10c] sm:$0xf0]  ;;  %v7025_v26 = vld [vmem:[%s10155_s11 + $0x68] sm:$0xf]  ;;  %v7030_v50 = vor.u32 %v7718_v0, %v7027_v6  ;;  %v7219_v36 = vld [vmem:[%s10155_s11 + $0x1f8] sm:$0xf0] }
 0x3d7   : > { %v3978_v28 = vmax.f32 %v3972_v41, 0.0  ;;  %v7161_v41 = vld [vmem:[%s10155_s11 + $0x180] sm:$0xf]  ;;  %v7153_v46 = vld [vmem:[%s10155_s11 + $0x168] sm:$0xf]  ;;  %v7772_v6 = vld [vmem:[%s10157_s13 + $0x18] sm:$0xff] }
 0x3d9   : > { %v3982_v61 = vpack.c.bf16 %v3978_v28, %v3978_v28  ;;  %v7765_v28 = vld [vmem:[%s10155_s11 + $0x1e4] sm:$0xf] }
 0x3da   : > { %v3960_v2 = vpop.f32.mrf.mxu2  ;;  %v3973_v42 = vpop.f32.mrf.mxu3 }
 0x3db   : > { %4420 = vmatmul.bf16.vlgmr.msrb.gmra.mxu3 %v3982_v61  ;;  %v7755_v2 = vld [vmem:[%s10155_s11 + $0x18c] sm:$0xf0]  ;;  %v7717_v42 = vld [vmem:[%s10155_s11 + $0x64] sm:$0xf] }
 0x3ea   : > { %v4382_v16 = vpop.f32.mrf.mxu0  ;;  %v4395_v62 = vpop.f32.mrf.mxu1 }
 0x3eb   : > { %v4383_v60 = vadd.f32 %v4382_v16, %v4369_v48  ;;  %4472 = vmatmul.bf16.vlgmr.msra.gmra.mxu3 %v3982_v61  ;;  %v7211_v61 = vld [vmem:[%s10155_s11 + $0x1f0] sm:$0xf0] }
 0x3ec   : > { %v7214_v48 = vor.u32 %v7765_v28, %v7211_v61  ;;  %v7720_v28 = vld [vmem:[%s10155_s11 + $0x74] sm:$0xf0]  ;;  %v7217_v61 = vld [vmem:[%s10155_s11 + $0x1e8] sm:$0xf] }
 0x3ed   : > { %v9646_v17 = vadd.f32 %v4395_v62, %v4383_v60  ;;  %v7089_v62 = vld [vmem:[%s10155_s11 + $0xe8] sm:$0xf]  ;;  %v7736_v60 = vld [vmem:[%s10155_s11 + $0xf4] sm:$0xf0] }
 0x3ee   : > { %4914 = vmatpush.bf16.msrb.mxu3 %v7214_v48  ;;  %v7090_v12 = vor.u32 %v7736_v60, %v7089_v62  ;;  %v7134_v48 = vor.u32 %v7745_v52, %v7131_v55  ;;  %v7026_v60 = vor.u32 %v7720_v28, %v7025_v26  ;;  %v7203_v52 = vld [vmem:[%s10155_s11 + $0x1d8] sm:$0xf0]  ;;  %v7710_v26 = vld [vmem:[%s10155_s11 + $0x2c] sm:$0xf] }
 0x3ef   : > { %v6995_v28 = vld [vmem:[%s10155_s11 + $0x38] sm:$0xf0] }
 0x3f2   : > { %v4384_v58 = vpop.f32.mrf.mxu0  ;;  %v4397_v21 = vpop.f32.mrf.mxu1 }
 0x3f3   : > { %v7761_v58 = vld [vmem:[%s10155_s11 + $0x1c4] sm:$0xf]  ;;  %v6970_v21 = vor.u32 %v7707_v14, %v6969_v8  ;;  %v7094_v8 = vor.u32 %v7734_v37, %v7091_v59  ;;  %v7097_v14 = vld [vmem:[%s10155_s11 + $0x100] sm:$0xf]  ;;  %v7752_v37 = vld [vmem:[%s10155_s11 + $0x174] sm:$0xf0] }
 0x3f4   : > { %v7098_v62 = vor.u32 %v7739_v35, %v7097_v14  ;;  %v7714_v59 = vld [vmem:[%s10155_s11 + $0x4c] sm:$0xf]  ;;  %v7748_v14 = vld [vmem:[%s10155_s11 + $0x154] sm:$0xf0] }
 0x3f5   : > { %4882 = vmatpush.bf16.msrb.mxu0 %v6970_v21  ;;  %v7009_v21 = vld [vmem:[%s10155_s11 + $0x48] sm:$0xf] }
 0x3f9   : > { %4927 = vmatpush.bf16.msra.mxu0 %v7090_v12  ;;  %v7726_v12 = vld [vmem:[%s10155_s11 + $0xac] sm:$0xf] }
 0x40a   : > { %v4434_v29 = vpop.f32.mrf.mxu0  ;;  %v4447_v5 = vpop.f32.mrf.mxu1 }
 0x40b   : > { %v4435_v25 = vadd.f32 %v4434_v29, %v4370_v54  ;;  %v7195_v54 = vld [vmem:[%s10155_s11 + $0x1d0] sm:$0xf0]  ;;  %v7162_v29 = vor.u32 %v7755_v2, %v7161_v41  ;;  %v7768_v2 = vld [vmem:[%s10155_s11 + $0x1f4] sm:$0xf0] }
 0x40c   : > { %v7198_v15 = vor.u32 %v7761_v58, %v7195_v54  ;;  %v7218_v58 = vor.u32 %v7768_v2, %v7217_v61  ;;  %v7758_v61 = vld [vmem:[%s10155_s11 + $0x1ac] sm:$0xf]  ;;  %v6998_v2 = vor.u32 %v7710_v26, %v6995_v28 }
 0x40d   : > { %v9648_v18 = vadd.f32 %v4447_v5, %v4435_v25  ;;  %v7022_v5 = vor.u32 %v7717_v42, %v7019_v44  ;;  %v7145_v25 = vld [vmem:[%s10155_s11 + $0x160] sm:$0xf]  ;;  %4891 = vmatpush.bf16.msrb.mxu1 %v7162_v29  ;;  %v7730_v42 = vld [vmem:[%s10155_s11 + $0xcc] sm:$0xf]  ;;  %v7075_v44 = vld [vmem:[%s10155_s11 + $0xd8] sm:$0xf0] }
 0x40e   : > { %4915 = vmatpush.bf16.msrb.mxu3 %v7198_v15  ;;  %v7146_v63 = vor.u32 %v7751_v23, %v7145_v25  ;;  %v7078_v54 = vor.u32 %v7730_v42, %v7075_v44  ;;  %v7716_v29 = vld [vmem:[%s10155_s11 + $0x54] sm:$0xf0]  ;;  %v7187_v42 = vld [vmem:[%s10155_s11 + $0x1b8] sm:$0xf0] }
 0x40f   : > { %4905 = vmatpush.bf16.msrb.mxu2 %v7022_v5  ;;  %v7201_v5 = vld [vmem:[%s10155_s11 + $0x1c8] sm:$0xf]  ;;  %v7764_v25 = vld [vmem:[%s10155_s11 + $0x1d4] sm:$0xf0]  ;;  %v7010_v23 = vor.u32 %v7716_v29, %v7009_v21  ;;  %v7190_v44 = vor.u32 %v7758_v61, %v7187_v42  ;;  %v6979_v21 = vld [vmem:[%s10155_s11 + $0x18] sm:$0xf0] }
 0x410   : > { %v7202_v53 = vor.u32 %v7764_v25, %v7201_v5  ;;  %v7171_v5 = vld [vmem:[%s10155_s11 + $0x198] sm:$0xf0] }
 0x411   : > { %4892 = vmatpush.bf16.msrb.mxu1 %v7146_v63  ;;  %v7712_v63 = vld [vmem:[%s10155_s11 + $0x34] sm:$0xf0] }
 0x412   : > { %v4436_v10 = vpop.f32.mrf.mxu0  ;;  %v4449_v30 = vpop.f32.mrf.mxu1 }
 0x413   : > { %v7179_v10 = vld [vmem:[%s10155_s11 + $0x1b0] sm:$0xf0]  ;;  %v7073_v30 = vld [vmem:[%s10155_s11 + $0xc8] sm:$0xf]  ;;  %4906 = vmatpush.bf16.msrb.mxu2 %v7006_v34 }
 0x414   : > { %v7182_v57 = vor.u32 %v7757_v13, %v7179_v10  ;;  %v7074_v27 = vor.u32 %v7732_v24, %v7073_v30  ;;  %v7062_v13 = vor.u32 %v7726_v12, %v7059_v20  ;;  %v7741_v10 = vld [vmem:[%s10155_s11 + $0x124] sm:$0xf]  ;;  %v7115_v30 = vld [vmem:[%s10155_s11 + $0x130] sm:$0xf0]  ;;  %v6993_v24 = vld [vmem:[%s10155_s11 + $0x28] sm:$0xf] }
 0x415   : > { %4893 = vmatpush.bf16.msrb.mxu1 %v7130_v32  ;;  %v7185_v34 = vld [vmem:[%s10155_s11 + $0x1a8] sm:$0xf]  ;;  %v6994_v4 = vor.u32 %v7712_v63, %v6993_v24  ;;  %v7756_v32 = vld [vmem:[%s10155_s11 + $0x194] sm:$0xf0]  ;;  %v7750_v12 = vld [vmem:[%s10155_s11 + $0x16c] sm:$0xf] }
 0x416   : > { %4916 = vmatpush.bf16.msrb.mxu3 %v7182_v57  ;;  %4928 = vmatpush.bf16.msra.mxu0 %v7074_v27  ;;  %v7118_v57 = vor.u32 %v7741_v10, %v7115_v30  ;;  %v7186_v45 = vor.u32 %v7760_v33, %v7185_v34  ;;  %v7722_v27 = vld [vmem:[%s10155_s11 + $0x8c] sm:$0xf]  ;;  %v7155_v20 = vld [vmem:[%s10155_s11 + $0x178] sm:$0xf0] }
 0x417   : > { %4907 = vmatpush.bf16.msrb.mxu2 %v6990_v39  ;;  %v7046_v38 = vor.u32 %v7722_v27, %v7043_v3  ;;  %v6978_v39 = vor.u32 %v7708_v51, %v6977_v56  ;;  %v7746_v10 = vld [vmem:[%s10155_s11 + $0x14c] sm:$0xf]  ;;  %v7139_v30 = vld [vmem:[%s10155_s11 + $0x158] sm:$0xf0] }
 0x418   : > { %v7142_v24 = vor.u32 %v7746_v10, %v7139_v30  ;;  %v7123_v63 = vld [vmem:[%s10155_s11 + $0x138] sm:$0xf0]  ;;  %v7738_v27 = vld [vmem:[%s10155_s11 + $0x10c] sm:$0xf] }
 0x419   : > { %4894 = vmatpush.bf16.msrb.mxu1 %v7114_v1  ;;  %v7011_v1 = vld [vmem:[%s10155_s11 + $0x58] sm:$0xf0] }
 0x41a   : > { %4917 = vmatpush.bf16.msrb.mxu3 %v7166_v31  ;;  %4929 = vmatpush.bf16.msra.mxu0 %v7058_v11  ;;  %v7169_v31 = vld [vmem:[%s10155_s11 + $0x188] sm:$0xf]  ;;  %v7766_v11 = vld [vmem:[%s10155_s11 + $0x1ec] sm:$0xf]  ;;  %v7014_v55 = vor.u32 %v7714_v59, %v7011_v1  ;;  %v7107_v3 = vld [vmem:[%s10155_s11 + $0x118] sm:$0xf0] }
 0x41b   : > { %4908 = vmatpush.bf16.msrb.mxu2 %v6974_v22  ;;  %v7170_v49 = vor.u32 %v7756_v32, %v7169_v31  ;;  %v7222_v47 = vor.u32 %v7766_v11, %v7219_v36  ;;  %v7762_v22 = vld [vmem:[%s10155_s11 + $0x1cc] sm:$0xf]  ;;  %v7773_v32 = vld [vmem:[%s10157_s13 + $0x20] sm:$0xff]  ;;  %v7784_v11 = vld [vmem:[%s10157_s13 + $0x78] sm:$0xff] }
 0x41c   : > { %v7770_v36 = vld [vmem:[%s10157_s13 + $0x8] sm:$0xff]  ;;  %v7781_v59 = vld [vmem:[%s10157_s13 + $0x60] sm:$0xff]  ;;  %v7780_v1 = vld [vmem:[%s10157_s13 + $0x58] sm:$0xff] }
 0x41d   : > { %4895 = vmatpush.bf16.msrb.mxu1 %v7098_v62  ;;  %v7744_v62 = vld [vmem:[%s10155_s11 + $0x134] sm:$0xf0] }
 0x41e   : > { %4918 = vmatpush.bf16.msrb.mxu3 %v7150_v9  ;;  %4930 = vmatpush.bf16.msra.mxu0 %v7042_v40  ;;  %v7154_v9 = vor.u32 %v7752_v37, %v7153_v46  ;;  %v7206_v40 = vor.u32 %v7762_v22, %v7203_v52  ;;  %v4994_v46 = vld [vmem:[#allocation3] sm:$0x3]  ;;  %v7769_v37 = vld [vmem:[%s10157_s13] sm:$0xff]  ;;  %v7779_v52 = vld [vmem:[%s10157_s13 + $0x50] sm:$0xff] }
 0x41f   : > { %v9758_v16 = vpop.f32.mrf.mxu2  ;;  %4953 = vmatpush.bf16.msra.mxu2 %v7094_v8  ;;  %v7137_v8 = vld [vmem:[%s10155_s11 + $0x148] sm:$0xf] }
 0x420   : > { %v7138_v35 = vor.u32 %v7748_v14, %v7137_v8  ;;  %v4409_v33 = vadd.f32 %v9758_v16, %v9646_v17  ;;  %v7775_v16 = vld [vmem:[%s10157_s13 + $0x30] sm:$0xff]  ;;  %v4997_v8 = vperm.slane %v4994_v46, 1 }
 0x421   : > { %4940 = vmatpush.bf16.msra.mxu1 %v7218_v58  ;;  %v7706_v58 = vld [vmem:[%s10155_s11 + $0xc] sm:$0xf] }
 0x422   : > { %4919 = vmatpush.bf16.msrb.mxu3 %v7134_v48  ;;  %4931 = vmatpush.bf16.msra.mxu0 %v7026_v60  ;;  %v7121_v48 = vld [vmem:[%s10155_s11 + $0x128] sm:$0xf]  ;;  %v6982_v29 = vor.u32 %v7706_v58, %v6979_v21  ;;  %v5001_v14 = vpack.c.bf16 %v4997_v8, %v4997_v8  ;;  %v4545_v58 = vld [vmem:[%s10156_s12] sm:$0xf] }
 0x423   : > { %4954 = vmatpush.bf16.msra.mxu2 %v7078_v54  ;;  %v7122_v60 = vor.u32 %v7744_v62, %v7121_v48  ;;  %v7754_v54 = vld [vmem:[%s10155_s11 + $0x18c] sm:$0xf]  ;;  %v4868_v21 = vperm.slane %v4545_v58, 1 }
 0x424   : > { %v7174_v25 = vor.u32 %v7754_v54, %v7171_v5 }
 0x425   : > { %4941 = vmatpush.bf16.msra.mxu1 %v7202_v53  ;;  %v7740_v53 = vld [vmem:[%s10155_s11 + $0x114] sm:$0xf0] }
 0x426   : > { %4932 = vmatpush.bf16.msra.mxu0 %v7010_v23  ;;  %4920 = vmatpush.bf16.msrb.mxu3 %v7118_v57  ;;  %v7105_v23 = vld [vmem:[%s10155_s11 + $0x108] sm:$0xf]  ;;  %v7742_v57 = vld [vmem:[%s10155_s11 + $0x12c] sm:$0xf] }
 0x427   : > { %v4410_v43 = vpop.f32.mrf.mxu2  ;;  %4955 = vmatpush.bf16.msra.mxu2 %v7062_v13  ;;  %v7158_v13 = vor.u32 %v7750_v12, %v7155_v20  ;;  %v7126_v34 = vor.u32 %v7742_v57, %v7123_v63  ;;  %v4867_v12 = vperm.slane %v4545_v58, 0 }
 0x428   : > { %v7099_v43 = vld [vmem:[%s10155_s11 + $0x110] sm:$0xf0] }
 0x429   : > { %4942 = vmatpush.bf16.msra.mxu1 %v7186_v45  ;;  %v7102_v7 = vor.u32 %v7737_v19, %v7099_v43  ;;  %v7776_v43 = vld [vmem:[%s10157_s13 + $0x38] sm:$0xff] }
 0x42a   : > { %4933 = vmatpush.bf16.msra.mxu0 %v6994_v4 }
 0x42b   : > { %4956 = vmatpush.bf16.msra.mxu2 %v7046_v38  ;;  %4921 = vmatpush.bf16.msrb.mxu3 %v7102_v7  ;;  %v7110_v38 = vor.u32 %v7738_v27, %v7107_v3  ;;  %v7774_v7 = vld [vmem:[%s10157_s13 + $0x28] sm:$0xff] }
 0x42d   : > { %4943 = vmatpush.bf16.msra.mxu1 %v7170_v49 }
 0x42e   : > { %4934 = vmatpush.bf16.msra.mxu0 %v6978_v39 }
 0x42f   : > { %v9865_v41 = vpop.f32.mrf.mxu2  ;;  %4957 = vmatpush.bf16.msra.mxu2 %v7030_v50  ;;  %4966 = vmatpush.bf16.msra.mxu3 %v7222_v47  ;;  %v7783_v50 = vld [vmem:[%s10157_s13 + $0x70] sm:$0xff]  ;;  %v7782_v47 = vld [vmem:[%s10157_s13 + $0x68] sm:$0xff] }
 0x430   : > { %v4461_v51 = vadd.f32 %v9865_v41, %v9648_v18  ;;  %v7771_v41 = vld [vmem:[%s10157_s13 + $0x10] sm:$0xff] }
 0x431   : > { %4944 = vmatpush.bf16.msra.mxu1 %v7154_v9  ;;  %v4996_v9 = vperm.slane %v4994_v46, 0 }
 0x433   : > { %4958 = vmatpush.bf16.msra.mxu2 %v7014_v55  ;;  %4967 = vmatpush.bf16.msra.mxu3 %v7206_v40  ;;  %v5000_v22 = vpack.c.bf16 %v4996_v9, %v4996_v9  ;;  %v7778_v55 = vld [vmem:[%s10157_s13 + $0x48] sm:$0xff]  ;;  %v7777_v40 = vld [vmem:[%s10157_s13 + $0x40] sm:$0xff] }
 0x435   : > { %4945 = vmatpush.bf16.msra.mxu1 %v7138_v35 }
 0x437   : > { %v4462_v15 = vpop.f32.mrf.mxu2  ;;  %4959 = vmatpush.bf16.msra.mxu2 %v6998_v2  ;;  %4968 = vmatpush.bf16.msra.mxu3 %v7190_v44 }
 0x438   : > { %v7106_v15 = vor.u32 %v7740_v53, %v7105_v23  ;;  %v4870_v53 = vperm.slane %v4545_v58, 3 }
 0x439   : > { %4946 = vmatpush.bf16.msra.mxu1 %v7122_v60 }
 0x43b   : > { %4960 = vmatpush.bf16.msra.mxu2 %v6982_v29  ;;  %4969 = vmatpush.bf16.msra.mxu3 %v7174_v25  ;;  %v4869_v29 = vperm.slane %v4545_v58, 2 }
 0x43d   : > { %4947 = vmatpush.bf16.msra.mxu1 %v7106_v15 }
 0x43f   : > { %4970 = vmatpush.bf16.msra.mxu3 %v7158_v13 }
 0x443   : > { %4971 = vmatpush.bf16.msra.mxu3 %v7142_v24 }
 0x447   : > { %4972 = vmatpush.bf16.msra.mxu3 %v7126_v34 }
 0x44b   : > { %4973 = vmatpush.bf16.msra.mxu3 %v7110_v38  ;;  %v10190_v38 = vlaneseq }
 0x44d   : > { %vm4991_vm5 = vcmp.lt.s32.totalorder %v10190_v38, 400 }
 0x45e   : > { %v4421_v4 = vpop.f32.mrf.mxu3 }
 0x45f   : > { %v4422_v45 = vadd.f32 %v4421_v4, %v4409_v33 }
 0x461   : > { %v4477_v19 = vmax.f32 %v4422_v45, 0.0 }
 0x463   : > { %v4479_v56 = vpack.c.bf16 %v4477_v19, %v4477_v19 }
 0x465   : > { %4883 = vmatmul.bf16.vlgmr.msrb.gmra.mxu0 %v4479_v56  ;;  %4909 = vmatmul.bf16.vlgmr.msrb.gmra.mxu2 %v4479_v56 }
 0x466   : > { %v4423_v17 = vpop.f32.mrf.mxu3  ;;  %5131 = vmatpush.bf16.msrb.mxu0 %v7776_v43 }
 0x467   : > { %v5034_v17 = vld [vmem:[#allocation4] sm:$0x1] }
 0x46a   : > { %5132 = vmatpush.bf16.msrb.mxu0 %v7775_v16 }
 0x46e   : > { %v4473_v31 = vpop.f32.mrf.mxu3  ;;  %5133 = vmatpush.bf16.msrb.mxu0 %v7774_v7 }
 0x46f   : > { %v4474_v39 = vadd.f32 %v4473_v31, %v4461_v51 }
 0x471   : > { %v4478_v49 = vmax.f32 %v4474_v39, 0.0 }
 0x472   : > { %5134 = vmatpush.bf16.msrb.mxu0 %v7773_v32 }
 0x473   : > { %v4480_v0 = vpack.c.bf16 %v4478_v49, %v4478_v49 }
 0x475   : > { %4896 = vmatmul.bf16.vlgmr.msrb.gmra.mxu1 %v4480_v0  ;;  %4922 = vmatmul.bf16.vlgmr.msrb.gmra.mxu3 %v4480_v0 }
 0x476   : > { %4935 = vmatmul.bf16.vlgmr.msra.gmra.mxu0 %v4479_v56  ;;  %4961 = vmatmul.bf16.vlgmr.msra.gmra.mxu2 %v4479_v56  ;;  %v4475_v18 = vpop.f32.mrf.mxu3 }
 0x477   : > { %5135 = vmatpush.bf16.msrb.mxu0 %v7772_v6  ;;  %5144 = vmatpush.bf16.msrb.mxu1 %v7784_v11 }
 0x47b   : > { %5136 = vmatpush.bf16.msrb.mxu0 %v7771_v41  ;;  %5145 = vmatpush.bf16.msrb.mxu1 %v7783_v50 }
 0x47f   : > { %5137 = vmatpush.bf16.msrb.mxu0 %v7770_v36  ;;  %5146 = vmatpush.bf16.msrb.mxu1 %v7782_v47 }
 0x483   : > { %5138 = vmatpush.bf16.msrb.mxu0 %v7769_v37  ;;  %5147 = vmatpush.bf16.msrb.mxu1 %v7781_v59 }
 0x485   : > { %4948 = vmatmul.bf16.vlgmr.msra.gmra.mxu1 %v4480_v0  ;;  %4974 = vmatmul.bf16.vlgmr.msra.gmra.mxu3 %v4480_v0 }
 0x486   : > { %5139 = vmatmul.bf16.vlgmr.msrb.gmra.mxu0 %v5000_v22 }
 0x487   : > { %5148 = vmatpush.bf16.msrb.mxu1 %v7780_v1 }
 0x48b   : > { %5149 = vmatpush.bf16.msrb.mxu1 %v7779_v52 }
 0x48f   : > { %5150 = vmatpush.bf16.msrb.mxu1 %v7778_v55 }
 0x493   : > { %5151 = vmatpush.bf16.msrb.mxu1 %v7777_v40 }
 0x496   : > { %5152 = vmatmul.bf16.vlgmr.msrb.gmra.mxu1 %v5001_v14 }
 0x4e2   : > { %v4884_v35 = vpop.f32.mrf.mxu0 }
 0x4e3   : > { %v4885_v57 = vadd.f32 %v4884_v35, %v4867_v12 }
 0x4e8   : > { %v4910_v26 = vpop.f32.mrf.mxu2 }
 0x4e9   : > { %v4911_v23 = vadd.f32 %v4910_v26, %v4868_v21 }
 0x4ea   : > { %v4886_v28 = vpop.f32.mrf.mxu0 }
 0x4f0   : > { %v4912_v61 = vpop.f32.mrf.mxu2 }
 0x4f2   : > { %v4897_v2 = vpop.f32.mrf.mxu1 }
 0x4f3   : > { %v4936_v42 = vpop.f32.mrf.mxu0  ;;  %v4898_v4 = vadd.f32 %v4897_v2, %v4885_v57 }
 0x4f4   : > { %v4937_v20 = vadd.f32 %v4936_v42, %v4869_v29 }
 0x4f8   : > { %v4923_v44 = vpop.f32.mrf.mxu3 }
 0x4f9   : > { %v4962_v48 = vpop.f32.mrf.mxu2  ;;  %v4924_v13 = vadd.f32 %v4923_v44, %v4911_v23 }
 0x4fa   : > { %v4899_v62 = vpop.f32.mrf.mxu1  ;;  %v4963_v10 = vadd.f32 %v4962_v48, %v4870_v53 }
 0x4fb   : > { %v4938_v60 = vpop.f32.mrf.mxu0  ;;  %v4983_v63 = vrot.slane %v4924_v13, 7 }
 0x4fd   : > { %v4986_v19 = vsel %vm1063_vm3, %v4898_v4, %v4983_v63 }
 0x500   : > { %v4925_v54 = vpop.f32.mrf.mxu3 }
 0x501   : > { %v4964_v5 = vpop.f32.mrf.mxu2 }
 0x502   : > { %v4949_v25 = vpop.f32.mrf.mxu1 }
 0x503   : > { %v5140_v15 = vpop.f32.mrf.mxu0  ;;  %v4950_v30 = vadd.f32 %v4949_v25, %v4937_v20 }
 0x505   : > { %v4984_v45 = vrot.slane %v4950_v30, 6 }
 0x508   : > { %v4975_v24 = vpop.f32.mrf.mxu3 }
 0x509   : > { %v4976_v34 = vadd.f32 %v4975_v24, %v4963_v10 }
 0x50a   : > { %v4951_v33 = vpop.f32.mrf.mxu1 }
 0x50b   : > { %v4985_v27 = vrot.slane %v4976_v34, 5  ;;  %v5142_v3 = vpop.f32.mrf.mxu0 }
 0x50d   : > { %v4988_v43 = vsel %vm4987_vm4, %v4984_v45, %v4985_v27 }
 0x50e   : > { %v4989_v56 = vsel %vm671_vm0, %v4986_v19, %v4988_v43 }
 0x50f   : > { %4993 = vst.msk [vmem:[%s574_s28] sm:$0xf] %vm4991_vm5, %v4989_v56 }
 0x510   : > { %v4977_v16 = vpop.f32.mrf.mxu3 }
 0x511   : > { %7956 = shalt.err (!%p7953_p9)
}
 0x512   : > { %7794 = dma.vmem_to_hbm [thread:$0]  (%p8152_p4), %s5176_s26, 64, %s5178_s19, %s5160_s20   ;;  %v5141_v7 = vadd.f32 %v5140_v15, %v5034_v17  ;;  %vm5157_vm6 = vcmask 0  }
 0x513   : > { %s592_s27 = scalar_lea.vmem %s10160_s16, %s8197_s23  ;;  %v5153_v51 = vpop.f32.mrf.mxu1 }
 0x514   : > { %v5154_v31 = vadd.f32 %v5153_v51, %v5141_v7 }
 0x516   : > { %5158 = vst.msk [vmem:[%s592_s27] sm:$0x1] %vm5157_vm6, %v5154_v31 }
 0x51b   : > { %v5155_v32 = vpop.f32.mrf.mxu1 }
 0x51c PF: > { %s10191_s28 = sld [smem:[#allocation17_spill]] }
 0x51d   : > { %s10192_s21 = sld [smem:[#allocation14_spill]] }
 0x522   : > { %p7811_p10 = scmp.ge.s32.totalorder %s10191_s28, 2 }
 0x523   : > { %s5192_s18 = sand.u32 1, %s10192_s21  }
 0x524   : > { %p7804_p11 = pnand %p7811_p10, %p8159_p8  ;;  %s5193_s17 = scalar_lea.sflag [#allocation7], %s5192_s18 }
 0x526   : > { %p7805_p12 = pneg %p7804_p11 }
 0x528   : > { %7990 = dma.done.wait (%p7805_p12), %s5193_s17, 64  }
 0x529   : > { %7992 = vsyncadd (%p7805_p12), %s5193_s17, 4294967232  ;;  %s34_s28 = sadd.s32 1, %s10191_s28   ;;  %s10194_s26 = sld [smem:[#allocation15_spill]] }
 0x52a   : > { %p31_p4 = scmp.ge.s32.totalorder %s34_s28, 4   ;;  %s10195_s25 = sld [smem:[#allocation20_spill]] }
 0x52b   : > { %s10196_s19 = sld [smem:[#allocation16_spill]]  ;;  %s10198_s23 = smov %s7999_s24 }
 0x52c   : > { %s10197_s27 = sld [smem:[#allocation18_spill]] }
 0x52d   :  { %33 = sbr.rel (!%p31_p4) target bundleno = 9 (0x9), region = 144 }
 0x52f   : > { %s10199_s24 = smov %s10194_s26 }
 0x531   : > { %s10200_s26 = smov %s10196_s19 }
 0x532   :  { %5205 = vsyncpa [#allocation6], 1 }
 0x533   :  { %5207 = vsyncpa [#allocation6 + $0x1], 1 }
 0x534   :  { %5208 = vsyncpa [#allocation9], 1 }
 0x535   :  { %5209 = vsyncpa [#allocation7], 1 }
 0x536   :  { %5211 = vsyncpa [#allocation7 + $0x1], 1 }

</bundles_post_ra>
